<compile_context>
chip_gen: v7x
topology: tpu7x:2x2x1
jax: 0.10.0
libtpu: 0.0.40
codegen_flags: <defaults>
</compile_context>

<pallas_src>
import jax
import jax.numpy as jnp
from jax.experimental import pallas as pl

# ---- model hyper-parameters (small, consistent with the module __init__) ----
DIM_NODE = 8          # dim_node
D_P = 8               # d_p  (node identifier dim)
D_MODEL = 32          # d
N_HEADS = 4           # num_heads
HEAD_DIM = D_MODEL // N_HEADS
FFN_DIM = 64          # dim_feedforward
N_LAYERS = 2          # num_encoder_layers
N_CLASSES = 2         # num_classes
SEQ_LEN = 16          # padded tokens per graph (>= 1 + max_nodes + max_edges)


# -----------------------------------------------------------------------------
# Pallas kernel: full encoder stack + classifier in one call
# -----------------------------------------------------------------------------
def _layer_norm(x, gamma, beta, eps=1e-5):
    mu = jnp.mean(x, axis=-1, keepdims=True)
    var = jnp.mean(jnp.square(x - mu), axis=-1, keepdims=True)
    return (x - mu) * jax.lax.rsqrt(var + eps) * gamma + beta


def fused_tokengt_kernel(x_ref, mask_ref, sel_ref,
                         wqkv_ref, bqkv_ref, wo_ref, bo_ref,
                         ln1g_ref, ln1b_ref, w1_ref, b1_ref,
                         w2_ref, b2_ref, ln2g_ref, ln2b_ref,
                         wlm_ref, blm_ref, out_ref):
    """All encoder layers + classification head for the whole (flattened) batch.

    x_ref   : (T, D)   tokens of all graphs, T = B * SEQ_LEN
    mask_ref: (T, T)   additive attention mask (block-diagonal per graph,
                       -1e9 on padded / cross-graph keys)
    sel_ref : (B, T)   one-hot rows selecting each graph's [graph] token
    weights : stacked along a leading (N_LAYERS, ...) axis; resident in VMEM.
    out_ref : (B, N_CLASSES) logits
    """
    x = x_ref[...]                      # (T, D)
    mask = mask_ref[...]                # (T, T)
    scale = 1.0 / (HEAD_DIM ** 0.5)

    for l in range(N_LAYERS):           # static unrolled layer loop
        # ---- multi-head self-attention (fused QKV projection) ----
        qkv = jnp.dot(x, wqkv_ref[l], preferred_element_type=jnp.float32) + bqkv_ref[l]
        wo_l = wo_ref[l]                # (D, D)
        attn = jnp.zeros_like(x)        # (T, D) accumulator over heads
        for h in range(N_HEADS):        # static head loop
            lo = h * HEAD_DIM
            qh = qkv[:, lo:lo + HEAD_DIM]                              # (T, dh)
            kh = qkv[:, D_MODEL + lo:D_MODEL + lo + HEAD_DIM]          # (T, dh)
            vh = qkv[:, 2 * D_MODEL + lo:2 * D_MODEL + lo + HEAD_DIM]  # (T, dh)
            # qh @ kh^T without an explicit transpose
            s = jax.lax.dot_general(qh, kh, (((1,), (1,)), ((), ())),
                                    preferred_element_type=jnp.float32) * scale
            s = s + mask
            s = s - jnp.max(s, axis=-1, keepdims=True)
            p = jnp.exp(s)
            p = p * pl.reciprocal(jnp.sum(p, axis=-1, keepdims=True), approx=True)
            ctx_h = jnp.dot(p, vh, preferred_element_type=jnp.float32)  # (T, dh)
            # fold head into the output projection: concat(heads)@Wo == sum_h ctx_h@Wo_h
            attn = attn + jnp.dot(ctx_h, wo_l[lo:lo + HEAD_DIM, :],
                                  preferred_element_type=jnp.float32)
        attn = attn + bo_ref[l]
        x = _layer_norm(x + attn, ln1g_ref[l], ln1b_ref[l])

        # ---- feed-forward (ReLU, nn.TransformerEncoderLayer default) ----
        h1 = jnp.dot(x, w1_ref[l], preferred_element_type=jnp.float32) + b1_ref[l]
        h1 = jnp.maximum(h1, 0.0)
        ff = jnp.dot(h1, w2_ref[l], preferred_element_type=jnp.float32) + b2_ref[l]
        x = _layer_norm(x + ff, ln2g_ref[l], ln2b_ref[l])

    # ---- classifier on the [graph] tokens (selection via tiny matmul) ----
    g = jnp.dot(sel_ref[...], x, preferred_element_type=jnp.float32)   # (B, D)
    out_ref[...] = (jnp.dot(g, wlm_ref[...],
                            preferred_element_type=jnp.float32) + blm_ref[...])


def tokengt_fused_forward(params, tokens_flat, mask, sel, num_graphs):
    """Single pallas_call: no grid, whole problem as one VMEM-resident block."""
    return pl.pallas_call(
        fused_tokengt_kernel,
        out_shape=jax.ShapeDtypeStruct((num_graphs, N_CLASSES), jnp.float32),
    )(tokens_flat, mask, sel,
      params["wqkv"], params["bqkv"], params["wo"], params["bo"],
      params["ln1g"], params["ln1b"], params["w1"], params["b1"],
      params["w2"], params["b2"], params["ln2g"], params["ln2b"],
      params["w_lm"], params["b_lm"])


# -----------------------------------------------------------------------------
# Parameter init (deterministic, in-script; per-layer weights pre-stacked)
# -----------------------------------------------------------------------------
def init_params(key):
    def normal(k, shape, scale=0.05):
        return (scale * jax.random.normal(k, shape)).astype(jnp.float32)

    keys = iter(jax.random.split(key, 32))
    L, D, F = N_LAYERS, D_MODEL, FFN_DIM
    params = {
        # token construction
        "w_feat": normal(next(keys), (DIM_NODE, D)),
        "b_feat": jnp.zeros((1, D), jnp.float32),
        "w_id": normal(next(keys), (2 * D_P, D)),
        "b_id": jnp.zeros((1, D), jnp.float32),
        "type_emb": normal(next(keys), (2, D)),        # [node, edge] type embeddings
        "graph_tok": normal(next(keys), (D,)),          # [graph] token embedding
        # classifier
        "w_lm": normal(next(keys), (D, N_CLASSES)),
        "b_lm": jnp.zeros((1, N_CLASSES), jnp.float32),
        # encoder layers, stacked on a leading layer axis (fused QKV weight)
        "wqkv": normal(next(keys), (L, D, 3 * D)),
        "bqkv": jnp.zeros((L, 1, 3 * D), jnp.float32),
        "wo": normal(next(keys), (L, D, D)),
        "bo": jnp.zeros((L, 1, D), jnp.float32),
        "ln1g": jnp.ones((L, 1, D), jnp.float32),
        "ln1b": jnp.zeros((L, 1, D), jnp.float32),
        "w1": normal(next(keys), (L, D, F)),
        "b1": jnp.zeros((L, 1, F), jnp.float32),
        "w2": normal(next(keys), (L, F, D)),
        "b2": jnp.zeros((L, 1, D), jnp.float32),
        "ln2g": jnp.ones((L, 1, D), jnp.float32),
        "ln2b": jnp.zeros((L, 1, D), jnp.float32),
    }
    return params


# -----------------------------------------------------------------------------
# TokenGT forward (token construction glue in JAX, hot path in one Pallas call)
# -----------------------------------------------------------------------------
def tokengt_graph_classification(params, x, edge_index, ptr, batch, node_ids, num_graphs):
    N = x.shape[0]
    E = edge_index.shape[1]
    x = x.astype(jnp.float32)

    # --- token construction (data-dependent scatter; stays in plain JAX) ---
    node_feat = x @ params["w_feat"] + params["b_feat"]                       # (N, D)
    node_id_in = jnp.concatenate([node_ids, node_ids], axis=-1)               # (N, 2*d_p)
    node_tok = node_feat + node_id_in @ params["w_id"] + params["b_id"] + params["type_emb"][0]

    src, dst = edge_index[0], edge_index[1]
    edge_id_in = jnp.concatenate([node_ids[src], node_ids[dst]], axis=-1)     # (E, 2*d_p)
    edge_tok = edge_id_in @ params["w_id"] + params["b_id"] + params["type_emb"][1]

    nodes_per_graph = ptr[1:] - ptr[:-1]                                      # (B,)
    node_graph = batch
    node_local = jnp.arange(N, dtype=jnp.int32) - ptr[batch]
    edge_graph = batch[src]                                                   # edges grouped by graph
    edge_counts = jax.ops.segment_sum(jnp.ones((E,), jnp.int32), edge_graph,
                                      num_segments=num_graphs)
    edge_ptr = jnp.concatenate([jnp.zeros((1,), jnp.int32), jnp.cumsum(edge_counts)])
    edge_local = jnp.arange(E, dtype=jnp.int32) - edge_ptr[edge_graph]

    tokens = jnp.zeros((num_graphs, SEQ_LEN, D_MODEL), jnp.float32)
    tokens = tokens.at[:, 0, :].set(params["graph_tok"])                      # [graph] token
    tokens = tokens.at[node_graph, 1 + node_local, :].set(node_tok)
    edge_pos = 1 + nodes_per_graph[edge_graph] + edge_local
    tokens = tokens.at[edge_graph, edge_pos, :].set(edge_tok)

    valid = jnp.zeros((num_graphs, SEQ_LEN), jnp.float32)
    valid = valid.at[:, 0].set(1.0)
    valid = valid.at[node_graph, 1 + node_local].set(1.0)
    valid = valid.at[edge_graph, edge_pos].set(1.0)

    # --- flatten batch onto the sublane axis + block-diagonal key mask ---
    T = num_graphs * SEQ_LEN
    tokens_flat = tokens.reshape(T, D_MODEL)
    valid_flat = valid.reshape(T)
    graph_of = jnp.repeat(jnp.arange(num_graphs, dtype=jnp.int32), SEQ_LEN)   # (T,)
    key_ok = (graph_of[:, None] == graph_of[None, :]) & (valid_flat[None, :] > 0.5)
    mask = jnp.where(key_ok, 0.0, -1e9).astype(jnp.float32)                   # (T, T)

    # one-hot selector for each graph's [graph] token row
    sel = jnp.zeros((num_graphs, T), jnp.float32)
    sel = sel.at[jnp.arange(num_graphs), jnp.arange(num_graphs) * SEQ_LEN].set(1.0)

    # --- fused encoder + classifier (single Pallas call) ---
    return tokengt_fused_forward(params, tokens_flat, mask, sel, num_graphs)  # (B, C)


# -----------------------------------------------------------------------------
if __name__ == "__main__":
    key = jax.random.PRNGKey(0)
    k_param, k_x, k_id = jax.random.split(key, 3)
    params = init_params(k_param)

    # two small graphs: graph 0 has 5 nodes / 8 edges, graph 1 has 4 nodes / 6 edges
    num_graphs = 2
    num_nodes = 9
    x = jax.random.normal(k_x, (num_nodes, DIM_NODE), dtype=jnp.float32)
    node_ids = jax.random.normal(k_id, (num_nodes, D_P), dtype=jnp.float32)

    edge_index = jnp.array(
        [[0, 1, 2, 3, 4, 0, 1, 2,   5, 6, 7, 8, 5, 6],
         [1, 2, 3, 4, 0, 2, 3, 4,   6, 7, 8, 5, 7, 8]], dtype=jnp.int32)
    ptr = jnp.array([0, 5, 9], dtype=jnp.int32)
    batch = jnp.array([0, 0, 0, 0, 0, 1, 1, 1, 1], dtype=jnp.int32)

    # sanity: padded sequence length is large enough (silent scatter-drop otherwise)
    nodes_pg = [5, 4]
    edges_pg = [8, 6]
    assert max(1 + n + e for n, e in zip(nodes_pg, edges_pg)) <= SEQ_LEN

    logits = tokengt_graph_classification(params, x, edge_index, ptr, batch,
                                          node_ids, num_graphs)
    logits = jax.block_until_ready(logits)
    assert logits.shape == (num_graphs, N_CLASSES)
    assert bool(jnp.all(jnp.isfinite(logits)))
    print("KERNEL_OK")
</pallas_src>

<mosaic_0001>
module attributes {stable_mosaic.version = 11 : i64} {
  func.func @fused_tokengt_kernel(%arg0: memref<32x32xf32, #tpu.memory_space<vmem>>, %arg1: memref<32x32xf32, #tpu.memory_space<vmem>>, %arg2: memref<2x32xf32, #tpu.memory_space<vmem>>, %arg3: memref<2x32x96xf32, #tpu.memory_space<vmem>>, %arg4: memref<2x1x96xf32, #tpu.memory_space<vmem>>, %arg5: memref<2x32x32xf32, #tpu.memory_space<vmem>>, %arg6: memref<2x1x32xf32, #tpu.memory_space<vmem>>, %arg7: memref<2x1x32xf32, #tpu.memory_space<vmem>>, %arg8: memref<2x1x32xf32, #tpu.memory_space<vmem>>, %arg9: memref<2x32x64xf32, #tpu.memory_space<vmem>>, %arg10: memref<2x1x64xf32, #tpu.memory_space<vmem>>, %arg11: memref<2x64x32xf32, #tpu.memory_space<vmem>>, %arg12: memref<2x1x32xf32, #tpu.memory_space<vmem>>, %arg13: memref<2x1x32xf32, #tpu.memory_space<vmem>>, %arg14: memref<2x1x32xf32, #tpu.memory_space<vmem>>, %arg15: memref<32x2xf32, #tpu.memory_space<vmem>>, %arg16: memref<1x2xf32, #tpu.memory_space<vmem>>, %arg17: memref<2x2xf32, #tpu.memory_space<vmem>>) attributes {dimension_semantics = [], scalar_prefetch = 0 : i64, scratch_operands = 0 : i64, tpu.core_type = #tpu.core_type<tc>} {
    %c0 = arith.constant 0 : index
    %c0_0 = arith.constant 0 : index
    %0 = vector.load %arg0[%c0, %c0_0] : memref<32x32xf32, #tpu.memory_space<vmem>>, vector<32x32xf32>
    %c0_1 = arith.constant 0 : index
    %c0_2 = arith.constant 0 : index
    %1 = vector.load %arg1[%c0_1, %c0_2] : memref<32x32xf32, #tpu.memory_space<vmem>>, vector<32x32xf32>
    %c0_3 = arith.constant 0 : index
    %c0_4 = arith.constant 0 : index
    %c0_5 = arith.constant 0 : index
    %2 = vector.load %arg3[%c0_3, %c0_4, %c0_5] : memref<2x32x96xf32, #tpu.memory_space<vmem>>, vector<1x32x96xf32>
    %3 = vector.shape_cast %2 : vector<1x32x96xf32> to vector<32x96xf32>
    %cst = arith.constant dense<0.000000e+00> : vector<32x96xf32>
    %4 = tpu.matmul %0, %3, %cst {dimension_numbers = #tpu.dot_dimension_numbers<[1], [0], [0], [1], [0, 0, 1, 1], [], []>} : vector<32x32xf32>, vector<32x96xf32>, vector<32x96xf32> -> vector<32x96xf32>
    %c0_6 = arith.constant 0 : index
    %c0_7 = arith.constant 0 : index
    %c0_8 = arith.constant 0 : index
    %5 = vector.load %arg4[%c0_6, %c0_7, %c0_8] : memref<2x1x96xf32, #tpu.memory_space<vmem>>, vector<1x1x96xf32>
    %6 = vector.shape_cast %5 : vector<1x1x96xf32> to vector<1x96xf32>
    %7 = vector.broadcast %6 : vector<1x96xf32> to vector<32x96xf32>
    %8 = arith.addf %4, %7 : vector<32x96xf32>
    %c0_9 = arith.constant 0 : index
    %c0_10 = arith.constant 0 : index
    %c0_11 = arith.constant 0 : index
    %9 = vector.load %arg5[%c0_9, %c0_10, %c0_11] : memref<2x32x32xf32, #tpu.memory_space<vmem>>, vector<1x32x32xf32>
    %10 = vector.shape_cast %9 : vector<1x32x32xf32> to vector<32x32xf32>
    %cst_12 = arith.constant 0.000000e+00 : f32
    %11 = vector.broadcast %cst_12 : f32 to vector<32x32xf32>
    %12 = vector.extract_strided_slice %8 {offsets = [0, 0], sizes = [32, 8], strides = [1, 1]} : vector<32x96xf32> to vector<32x8xf32>
    %13 = vector.extract_strided_slice %8 {offsets = [0, 32], sizes = [32, 8], strides = [1, 1]} : vector<32x96xf32> to vector<32x8xf32>
    %14 = vector.extract_strided_slice %8 {offsets = [0, 64], sizes = [32, 8], strides = [1, 1]} : vector<32x96xf32> to vector<32x8xf32>
    %cst_13 = arith.constant dense<0.000000e+00> : vector<32x32xf32>
    %15 = tpu.matmul %12, %13, %cst_13 {dimension_numbers = #tpu.dot_dimension_numbers<[1], [1], [0], [0], [0, 0, 1, 0], [], []>} : vector<32x8xf32>, vector<32x8xf32>, vector<32x32xf32> -> vector<32x32xf32>
    %cst_14 = arith.constant 0.353553385 : f32
    %16 = vector.broadcast %cst_14 : f32 to vector<32x32xf32>
    %17 = arith.mulf %15, %16 : vector<32x32xf32>
    %18 = arith.addf %17, %1 : vector<32x32xf32>
    %cst_15 = arith.constant dense<0xFF800000> : vector<32xf32>
    %19 = vector.multi_reduction <maximumf>, %18, %cst_15 [1] : vector<32x32xf32> to vector<32xf32>
    %20 = vector.shape_cast %19 : vector<32xf32> to vector<32x1xf32>
    %21 = vector.broadcast %20 : vector<32x1xf32> to vector<32x32xf32>
    %22 = arith.subf %18, %21 : vector<32x32xf32>
    %23 = math.exp %22 : vector<32x32xf32>
    %cst_16 = arith.constant dense<0.000000e+00> : vector<32xf32>
    %24 = vector.multi_reduction <add>, %23, %cst_16 [1] : vector<32x32xf32> to vector<32xf32>
    %25 = vector.shape_cast %24 : vector<32xf32> to vector<32x1xf32>
    %26 = tpu.reciprocal %25 {approx = true} : vector<32x1xf32> -> vector<32x1xf32>
    %27 = vector.broadcast %26 : vector<32x1xf32> to vector<32x32xf32>
    %28 = arith.mulf %23, %27 : vector<32x32xf32>
    %cst_17 = arith.constant dense<0.000000e+00> : vector<32x8xf32>
    %29 = tpu.matmul %28, %14, %cst_17 {dimension_numbers = #tpu.dot_dimension_numbers<[1], [0], [0], [1], [0, 0, 1, 1], [], []>} : vector<32x32xf32>, vector<32x8xf32>, vector<32x8xf32> -> vector<32x8xf32>
    %30 = vector.extract_strided_slice %10 {offsets = [0, 0], sizes = [8, 32], strides = [1, 1]} : vector<32x32xf32> to vector<8x32xf32>
    %cst_18 = arith.constant dense<0.000000e+00> : vector<32x32xf32>
    %31 = tpu.matmul %29, %30, %cst_18 {dimension_numbers = #tpu.dot_dimension_numbers<[1], [0], [0], [1], [0, 0, 1, 1], [], []>} : vector<32x8xf32>, vector<8x32xf32>, vector<32x32xf32> -> vector<32x32xf32>
    %32 = arith.addf %11, %31 : vector<32x32xf32>
    %33 = vector.extract_strided_slice %8 {offsets = [0, 8], sizes = [32, 8], strides = [1, 1]} : vector<32x96xf32> to vector<32x8xf32>
    %34 = vector.extract_strided_slice %8 {offsets = [0, 40], sizes = [32, 8], strides = [1, 1]} : vector<32x96xf32> to vector<32x8xf32>
    %35 = vector.extract_strided_slice %8 {offsets = [0, 72], sizes = [32, 8], strides = [1, 1]} : vector<32x96xf32> to vector<32x8xf32>
    %cst_19 = arith.constant dense<0.000000e+00> : vector<32x32xf32>
    %36 = tpu.matmul %33, %34, %cst_19 {dimension_numbers = #tpu.dot_dimension_numbers<[1], [1], [0], [0], [0, 0, 1, 0], [], []>} : vector<32x8xf32>, vector<32x8xf32>, vector<32x32xf32> -> vector<32x32xf32>
    %cst_20 = arith.constant 0.353553385 : f32
    %37 = vector.broadcast %cst_20 : f32 to vector<32x32xf32>
    %38 = arith.mulf %36, %37 : vector<32x32xf32>
    %39 = arith.addf %38, %1 : vector<32x32xf32>
    %cst_21 = arith.constant dense<0xFF800000> : vector<32xf32>
    %40 = vector.multi_reduction <maximumf>, %39, %cst_21 [1] : vector<32x32xf32> to vector<32xf32>
    %41 = vector.shape_cast %40 : vector<32xf32> to vector<32x1xf32>
    %42 = vector.broadcast %41 : vector<32x1xf32> to vector<32x32xf32>
    %43 = arith.subf %39, %42 : vector<32x32xf32>
    %44 = math.exp %43 : vector<32x32xf32>
    %cst_22 = arith.constant dense<0.000000e+00> : vector<32xf32>
    %45 = vector.multi_reduction <add>, %44, %cst_22 [1] : vector<32x32xf32> to vector<32xf32>
    %46 = vector.shape_cast %45 : vector<32xf32> to vector<32x1xf32>
    %47 = tpu.reciprocal %46 {approx = true} : vector<32x1xf32> -> vector<32x1xf32>
    %48 = vector.broadcast %47 : vector<32x1xf32> to vector<32x32xf32>
    %49 = arith.mulf %44, %48 : vector<32x32xf32>
    %cst_23 = arith.constant dense<0.000000e+00> : vector<32x8xf32>
    %50 = tpu.matmul %49, %35, %cst_23 {dimension_numbers = #tpu.dot_dimension_numbers<[1], [0], [0], [1], [0, 0, 1, 1], [], []>} : vector<32x32xf32>, vector<32x8xf32>, vector<32x8xf32> -> vector<32x8xf32>
    %51 = vector.extract_strided_slice %10 {offsets = [8, 0], sizes = [8, 32], strides = [1, 1]} : vector<32x32xf32> to vector<8x32xf32>
    %cst_24 = arith.constant dense<0.000000e+00> : vector<32x32xf32>
    %52 = tpu.matmul %50, %51, %cst_24 {dimension_numbers = #tpu.dot_dimension_numbers<[1], [0], [0], [1], [0, 0, 1, 1], [], []>} : vector<32x8xf32>, vector<8x32xf32>, vector<32x32xf32> -> vector<32x32xf32>
    %53 = arith.addf %32, %52 : vector<32x32xf32>
    %54 = vector.extract_strided_slice %8 {offsets = [0, 16], sizes = [32, 8], strides = [1, 1]} : vector<32x96xf32> to vector<32x8xf32>
    %55 = vector.extract_strided_slice %8 {offsets = [0, 48], sizes = [32, 8], strides = [1, 1]} : vector<32x96xf32> to vector<32x8xf32>
    %56 = vector.extract_strided_slice %8 {offsets = [0, 80], sizes = [32, 8], strides = [1, 1]} : vector<32x96xf32> to vector<32x8xf32>
    %cst_25 = arith.constant dense<0.000000e+00> : vector<32x32xf32>
    %57 = tpu.matmul %54, %55, %cst_25 {dimension_numbers = #tpu.dot_dimension_numbers<[1], [1], [0], [0], [0, 0, 1, 0], [], []>} : vector<32x8xf32>, vector<32x8xf32>, vector<32x32xf32> -> vector<32x32xf32>
    %cst_26 = arith.constant 0.353553385 : f32
    %58 = vector.broadcast %cst_26 : f32 to vector<32x32xf32>
    %59 = arith.mulf %57, %58 : vector<32x32xf32>
    %60 = arith.addf %59, %1 : vector<32x32xf32>
    %cst_27 = arith.constant dense<0xFF800000> : vector<32xf32>
    %61 = vector.multi_reduction <maximumf>, %60, %cst_27 [1] : vector<32x32xf32> to vector<32xf32>
    %62 = vector.shape_cast %61 : vector<32xf32> to vector<32x1xf32>
    %63 = vector.broadcast %62 : vector<32x1xf32> to vector<32x32xf32>
    %64 = arith.subf %60, %63 : vector<32x32xf32>
    %65 = math.exp %64 : vector<32x32xf32>
    %cst_28 = arith.constant dense<0.000000e+00> : vector<32xf32>
    %66 = vector.multi_reduction <add>, %65, %cst_28 [1] : vector<32x32xf32> to vector<32xf32>
    %67 = vector.shape_cast %66 : vector<32xf32> to vector<32x1xf32>
    %68 = tpu.reciprocal %67 {approx = true} : vector<32x1xf32> -> vector<32x1xf32>
    %69 = vector.broadcast %68 : vector<32x1xf32> to vector<32x32xf32>
    %70 = arith.mulf %65, %69 : vector<32x32xf32>
    %cst_29 = arith.constant dense<0.000000e+00> : vector<32x8xf32>
    %71 = tpu.matmul %70, %56, %cst_29 {dimension_numbers = #tpu.dot_dimension_numbers<[1], [0], [0], [1], [0, 0, 1, 1], [], []>} : vector<32x32xf32>, vector<32x8xf32>, vector<32x8xf32> -> vector<32x8xf32>
    %72 = vector.extract_strided_slice %10 {offsets = [16, 0], sizes = [8, 32], strides = [1, 1]} : vector<32x32xf32> to vector<8x32xf32>
    %cst_30 = arith.constant dense<0.000000e+00> : vector<32x32xf32>
    %73 = tpu.matmul %71, %72, %cst_30 {dimension_numbers = #tpu.dot_dimension_numbers<[1], [0], [0], [1], [0, 0, 1, 1], [], []>} : vector<32x8xf32>, vector<8x32xf32>, vector<32x32xf32> -> vector<32x32xf32>
    %74 = arith.addf %53, %73 : vector<32x32xf32>
    %75 = vector.extract_strided_slice %8 {offsets = [0, 24], sizes = [32, 8], strides = [1, 1]} : vector<32x96xf32> to vector<32x8xf32>
    %76 = vector.extract_strided_slice %8 {offsets = [0, 56], sizes = [32, 8], strides = [1, 1]} : vector<32x96xf32> to vector<32x8xf32>
    %77 = vector.extract_strided_slice %8 {offsets = [0, 88], sizes = [32, 8], strides = [1, 1]} : vector<32x96xf32> to vector<32x8xf32>
    %cst_31 = arith.constant dense<0.000000e+00> : vector<32x32xf32>
    %78 = tpu.matmul %75, %76, %cst_31 {dimension_numbers = #tpu.dot_dimension_numbers<[1], [1], [0], [0], [0, 0, 1, 0], [], []>} : vector<32x8xf32>, vector<32x8xf32>, vector<32x32xf32> -> vector<32x32xf32>
    %cst_32 = arith.constant 0.353553385 : f32
    %79 = vector.broadcast %cst_32 : f32 to vector<32x32xf32>
    %80 = arith.mulf %78, %79 : vector<32x32xf32>
    %81 = arith.addf %80, %1 : vector<32x32xf32>
    %cst_33 = arith.constant dense<0xFF800000> : vector<32xf32>
    %82 = vector.multi_reduction <maximumf>, %81, %cst_33 [1] : vector<32x32xf32> to vector<32xf32>
    %83 = vector.shape_cast %82 : vector<32xf32> to vector<32x1xf32>
    %84 = vector.broadcast %83 : vector<32x1xf32> to vector<32x32xf32>
    %85 = arith.subf %81, %84 : vector<32x32xf32>
    %86 = math.exp %85 : vector<32x32xf32>
    %cst_34 = arith.constant dense<0.000000e+00> : vector<32xf32>
    %87 = vector.multi_reduction <add>, %86, %cst_34 [1] : vector<32x32xf32> to vector<32xf32>
    %88 = vector.shape_cast %87 : vector<32xf32> to vector<32x1xf32>
    %89 = tpu.reciprocal %88 {approx = true} : vector<32x1xf32> -> vector<32x1xf32>
    %90 = vector.broadcast %89 : vector<32x1xf32> to vector<32x32xf32>
    %91 = arith.mulf %86, %90 : vector<32x32xf32>
    %cst_35 = arith.constant dense<0.000000e+00> : vector<32x8xf32>
    %92 = tpu.matmul %91, %77, %cst_35 {dimension_numbers = #tpu.dot_dimension_numbers<[1], [0], [0], [1], [0, 0, 1, 1], [], []>} : vector<32x32xf32>, vector<32x8xf32>, vector<32x8xf32> -> vector<32x8xf32>
    %93 = vector.extract_strided_slice %10 {offsets = [24, 0], sizes = [8, 32], strides = [1, 1]} : vector<32x32xf32> to vector<8x32xf32>
    %cst_36 = arith.constant dense<0.000000e+00> : vector<32x32xf32>
    %94 = tpu.matmul %92, %93, %cst_36 {dimension_numbers = #tpu.dot_dimension_numbers<[1], [0], [0], [1], [0, 0, 1, 1], [], []>} : vector<32x8xf32>, vector<8x32xf32>, vector<32x32xf32> -> vector<32x32xf32>
    %95 = arith.addf %74, %94 : vector<32x32xf32>
    %c0_37 = arith.constant 0 : index
    %c0_38 = arith.constant 0 : index
    %c0_39 = arith.constant 0 : index
    %96 = vector.load %arg6[%c0_37, %c0_38, %c0_39] : memref<2x1x32xf32, #tpu.memory_space<vmem>>, vector<1x1x32xf32>
    %97 = vector.shape_cast %96 : vector<1x1x32xf32> to vector<1x32xf32>
    %98 = vector.broadcast %97 : vector<1x32xf32> to vector<32x32xf32>
    %99 = arith.addf %95, %98 : vector<32x32xf32>
    %100 = arith.addf %0, %99 : vector<32x32xf32>
    %c0_40 = arith.constant 0 : index
    %c0_41 = arith.constant 0 : index
    %c0_42 = arith.constant 0 : index
    %101 = vector.load %arg7[%c0_40, %c0_41, %c0_42] : memref<2x1x32xf32, #tpu.memory_space<vmem>>, vector<1x1x32xf32>
    %102 = vector.shape_cast %101 : vector<1x1x32xf32> to vector<1x32xf32>
    %c0_43 = arith.constant 0 : index
    %c0_44 = arith.constant 0 : index
    %c0_45 = arith.constant 0 : index
    %103 = vector.load %arg8[%c0_43, %c0_44, %c0_45] : memref<2x1x32xf32, #tpu.memory_space<vmem>>, vector<1x1x32xf32>
    %104 = vector.shape_cast %103 : vector<1x1x32xf32> to vector<1x32xf32>
    %cst_46 = arith.constant dense<0.000000e+00> : vector<32xf32>
    %105 = vector.multi_reduction <add>, %100, %cst_46 [1] : vector<32x32xf32> to vector<32xf32>
    %106 = vector.shape_cast %105 : vector<32xf32> to vector<32x1xf32>
    %cst_47 = arith.constant 3.200000e+01 : f32
    %107 = vector.broadcast %cst_47 : f32 to vector<32x1xf32>
    %108 = arith.divf %106, %107 : vector<32x1xf32>
    %109 = vector.broadcast %108 : vector<32x1xf32> to vector<32x32xf32>
    %110 = arith.subf %100, %109 : vector<32x32xf32>
    %111 = arith.mulf %110, %110 : vector<32x32xf32>
    %cst_48 = arith.constant dense<0.000000e+00> : vector<32xf32>
    %112 = vector.multi_reduction <add>, %111, %cst_48 [1] : vector<32x32xf32> to vector<32xf32>
    %113 = vector.shape_cast %112 : vector<32xf32> to vector<32x1xf32>
    %cst_49 = arith.constant 3.200000e+01 : f32
    %114 = vector.broadcast %cst_49 : f32 to vector<32x1xf32>
    %115 = arith.divf %113, %114 : vector<32x1xf32>
    %116 = vector.broadcast %108 : vector<32x1xf32> to vector<32x32xf32>
    %117 = arith.subf %100, %116 : vector<32x32xf32>
    %cst_50 = arith.constant 9.99999974E-6 : f32
    %118 = vector.broadcast %cst_50 : f32 to vector<32x1xf32>
    %119 = arith.addf %115, %118 : vector<32x1xf32>
    %120 = math.rsqrt %119 : vector<32x1xf32>
    %121 = vector.broadcast %120 : vector<32x1xf32> to vector<32x32xf32>
    %122 = arith.mulf %117, %121 : vector<32x32xf32>
    %123 = vector.broadcast %102 : vector<1x32xf32> to vector<32x32xf32>
    %124 = arith.mulf %122, %123 : vector<32x32xf32>
    %125 = vector.broadcast %104 : vector<1x32xf32> to vector<32x32xf32>
    %126 = arith.addf %124, %125 : vector<32x32xf32>
    %c0_51 = arith.constant 0 : index
    %c0_52 = arith.constant 0 : index
    %c0_53 = arith.constant 0 : index
    %127 = vector.load %arg9[%c0_51, %c0_52, %c0_53] : memref<2x32x64xf32, #tpu.memory_space<vmem>>, vector<1x32x64xf32>
    %128 = vector.shape_cast %127 : vector<1x32x64xf32> to vector<32x64xf32>
    %cst_54 = arith.constant dense<0.000000e+00> : vector<32x64xf32>
    %129 = tpu.matmul %126, %128, %cst_54 {dimension_numbers = #tpu.dot_dimension_numbers<[1], [0], [0], [1], [0, 0, 1, 1], [], []>} : vector<32x32xf32>, vector<32x64xf32>, vector<32x64xf32> -> vector<32x64xf32>
    %c0_55 = arith.constant 0 : index
    %c0_56 = arith.constant 0 : index
    %c0_57 = arith.constant 0 : index
    %130 = vector.load %arg10[%c0_55, %c0_56, %c0_57] : memref<2x1x64xf32, #tpu.memory_space<vmem>>, vector<1x1x64xf32>
    %131 = vector.shape_cast %130 : vector<1x1x64xf32> to vector<1x64xf32>
    %132 = vector.broadcast %131 : vector<1x64xf32> to vector<32x64xf32>
    %133 = arith.addf %129, %132 : vector<32x64xf32>
    %cst_58 = arith.constant 0.000000e+00 : f32
    %134 = vector.broadcast %cst_58 : f32 to vector<32x64xf32>
    %135 = arith.maximumf %133, %134 : vector<32x64xf32>
    %c0_59 = arith.constant 0 : index
    %c0_60 = arith.constant 0 : index
    %c0_61 = arith.constant 0 : index
    %136 = vector.load %arg11[%c0_59, %c0_60, %c0_61] : memref<2x64x32xf32, #tpu.memory_space<vmem>>, vector<1x64x32xf32>
    %137 = vector.shape_cast %136 : vector<1x64x32xf32> to vector<64x32xf32>
    %cst_62 = arith.constant dense<0.000000e+00> : vector<32x32xf32>
    %138 = tpu.matmul %135, %137, %cst_62 {dimension_numbers = #tpu.dot_dimension_numbers<[1], [0], [0], [1], [0, 0, 1, 1], [], []>} : vector<32x64xf32>, vector<64x32xf32>, vector<32x32xf32> -> vector<32x32xf32>
    %c0_63 = arith.constant 0 : index
    %c0_64 = arith.constant 0 : index
    %c0_65 = arith.constant 0 : index
    %139 = vector.load %arg12[%c0_63, %c0_64, %c0_65] : memref<2x1x32xf32, #tpu.memory_space<vmem>>, vector<1x1x32xf32>
    %140 = vector.shape_cast %139 : vector<1x1x32xf32> to vector<1x32xf32>
    %141 = vector.broadcast %140 : vector<1x32xf32> to vector<32x32xf32>
    %142 = arith.addf %138, %141 : vector<32x32xf32>
    %143 = arith.addf %126, %142 : vector<32x32xf32>
    %c0_66 = arith.constant 0 : index
    %c0_67 = arith.constant 0 : index
    %c0_68 = arith.constant 0 : index
    %144 = vector.load %arg13[%c0_66, %c0_67, %c0_68] : memref<2x1x32xf32, #tpu.memory_space<vmem>>, vector<1x1x32xf32>
    %145 = vector.shape_cast %144 : vector<1x1x32xf32> to vector<1x32xf32>
    %c0_69 = arith.constant 0 : index
    %c0_70 = arith.constant 0 : index
    %c0_71 = arith.constant 0 : index
    %146 = vector.load %arg14[%c0_69, %c0_70, %c0_71] : memref<2x1x32xf32, #tpu.memory_space<vmem>>, vector<1x1x32xf32>
    %147 = vector.shape_cast %146 : vector<1x1x32xf32> to vector<1x32xf32>
    %cst_72 = arith.constant dense<0.000000e+00> : vector<32xf32>
    %148 = vector.multi_reduction <add>, %143, %cst_72 [1] : vector<32x32xf32> to vector<32xf32>
    %149 = vector.shape_cast %148 : vector<32xf32> to vector<32x1xf32>
    %cst_73 = arith.constant 3.200000e+01 : f32
    %150 = vector.broadcast %cst_73 : f32 to vector<32x1xf32>
    %151 = arith.divf %149, %150 : vector<32x1xf32>
    %152 = vector.broadcast %151 : vector<32x1xf32> to vector<32x32xf32>
    %153 = arith.subf %143, %152 : vector<32x32xf32>
    %154 = arith.mulf %153, %153 : vector<32x32xf32>
    %cst_74 = arith.constant dense<0.000000e+00> : vector<32xf32>
    %155 = vector.multi_reduction <add>, %154, %cst_74 [1] : vector<32x32xf32> to vector<32xf32>
    %156 = vector.shape_cast %155 : vector<32xf32> to vector<32x1xf32>
    %cst_75 = arith.constant 3.200000e+01 : f32
    %157 = vector.broadcast %cst_75 : f32 to vector<32x1xf32>
    %158 = arith.divf %156, %157 : vector<32x1xf32>
    %159 = vector.broadcast %151 : vector<32x1xf32> to vector<32x32xf32>
    %160 = arith.subf %143, %159 : vector<32x32xf32>
    %cst_76 = arith.constant 9.99999974E-6 : f32
    %161 = vector.broadcast %cst_76 : f32 to vector<32x1xf32>
    %162 = arith.addf %158, %161 : vector<32x1xf32>
    %163 = math.rsqrt %162 : vector<32x1xf32>
    %164 = vector.broadcast %163 : vector<32x1xf32> to vector<32x32xf32>
    %165 = arith.mulf %160, %164 : vector<32x32xf32>
    %166 = vector.broadcast %145 : vector<1x32xf32> to vector<32x32xf32>
    %167 = arith.mulf %165, %166 : vector<32x32xf32>
    %168 = vector.broadcast %147 : vector<1x32xf32> to vector<32x32xf32>
    %169 = arith.addf %167, %168 : vector<32x32xf32>
    %c1 = arith.constant 1 : index
    %c0_77 = arith.constant 0 : index
    %c0_78 = arith.constant 0 : index
    %170 = vector.load %arg3[%c1, %c0_77, %c0_78] : memref<2x32x96xf32, #tpu.memory_space<vmem>>, vector<1x32x96xf32>
    %171 = vector.shape_cast %170 : vector<1x32x96xf32> to vector<32x96xf32>
    %cst_79 = arith.constant dense<0.000000e+00> : vector<32x96xf32>
    %172 = tpu.matmul %169, %171, %cst_79 {dimension_numbers = #tpu.dot_dimension_numbers<[1], [0], [0], [1], [0, 0, 1, 1], [], []>} : vector<32x32xf32>, vector<32x96xf32>, vector<32x96xf32> -> vector<32x96xf32>
    %c1_80 = arith.constant 1 : index
    %c0_81 = arith.constant 0 : index
    %c0_82 = arith.constant 0 : index
    %173 = vector.load %arg4[%c1_80, %c0_81, %c0_82] : memref<2x1x96xf32, #tpu.memory_space<vmem>>, vector<1x1x96xf32>
    %174 = vector.shape_cast %173 : vector<1x1x96xf32> to vector<1x96xf32>
    %175 = vector.broadcast %174 : vector<1x96xf32> to vector<32x96xf32>
    %176 = arith.addf %172, %175 : vector<32x96xf32>
    %c1_83 = arith.constant 1 : index
    %c0_84 = arith.constant 0 : index
    %c0_85 = arith.constant 0 : index
    %177 = vector.load %arg5[%c1_83, %c0_84, %c0_85] : memref<2x32x32xf32, #tpu.memory_space<vmem>>, vector<1x32x32xf32>
    %178 = vector.shape_cast %177 : vector<1x32x32xf32> to vector<32x32xf32>
    %cst_86 = arith.constant 0.000000e+00 : f32
    %179 = vector.broadcast %cst_86 : f32 to vector<32x32xf32>
    %180 = vector.extract_strided_slice %176 {offsets = [0, 0], sizes = [32, 8], strides = [1, 1]} : vector<32x96xf32> to vector<32x8xf32>
    %181 = vector.extract_strided_slice %176 {offsets = [0, 32], sizes = [32, 8], strides = [1, 1]} : vector<32x96xf32> to vector<32x8xf32>
    %182 = vector.extract_strided_slice %176 {offsets = [0, 64], sizes = [32, 8], strides = [1, 1]} : vector<32x96xf32> to vector<32x8xf32>
    %cst_87 = arith.constant dense<0.000000e+00> : vector<32x32xf32>
    %183 = tpu.matmul %180, %181, %cst_87 {dimension_numbers = #tpu.dot_dimension_numbers<[1], [1], [0], [0], [0, 0, 1, 0], [], []>} : vector<32x8xf32>, vector<32x8xf32>, vector<32x32xf32> -> vector<32x32xf32>
    %cst_88 = arith.constant 0.353553385 : f32
    %184 = vector.broadcast %cst_88 : f32 to vector<32x32xf32>
    %185 = arith.mulf %183, %184 : vector<32x32xf32>
    %186 = arith.addf %185, %1 : vector<32x32xf32>
    %cst_89 = arith.constant dense<0xFF800000> : vector<32xf32>
    %187 = vector.multi_reduction <maximumf>, %186, %cst_89 [1] : vector<32x32xf32> to vector<32xf32>
    %188 = vector.shape_cast %187 : vector<32xf32> to vector<32x1xf32>
    %189 = vector.broadcast %188 : vector<32x1xf32> to vector<32x32xf32>
    %190 = arith.subf %186, %189 : vector<32x32xf32>
    %191 = math.exp %190 : vector<32x32xf32>
    %cst_90 = arith.constant dense<0.000000e+00> : vector<32xf32>
    %192 = vector.multi_reduction <add>, %191, %cst_90 [1] : vector<32x32xf32> to vector<32xf32>
    %193 = vector.shape_cast %192 : vector<32xf32> to vector<32x1xf32>
    %194 = tpu.reciprocal %193 {approx = true} : vector<32x1xf32> -> vector<32x1xf32>
    %195 = vector.broadcast %194 : vector<32x1xf32> to vector<32x32xf32>
    %196 = arith.mulf %191, %195 : vector<32x32xf32>
    %cst_91 = arith.constant dense<0.000000e+00> : vector<32x8xf32>
    %197 = tpu.matmul %196, %182, %cst_91 {dimension_numbers = #tpu.dot_dimension_numbers<[1], [0], [0], [1], [0, 0, 1, 1], [], []>} : vector<32x32xf32>, vector<32x8xf32>, vector<32x8xf32> -> vector<32x8xf32>
    %198 = vector.extract_strided_slice %178 {offsets = [0, 0], sizes = [8, 32], strides = [1, 1]} : vector<32x32xf32> to vector<8x32xf32>
    %cst_92 = arith.constant dense<0.000000e+00> : vector<32x32xf32>
    %199 = tpu.matmul %197, %198, %cst_92 {dimension_numbers = #tpu.dot_dimension_numbers<[1], [0], [0], [1], [0, 0, 1, 1], [], []>} : vector<32x8xf32>, vector<8x32xf32>, vector<32x32xf32> -> vector<32x32xf32>
    %200 = arith.addf %179, %199 : vector<32x32xf32>
    %201 = vector.extract_strided_slice %176 {offsets = [0, 8], sizes = [32, 8], strides = [1, 1]} : vector<32x96xf32> to vector<32x8xf32>
    %202 = vector.extract_strided_slice %176 {offsets = [0, 40], sizes = [32, 8], strides = [1, 1]} : vector<32x96xf32> to vector<32x8xf32>
    %203 = vector.extract_strided_slice %176 {offsets = [0, 72], sizes = [32, 8], strides = [1, 1]} : vector<32x96xf32> to vector<32x8xf32>
    %cst_93 = arith.constant dense<0.000000e+00> : vector<32x32xf32>
    %204 = tpu.matmul %201, %202, %cst_93 {dimension_numbers = #tpu.dot_dimension_numbers<[1], [1], [0], [0], [0, 0, 1, 0], [], []>} : vector<32x8xf32>, vector<32x8xf32>, vector<32x32xf32> -> vector<32x32xf32>
    %cst_94 = arith.constant 0.353553385 : f32
    %205 = vector.broadcast %cst_94 : f32 to vector<32x32xf32>
    %206 = arith.mulf %204, %205 : vector<32x32xf32>
    %207 = arith.addf %206, %1 : vector<32x32xf32>
    %cst_95 = arith.constant dense<0xFF800000> : vector<32xf32>
    %208 = vector.multi_reduction <maximumf>, %207, %cst_95 [1] : vector<32x32xf32> to vector<32xf32>
    %209 = vector.shape_cast %208 : vector<32xf32> to vector<32x1xf32>
    %210 = vector.broadcast %209 : vector<32x1xf32> to vector<32x32xf32>
    %211 = arith.subf %207, %210 : vector<32x32xf32>
    %212 = math.exp %211 : vector<32x32xf32>
    %cst_96 = arith.constant dense<0.000000e+00> : vector<32xf32>
    %213 = vector.multi_reduction <add>, %212, %cst_96 [1] : vector<32x32xf32> to vector<32xf32>
    %214 = vector.shape_cast %213 : vector<32xf32> to vector<32x1xf32>
    %215 = tpu.reciprocal %214 {approx = true} : vector<32x1xf32> -> vector<32x1xf32>
    %216 = vector.broadcast %215 : vector<32x1xf32> to vector<32x32xf32>
    %217 = arith.mulf %212, %216 : vector<32x32xf32>
    %cst_97 = arith.constant dense<0.000000e+00> : vector<32x8xf32>
    %218 = tpu.matmul %217, %203, %cst_97 {dimension_numbers = #tpu.dot_dimension_numbers<[1], [0], [0], [1], [0, 0, 1, 1], [], []>} : vector<32x32xf32>, vector<32x8xf32>, vector<32x8xf32> -> vector<32x8xf32>
    %219 = vector.extract_strided_slice %178 {offsets = [8, 0], sizes = [8, 32], strides = [1, 1]} : vector<32x32xf32> to vector<8x32xf32>
    %cst_98 = arith.constant dense<0.000000e+00> : vector<32x32xf32>
    %220 = tpu.matmul %218, %219, %cst_98 {dimension_numbers = #tpu.dot_dimension_numbers<[1], [0], [0], [1], [0, 0, 1, 1], [], []>} : vector<32x8xf32>, vector<8x32xf32>, vector<32x32xf32> -> vector<32x32xf32>
    %221 = arith.addf %200, %220 : vector<32x32xf32>
    %222 = vector.extract_strided_slice %176 {offsets = [0, 16], sizes = [32, 8], strides = [1, 1]} : vector<32x96xf32> to vector<32x8xf32>
    %223 = vector.extract_strided_slice %176 {offsets = [0, 48], sizes = [32, 8], strides = [1, 1]} : vector<32x96xf32> to vector<32x8xf32>
    %224 = vector.extract_strided_slice %176 {offsets = [0, 80], sizes = [32, 8], strides = [1, 1]} : vector<32x96xf32> to vector<32x8xf32>
    %cst_99 = arith.constant dense<0.000000e+00> : vector<32x32xf32>
    %225 = tpu.matmul %222, %223, %cst_99 {dimension_numbers = #tpu.dot_dimension_numbers<[1], [1], [0], [0], [0, 0, 1, 0], [], []>} : vector<32x8xf32>, vector<32x8xf32>, vector<32x32xf32> -> vector<32x32xf32>
    %cst_100 = arith.constant 0.353553385 : f32
    %226 = vector.broadcast %cst_100 : f32 to vector<32x32xf32>
    %227 = arith.mulf %225, %226 : vector<32x32xf32>
    %228 = arith.addf %227, %1 : vector<32x32xf32>
    %cst_101 = arith.constant dense<0xFF800000> : vector<32xf32>
    %229 = vector.multi_reduction <maximumf>, %228, %cst_101 [1] : vector<32x32xf32> to vector<32xf32>
    %230 = vector.shape_cast %229 : vector<32xf32> to vector<32x1xf32>
    %231 = vector.broadcast %230 : vector<32x1xf32> to vector<32x32xf32>
    %232 = arith.subf %228, %231 : vector<32x32xf32>
    %233 = math.exp %232 : vector<32x32xf32>
    %cst_102 = arith.constant dense<0.000000e+00> : vector<32xf32>
    %234 = vector.multi_reduction <add>, %233, %cst_102 [1] : vector<32x32xf32> to vector<32xf32>
    %235 = vector.shape_cast %234 : vector<32xf32> to vector<32x1xf32>
    %236 = tpu.reciprocal %235 {approx = true} : vector<32x1xf32> -> vector<32x1xf32>
    %237 = vector.broadcast %236 : vector<32x1xf32> to vector<32x32xf32>
    %238 = arith.mulf %233, %237 : vector<32x32xf32>
    %cst_103 = arith.constant dense<0.000000e+00> : vector<32x8xf32>
    %239 = tpu.matmul %238, %224, %cst_103 {dimension_numbers = #tpu.dot_dimension_numbers<[1], [0], [0], [1], [0, 0, 1, 1], [], []>} : vector<32x32xf32>, vector<32x8xf32>, vector<32x8xf32> -> vector<32x8xf32>
    %240 = vector.extract_strided_slice %178 {offsets = [16, 0], sizes = [8, 32], strides = [1, 1]} : vector<32x32xf32> to vector<8x32xf32>
    %cst_104 = arith.constant dense<0.000000e+00> : vector<32x32xf32>
    %241 = tpu.matmul %239, %240, %cst_104 {dimension_numbers = #tpu.dot_dimension_numbers<[1], [0], [0], [1], [0, 0, 1, 1], [], []>} : vector<32x8xf32>, vector<8x32xf32>, vector<32x32xf32> -> vector<32x32xf32>
    %242 = arith.addf %221, %241 : vector<32x32xf32>
    %243 = vector.extract_strided_slice %176 {offsets = [0, 24], sizes = [32, 8], strides = [1, 1]} : vector<32x96xf32> to vector<32x8xf32>
    %244 = vector.extract_strided_slice %176 {offsets = [0, 56], sizes = [32, 8], strides = [1, 1]} : vector<32x96xf32> to vector<32x8xf32>
    %245 = vector.extract_strided_slice %176 {offsets = [0, 88], sizes = [32, 8], strides = [1, 1]} : vector<32x96xf32> to vector<32x8xf32>
    %cst_105 = arith.constant dense<0.000000e+00> : vector<32x32xf32>
    %246 = tpu.matmul %243, %244, %cst_105 {dimension_numbers = #tpu.dot_dimension_numbers<[1], [1], [0], [0], [0, 0, 1, 0], [], []>} : vector<32x8xf32>, vector<32x8xf32>, vector<32x32xf32> -> vector<32x32xf32>
    %cst_106 = arith.constant 0.353553385 : f32
    %247 = vector.broadcast %cst_106 : f32 to vector<32x32xf32>
    %248 = arith.mulf %246, %247 : vector<32x32xf32>
    %249 = arith.addf %248, %1 : vector<32x32xf32>
    %cst_107 = arith.constant dense<0xFF800000> : vector<32xf32>
    %250 = vector.multi_reduction <maximumf>, %249, %cst_107 [1] : vector<32x32xf32> to vector<32xf32>
    %251 = vector.shape_cast %250 : vector<32xf32> to vector<32x1xf32>
    %252 = vector.broadcast %251 : vector<32x1xf32> to vector<32x32xf32>
    %253 = arith.subf %249, %252 : vector<32x32xf32>
    %254 = math.exp %253 : vector<32x32xf32>
    %cst_108 = arith.constant dense<0.000000e+00> : vector<32xf32>
    %255 = vector.multi_reduction <add>, %254, %cst_108 [1] : vector<32x32xf32> to vector<32xf32>
    %256 = vector.shape_cast %255 : vector<32xf32> to vector<32x1xf32>
    %257 = tpu.reciprocal %256 {approx = true} : vector<32x1xf32> -> vector<32x1xf32>
    %258 = vector.broadcast %257 : vector<32x1xf32> to vector<32x32xf32>
    %259 = arith.mulf %254, %258 : vector<32x32xf32>
    %cst_109 = arith.constant dense<0.000000e+00> : vector<32x8xf32>
    %260 = tpu.matmul %259, %245, %cst_109 {dimension_numbers = #tpu.dot_dimension_numbers<[1], [0], [0], [1], [0, 0, 1, 1], [], []>} : vector<32x32xf32>, vector<32x8xf32>, vector<32x8xf32> -> vector<32x8xf32>
    %261 = vector.extract_strided_slice %178 {offsets = [24, 0], sizes = [8, 32], strides = [1, 1]} : vector<32x32xf32> to vector<8x32xf32>
    %cst_110 = arith.constant dense<0.000000e+00> : vector<32x32xf32>
    %262 = tpu.matmul %260, %261, %cst_110 {dimension_numbers = #tpu.dot_dimension_numbers<[1], [0], [0], [1], [0, 0, 1, 1], [], []>} : vector<32x8xf32>, vector<8x32xf32>, vector<32x32xf32> -> vector<32x32xf32>
    %263 = arith.addf %242, %262 : vector<32x32xf32>
    %c1_111 = arith.constant 1 : index
    %c0_112 = arith.constant 0 : index
    %c0_113 = arith.constant 0 : index
    %264 = vector.load %arg6[%c1_111, %c0_112, %c0_113] : memref<2x1x32xf32, #tpu.memory_space<vmem>>, vector<1x1x32xf32>
    %265 = vector.shape_cast %264 : vector<1x1x32xf32> to vector<1x32xf32>
    %266 = vector.broadcast %265 : vector<1x32xf32> to vector<32x32xf32>
    %267 = arith.addf %263, %266 : vector<32x32xf32>
    %268 = arith.addf %169, %267 : vector<32x32xf32>
    %c1_114 = arith.constant 1 : index
    %c0_115 = arith.constant 0 : index
    %c0_116 = arith.constant 0 : index
    %269 = vector.load %arg7[%c1_114, %c0_115, %c0_116] : memref<2x1x32xf32, #tpu.memory_space<vmem>>, vector<1x1x32xf32>
    %270 = vector.shape_cast %269 : vector<1x1x32xf32> to vector<1x32xf32>
    %c1_117 = arith.constant 1 : index
    %c0_118 = arith.constant 0 : index
    %c0_119 = arith.constant 0 : index
    %271 = vector.load %arg8[%c1_117, %c0_118, %c0_119] : memref<2x1x32xf32, #tpu.memory_space<vmem>>, vector<1x1x32xf32>
    %272 = vector.shape_cast %271 : vector<1x1x32xf32> to vector<1x32xf32>
    %cst_120 = arith.constant dense<0.000000e+00> : vector<32xf32>
    %273 = vector.multi_reduction <add>, %268, %cst_120 [1] : vector<32x32xf32> to vector<32xf32>
    %274 = vector.shape_cast %273 : vector<32xf32> to vector<32x1xf32>
    %cst_121 = arith.constant 3.200000e+01 : f32
    %275 = vector.broadcast %cst_121 : f32 to vector<32x1xf32>
    %276 = arith.divf %274, %275 : vector<32x1xf32>
    %277 = vector.broadcast %276 : vector<32x1xf32> to vector<32x32xf32>
    %278 = arith.subf %268, %277 : vector<32x32xf32>
    %279 = arith.mulf %278, %278 : vector<32x32xf32>
    %cst_122 = arith.constant dense<0.000000e+00> : vector<32xf32>
    %280 = vector.multi_reduction <add>, %279, %cst_122 [1] : vector<32x32xf32> to vector<32xf32>
    %281 = vector.shape_cast %280 : vector<32xf32> to vector<32x1xf32>
    %cst_123 = arith.constant 3.200000e+01 : f32
    %282 = vector.broadcast %cst_123 : f32 to vector<32x1xf32>
    %283 = arith.divf %281, %282 : vector<32x1xf32>
    %284 = vector.broadcast %276 : vector<32x1xf32> to vector<32x32xf32>
    %285 = arith.subf %268, %284 : vector<32x32xf32>
    %cst_124 = arith.constant 9.99999974E-6 : f32
    %286 = vector.broadcast %cst_124 : f32 to vector<32x1xf32>
    %287 = arith.addf %283, %286 : vector<32x1xf32>
    %288 = math.rsqrt %287 : vector<32x1xf32>
    %289 = vector.broadcast %288 : vector<32x1xf32> to vector<32x32xf32>
    %290 = arith.mulf %285, %289 : vector<32x32xf32>
    %291 = vector.broadcast %270 : vector<1x32xf32> to vector<32x32xf32>
    %292 = arith.mulf %290, %291 : vector<32x32xf32>
    %293 = vector.broadcast %272 : vector<1x32xf32> to vector<32x32xf32>
    %294 = arith.addf %292, %293 : vector<32x32xf32>
    %c1_125 = arith.constant 1 : index
    %c0_126 = arith.constant 0 : index
    %c0_127 = arith.constant 0 : index
    %295 = vector.load %arg9[%c1_125, %c0_126, %c0_127] : memref<2x32x64xf32, #tpu.memory_space<vmem>>, vector<1x32x64xf32>
    %296 = vector.shape_cast %295 : vector<1x32x64xf32> to vector<32x64xf32>
    %cst_128 = arith.constant dense<0.000000e+00> : vector<32x64xf32>
    %297 = tpu.matmul %294, %296, %cst_128 {dimension_numbers = #tpu.dot_dimension_numbers<[1], [0], [0], [1], [0, 0, 1, 1], [], []>} : vector<32x32xf32>, vector<32x64xf32>, vector<32x64xf32> -> vector<32x64xf32>
    %c1_129 = arith.constant 1 : index
    %c0_130 = arith.constant 0 : index
    %c0_131 = arith.constant 0 : index
    %298 = vector.load %arg10[%c1_129, %c0_130, %c0_131] : memref<2x1x64xf32, #tpu.memory_space<vmem>>, vector<1x1x64xf32>
    %299 = vector.shape_cast %298 : vector<1x1x64xf32> to vector<1x64xf32>
    %300 = vector.broadcast %299 : vector<1x64xf32> to vector<32x64xf32>
    %301 = arith.addf %297, %300 : vector<32x64xf32>
    %cst_132 = arith.constant 0.000000e+00 : f32
    %302 = vector.broadcast %cst_132 : f32 to vector<32x64xf32>
    %303 = arith.maximumf %301, %302 : vector<32x64xf32>
    %c1_133 = arith.constant 1 : index
    %c0_134 = arith.constant 0 : index
    %c0_135 = arith.constant 0 : index
    %304 = vector.load %arg11[%c1_133, %c0_134, %c0_135] : memref<2x64x32xf32, #tpu.memory_space<vmem>>, vector<1x64x32xf32>
    %305 = vector.shape_cast %304 : vector<1x64x32xf32> to vector<64x32xf32>
    %cst_136 = arith.constant dense<0.000000e+00> : vector<32x32xf32>
    %306 = tpu.matmul %303, %305, %cst_136 {dimension_numbers = #tpu.dot_dimension_numbers<[1], [0], [0], [1], [0, 0, 1, 1], [], []>} : vector<32x64xf32>, vector<64x32xf32>, vector<32x32xf32> -> vector<32x32xf32>
    %c1_137 = arith.constant 1 : index
    %c0_138 = arith.constant 0 : index
    %c0_139 = arith.constant 0 : index
    %307 = vector.load %arg12[%c1_137, %c0_138, %c0_139] : memref<2x1x32xf32, #tpu.memory_space<vmem>>, vector<1x1x32xf32>
    %308 = vector.shape_cast %307 : vector<1x1x32xf32> to vector<1x32xf32>
    %309 = vector.broadcast %308 : vector<1x32xf32> to vector<32x32xf32>
    %310 = arith.addf %306, %309 : vector<32x32xf32>
    %311 = arith.addf %294, %310 : vector<32x32xf32>
    %c1_140 = arith.constant 1 : index
    %c0_141 = arith.constant 0 : index
    %c0_142 = arith.constant 0 : index
    %312 = vector.load %arg13[%c1_140, %c0_141, %c0_142] : memref<2x1x32xf32, #tpu.memory_space<vmem>>, vector<1x1x32xf32>
    %313 = vector.shape_cast %312 : vector<1x1x32xf32> to vector<1x32xf32>
    %c1_143 = arith.constant 1 : index
    %c0_144 = arith.constant 0 : index
    %c0_145 = arith.constant 0 : index
    %314 = vector.load %arg14[%c1_143, %c0_144, %c0_145] : memref<2x1x32xf32, #tpu.memory_space<vmem>>, vector<1x1x32xf32>
    %315 = vector.shape_cast %314 : vector<1x1x32xf32> to vector<1x32xf32>
    %cst_146 = arith.constant dense<0.000000e+00> : vector<32xf32>
    %316 = vector.multi_reduction <add>, %311, %cst_146 [1] : vector<32x32xf32> to vector<32xf32>
    %317 = vector.shape_cast %316 : vector<32xf32> to vector<32x1xf32>
    %cst_147 = arith.constant 3.200000e+01 : f32
    %318 = vector.broadcast %cst_147 : f32 to vector<32x1xf32>
    %319 = arith.divf %317, %318 : vector<32x1xf32>
    %320 = vector.broadcast %319 : vector<32x1xf32> to vector<32x32xf32>
    %321 = arith.subf %311, %320 : vector<32x32xf32>
    %322 = arith.mulf %321, %321 : vector<32x32xf32>
    %cst_148 = arith.constant dense<0.000000e+00> : vector<32xf32>
    %323 = vector.multi_reduction <add>, %322, %cst_148 [1] : vector<32x32xf32> to vector<32xf32>
    %324 = vector.shape_cast %323 : vector<32xf32> to vector<32x1xf32>
    %cst_149 = arith.constant 3.200000e+01 : f32
    %325 = vector.broadcast %cst_149 : f32 to vector<32x1xf32>
    %326 = arith.divf %324, %325 : vector<32x1xf32>
    %327 = vector.broadcast %319 : vector<32x1xf32> to vector<32x32xf32>
    %328 = arith.subf %311, %327 : vector<32x32xf32>
    %cst_150 = arith.constant 9.99999974E-6 : f32
    %329 = vector.broadcast %cst_150 : f32 to vector<32x1xf32>
    %330 = arith.addf %326, %329 : vector<32x1xf32>
    %331 = math.rsqrt %330 : vector<32x1xf32>
    %332 = vector.broadcast %331 : vector<32x1xf32> to vector<32x32xf32>
    %333 = arith.mulf %328, %332 : vector<32x32xf32>
    %334 = vector.broadcast %313 : vector<1x32xf32> to vector<32x32xf32>
    %335 = arith.mulf %333, %334 : vector<32x32xf32>
    %336 = vector.broadcast %315 : vector<1x32xf32> to vector<32x32xf32>
    %337 = arith.addf %335, %336 : vector<32x32xf32>
    %c0_151 = arith.constant 0 : index
    %c0_152 = arith.constant 0 : index
    %338 = vector.load %arg2[%c0_151, %c0_152] : memref<2x32xf32, #tpu.memory_space<vmem>>, vector<2x32xf32>
    %cst_153 = arith.constant dense<0.000000e+00> : vector<2x32xf32>
    %339 = tpu.matmul %338, %337, %cst_153 {dimension_numbers = #tpu.dot_dimension_numbers<[1], [0], [0], [1], [0, 0, 1, 1], [], []>} : vector<2x32xf32>, vector<32x32xf32>, vector<2x32xf32> -> vector<2x32xf32>
    %c0_154 = arith.constant 0 : index
    %c0_155 = arith.constant 0 : index
    %340 = vector.load %arg15[%c0_154, %c0_155] : memref<32x2xf32, #tpu.memory_space<vmem>>, vector<32x2xf32>
    %cst_156 = arith.constant dense<0.000000e+00> : vector<2x2xf32>
    %341 = tpu.matmul %339, %340, %cst_156 {dimension_numbers = #tpu.dot_dimension_numbers<[1], [0], [0], [1], [0, 0, 1, 1], [], []>} : vector<2x32xf32>, vector<32x2xf32>, vector<2x2xf32> -> vector<2x2xf32>
    %c0_157 = arith.constant 0 : index
    %c0_158 = arith.constant 0 : index
    %342 = vector.load %arg16[%c0_157, %c0_158] : memref<1x2xf32, #tpu.memory_space<vmem>>, vector<1x2xf32>
    %343 = vector.broadcast %342 : vector<1x2xf32> to vector<2x2xf32>
    %344 = arith.addf %341, %343 : vector<2x2xf32>
    %c0_159 = arith.constant 0 : index
    %c0_160 = arith.constant 0 : index
    %345 = vector.load %arg17[%c0_159, %c0_160] : memref<2x2xf32, #tpu.memory_space<vmem>>, vector<2x2xf32>
    tpu.vector_store %arg17[%c0_159, %c0_160], %344 {strides = array<i32>} : memref<2x2xf32, #tpu.memory_space<vmem>>, vector<2x2xf32>,
    return
  }
}

</mosaic_0001>

<bundles_post_ra>
// kernel: tpu_custom_call.1
= control target key start
LH: loop header
LB: loop body
LE: loop exit
PB: predicated region body
PF: predicated region fallthrough
CT: control target
= control target key end

     0   :  { %s6807_s0 = inlined_call_operand.hbm [shape: f32[32,32], index: 0, kind: input, shape index: {}]   ;;  %s6808_s1 = inlined_call_operand.hbm [shape: f32[32,32], index: 1, kind: input, shape index: {}]   ;;  %s6809_s2 = inlined_call_operand.vmem [shape: f32[2,32], index: 2, kind: input, shape index: {}]   ;;  %s6810_s3 = inlined_call_operand.vmem [shape: f32[2,32,96], index: 3, kind: input, shape index: {}]   ;;  %s6811_s4 = inlined_call_operand.vmem [shape: f32[2,1,96], index: 4, kind: input, shape index: {}]   ;;  %s6812_s5 = inlined_call_operand.vmem [shape: f32[2,32,32], index: 5, kind: input, shape index: {}]   ;;  %s6813_s6 = inlined_call_operand.vmem [shape: f32[2,1,32], index: 6, kind: input, shape index: {}]   ;;  %s6814_s7 = inlined_call_operand.vmem [shape: f32[2,1,32], index: 7, kind: input, shape index: {}]   ;;  %s6815_s8 = inlined_call_operand.vmem [shape: f32[2,1,32], index: 8, kind: input, shape index: {}]   ;;  %s6816_s9 = inlined_call_operand.vmem [shape: f32[2,32,64], index: 9, kind: input, shape index: {}]   ;;  %s6817_s10 = inlined_call_operand.hbm [shape: f32[2,1,64], index: 10, kind: input, shape index: {}]   ;;  %s6818_s11 = inlined_call_operand.vmem [shape: f32[2,64,32], index: 11, kind: input, shape index: {}]   ;;  %s6819_s12 = inlined_call_operand.vmem [shape: f32[2,1,32], index: 12, kind: input, shape index: {}]   ;;  %s6820_s13 = inlined_call_operand.vmem [shape: f32[2,1,32], index: 13, kind: input, shape index: {}]   ;;  %s6821_s14 = inlined_call_operand.vmem [shape: f32[2,1,32], index: 14, kind: input, shape index: {}]   ;;  %s6822_s15 = inlined_call_operand.vmem [shape: f32[32,2], index: 15, kind: input, shape index: {}]   ;;  %s6823_s16 = inlined_call_operand.vmem [shape: f32[1,2], index: 16, kind: input, shape index: {}]   ;;  %s6824_s17 = inlined_call_operand.hbm [shape: f32[2,2], index: 17, kind: output, shape index: {}]  }
   0x1   :  { %6832 = sst [smem:[#allocation12_spill]] %s6807_s0 }
   0x2   :  { %6833 = sst [smem:[#allocation13_spill]] %s6808_s1 }
   0x3   :  { %6834 = sst [smem:[#allocation14_spill]] %s6824_s17 }
   0x4   :  { %22 = vsyncpa [#allocation3], 0 }
   0x5   :  { %23 = vsyncpa [#allocation6], 0 }
   0x6   :  { %24 = vsyncpa [#allocation4], 0  ;;  %s5858_s24 = smov [#allocation5]   ;;  %s5859_s26 = smov [#allocation2]  }
   0x7   :  { %s42_s25 = sshll.u32 %s5858_s24, 4  ;;  %s30_s27 = sshll.u32 %s5859_s26, 4  ;;  %s43_s25 = int_to_ptr.vmem [resolvable:$true] %s42_s25  ;;  %s5970_s27 = int_to_ptr.vmem [resolvable:$true] %s30_s27 }
   0x8   :  { %s6835_s0 = sld [smem:[#allocation13_spill]] }
   0xe   :  { %s5764_s30 = scalar_lea.hbm %s6835_s0, 512 }
   0xf   :  { %p5765_p0 = scmp.ne.s32.totalorder %s6835_s0, %s5764_s30  ;;  %p5768_p1 = scmp.lt.u32.totalorder %s5764_s30, %s6835_s0 }
  0x11   :  { %p5770_p2 = pnand %p5768_p1, %p5765_p0 }
  0x13   :  { %5773 = shalt.err (!%p5770_p2)
}
  0x14   :  { %s5774_s21 = scalar_lea.vmem %s43_s25, 512  ;;  %p5779_p4 = scmp.lt.s32.totalorder %s43_s25, %s43_s25 }
  0x15   :  { %p5775_p3 = scmp.ne.s32.totalorder %s43_s25, %s5774_s21  ;;  %p5780_p5 = scmp.lt.s32.totalorder %s5774_s21, %s5774_s21 }
  0x17   :  { %p5781_p6 = por %p5780_p5, %p5779_p4 }
  0x19   :  { %p5782_p7 = pnand %p5781_p6, %p5775_p3 }
  0x1b   :  { %5785 = shalt.err (!%p5782_p7)
}
  0x1c   :  { %s5860_s22 = smov 128   ;;  %s5861_s23 = smov 8  }
  0x1d   :  { %48 = dma.hbm_to_vmem [thread:$0]  %s6835_s0, 512, %s43_s25, [#allocation6], %s5860_s22, %s5860_s22, %s5861_s23  }
  0x1e   :  { %s6836_s18 = sld [smem:[#allocation12_spill]] }
  0x24   :  { %s5786_s19 = scalar_lea.hbm %s6836_s18, 512 }
  0x25   :  { %p5787_p8 = scmp.ne.s32.totalorder %s6836_s18, %s5786_s19  ;;  %p5790_p9 = scmp.lt.u32.totalorder %s5786_s19, %s6836_s18 }
  0x27   :  { %p5792_p10 = pnand %p5790_p9, %p5787_p8 }
  0x29   :  { %5795 = shalt.err (!%p5792_p10)
}
  0x2a   :  { %s5796_s21 = scalar_lea.vmem %s5970_s27, 512  ;;  %p5801_p12 = scmp.lt.s32.totalorder %s5970_s27, %s5970_s27 }
  0x2b   :  { %p5797_p11 = scmp.ne.s32.totalorder %s5970_s27, %s5796_s21  ;;  %p5802_p13 = scmp.lt.s32.totalorder %s5796_s21, %s5796_s21 }
  0x2d   :  { %p5803_p0 = por %p5802_p13, %p5801_p12 }
  0x2f   :  { %p5804_p1 = pnand %p5803_p0, %p5797_p11 }
  0x31   :  { %5807 = shalt.err (!%p5804_p1)
}
  0x32   :  { %36 = dma.hbm_to_vmem [thread:$0]  %s6836_s18, 512, %s5970_s27, [#allocation3], %s5860_s22, %s5860_s22, %s5861_s23  }
  0x33   :  { %s5862_s17 = smov [#allocation7]   ;;  %s5808_s29 = scalar_lea.hbm %s6817_s10, 32 }
  0x34   :  { %s70_s24 = sshll.u32 %s5862_s17, 4  ;;  %p5809_p2 = scmp.ne.s32.totalorder %s6817_s10, %s5808_s29  ;;  %s71_s24 = int_to_ptr.vmem [resolvable:$true] %s70_s24 }
  0x35   :  { %p5812_p3 = scmp.lt.u32.totalorder %s5808_s29, %s6817_s10 }
  0x37   :  { %p5814_p4 = pnand %p5812_p3, %p5809_p2 }
  0x39   :  { %5817 = shalt.err (!%p5814_p4)
}
  0x3a   :  { %s5818_s21 = scalar_lea.vmem %s71_s24, 32  ;;  %p5823_p6 = scmp.lt.s32.totalorder %s71_s24, %s71_s24 }
  0x3b   :  { %p5819_p5 = scmp.ne.s32.totalorder %s71_s24, %s5818_s21  ;;  %p5824_p7 = scmp.lt.s32.totalorder %s5818_s21, %s5818_s21 }
  0x3d   :  { %p5825_p8 = por %p5824_p7, %p5823_p6 }
  0x3f   :  { %p5826_p9 = pnand %p5825_p8, %p5819_p5 }
  0x41   :  { %5829 = shalt.err (!%p5826_p9)
}
  0x42   :  { %s5863_s27 = smov 16   ;;  %s5864_s22 = smov 1  }
  0x43   :  { %76 = dma.hbm_to_vmem [thread:$0]  %s6817_s10, 32, %s71_s24, [#allocation6], %s5863_s27, %s5863_s27, %s5864_s22  }
  0x44   :  { %5852 = dma.done.wait [#allocation3], 512  }
  0x45   :  { %5853 = vsyncadd [#allocation3], 4294966784 }
  0x46   :  { %5854 = dma.done.wait [#allocation6], 544  }
  0x47   :  { %5855 = vsyncadd [#allocation6], 4294966752  ;;  %vm117_vm0 = vcmask 261120   ;;  %v106_v0 = vld [vmem:[%s6810_s3] sm:$0xff]  ;;  %v107_v1 = vld [vmem:[%s6810_s3 + $0x8] sm:$0xff]  ;;  %vm231_vm1 = vcmask 64512  }
  0x48   :  { %v108_v2 = vld [vmem:[%s6810_s3 + $0x10] sm:$0xff]  ;;  %v5154_v3 = vpack.c.bf16 %v107_v1, %v106_v0  ;;  %v109_v4 = vld [vmem:[%s6810_s3 + $0x18] sm:$0xff]  ;;  %v98_v5 = vld [vmem:[#allocation2] sm:$0xff]  ;;  %s5865_s1 = smov 96   ;;  %s5866_s20 = smov 64   ;;  %vm1941_vm3 = vcmask 523264  }
  0x49   :  { %v5158_v6 = vpack.c.bf16 %v109_v4, %v108_v2  ;;  %4752 = vmatprep.mubr.msk.f32.mxu0 %vm117_vm0, %v98_v5  ;;  %v99_v7 = vld [vmem:[#allocation2 + $0x8] sm:$0xff]  ;;  %v100_v8 = vld [vmem:[#allocation2 + $0x10] sm:$0xff]  ;;  %v101_v9 = vld [vmem:[#allocation2 + $0x18] sm:$0xff]  ;;  %s5867_s21 = smov 88   ;;  %s5868_s27 = smov 120   ;;  %vm5877_vm4 = vmmov 0  }
  0x4a   :  { %5155 = vmatprep.subr.bf16.mxu0 %v5154_v3  ;;  %v4312_v10 = vld [vmem:[%s6811_s4] ss:$0 sm:$0xff]  ;;  %vm6056_vm2 = vmpackc.low %vm231_vm1, %vm231_vm1  ;;  %v6074_v31 = vld [vmem:[#allocation5 + $0x8] sm:$0xff]  ;;  %s5869_s22 = smov 80   ;;  %s5870_s23 = smov 112   ;;  %vm4294_vm5 = vcmask 9216  }
  0x4b   :  { %5157 = vmatpush3.bf16.msra.mxu0 %v5154_v3  ;;  %v6076_v35 = vld [vmem:[#allocation5] sm:$0xff]  ;;  %v6081_v42 = vld [vmem:[#allocation5 + $0x10] sm:$0xff]  ;;  %v6083_v44 = vld [vmem:[#allocation5 + $0x18] sm:$0xff]  ;;  %s5871_s18 = smov 56   ;;  %s5872_s25 = smov 72  }
  0x4c   :  { %5159 = vmatprep.subr.bf16.mxu0 %v5158_v6  ;;  %s5873_s0 = smov 104   ;;  %s6830_s28 = smov 48  }
  0x4d   :  { %s6828_s30 = smov 40  }
  0x4f   :  { %5161 = vmatpush3.bf16.msra.mxu0 %v5158_v6 }
  0x52   :  { %4753 = vmatmul.mubr.msk.f32.vlgmr.msra.gmra.mrb[0].mxu0 %vm117_vm0, %v99_v7 }
  0x53   :  { %4755 = vmatprep.mubr.msk.f32.mxu0 %vm117_vm0, %v100_v8 }
  0x56   :  { %4756 = vmatmul.mubr.msk.f32.gmra.mrb[2].mxu0 %vm117_vm0, %v101_v9 }
 0x125   :  { %v4754_v11 = vpop.f32.mrb[0].mxu0 }
 0x126   :  { %v6032_v12 = vadd.f32 %v4754_v11, %v4312_v10  ;;  %v196_v13 = vpop.f32.mrb[1].mxu0 }
 0x127   :  { %v6034_v14 = vadd.f32 %v4312_v10, %v196_v13 }
 0x129   :  { %4766 = vmatprep.mubr.msk.f32.mxu1 %vm231_vm1, %v6034_v14  ;;  %v6040_v15 = vpack.i.bf16 %v6032_v12, %v6034_v14  ;;  %v4757_v16 = vpop.f32.mrb[2].mxu0 }
 0x12a   :  { %v6042_v17 = vadd.f32 %v4757_v16, %v4312_v10  ;;  %v206_v18 = vpop.f32.mrb[3].mxu0 }
 0x12b   :  { %5437 = vrot.lane.b32.xlu0 %v6040_v15, %s5865_s1  ;;  %v6046_v19 = vadd.f32 %v4312_v10, %v206_v18 }
 0x12d   :  { %v6050_v20 = vpack.i.bf16 %v6042_v17, %v6046_v19 }
 0x12f   :  { %5442 = vrot.lane.b32.xlu0 %v6050_v20, %s5865_s1 }
 0x19d   :  { %v5438_v21 = vpop.permute.xlu0 %5437 }
 0x19e   :  { %v5440_v22 = vunpack.i.h.bf16 %v5438_v21  ;;  %v5439_v23 = vunpack.i.l.bf16 %v5438_v21 }
 0x1a0   :  { %v5162_v25 = vpack.c.bf16 %v5440_v22, %v5439_v23 }
 0x1a1   :  { %v5443_v26 = vpop.permute.xlu0 %5442 }
 0x1a2   :  { %5164 = vmatprep.subr.msk.bf16.mxu1 %vm6056_vm2, %v5162_v25  ;;  %v5445_v27 = vunpack.i.h.bf16 %v5443_v26  ;;  %v5444_v28 = vunpack.i.l.bf16 %v5443_v26 }
 0x1a3   :  { %5167 = vmatpush3.bf16.xpose.msk.msra.mxu1 %vm6056_vm2, %v5162_v25 }
 0x1a4   :  { %v5168_v29 = vpack.c.bf16 %v5445_v27, %v5444_v28 }
 0x1a6   :  { %5170 = vmatprep.subr.msk.bf16.mxu1 %vm6056_vm2, %v5168_v29 }
 0x1ab   :  { %5173 = vmatpush3.bf16.xpose.msk.msra.mxu1 %vm6056_vm2, %v5168_v29 }
 0x1b2   :  { %4767 = vmatmul.mubr.msk.f32.vlgmr.msra.gmra.mrb[0].mxu1 %vm231_vm1, %v6032_v12 }
 0x1b3   :  { %4769 = vmatprep.mubr.msk.f32.mxu1 %vm231_vm1, %v6046_v19 }
 0x1b6   :  { %4770 = vmatmul.mubr.msk.f32.gmra.mrb[2].mxu1 %vm231_vm1, %v6042_v17 }
 0x285   :  { %v4768_v30 = vpop.f32.mrb[0].mxu1 }
 0x286   :  { %v334_v32 = vmul.f32 0.35355338, %v4768_v30  ;;  %v314_v33 = vpop.f32.mrb[1].mxu1 }
 0x287   :  { %v333_v34 = vmul.f32 0.35355338, %v314_v33 }
 0x288   :  { %v338_v36 = vadd.f32 %v334_v32, %v6074_v31 }
 0x289   :  { %v4771_v37 = vpop.f32.mrb[2].mxu1  ;;  %v337_v41 = vadd.f32 %v333_v34, %v6076_v35 }
 0x28a   :  { %v336_v38 = vmul.f32 0.35355338, %v4771_v37  ;;  %v324_v39 = vpop.f32.mrb[3].mxu1  ;;  %v344_v40 = vsel %vm117_vm0, %v338_v36, -inf }
 0x28b   :  { %v335_v43 = vmul.f32 0.35355338, %v324_v39  ;;  %345 = vmax.xlane.f32.xlu1 %v344_v40  ;;  %v341_v46 = vsel %vm117_vm0, %v337_v41, -inf }
 0x28c   :  { %v340_v47 = vadd.f32 %v336_v38, %v6083_v44 }
 0x28d   :  { %v339_v45 = vadd.f32 %v335_v43, %v6081_v42 }
 0x28e   :  { %v350_v49 = vsel %vm117_vm0, %v340_v47, -inf }
 0x28f   :  { %342 = vmax.xlane.f32.xlu1 %v341_v46  ;;  %v347_v48 = vsel %vm117_vm0, %v339_v45, -inf }
 0x290   :  { %348 = vmax.xlane.f32.xlu0 %v347_v48 }
 0x293   :  { %351 = vmax.xlane.f32.xlu1 %v350_v49 }
 0x2a4   :  { %5447 = vrot.lane.b32.xlu1 %v6040_v15, %s5866_s20 }
 0x2a6   :  { %5452 = vrot.lane.b32.xlu0 %v6050_v20, %s5866_s20 }
 0x2a8   :  { %5457 = vrot.lane.b32.xlu1 %v6040_v15, %s5867_s21 }
 0x2aa   :  { %498 = vrot.lane.b32.xlu0 %v6046_v19, %s5868_s27 }
 0x2ac   :  { %5462 = vrot.lane.b32.xlu1 %v6050_v20, %s5867_s21 }
 0x2ae   :  { %5467 = vrot.lane.b32.xlu0 %v6040_v15, %s5869_s22 }
 0x2b0   :  { %494 = vrot.lane.b32.xlu1 %v6034_v14, %s5868_s27 }
 0x2b2   :  { %966 = vrot.lane.b32.xlu0 %v6034_v14, %s5870_s23 }
 0x2b6   :  { %970 = vrot.lane.b32.xlu0 %v6046_v19, %s5870_s23 }
 0x318   :  { %v346_v50 = vpop.xlane.xlu1 %345 }
 0x319   :  { %v354_v51 = vsub.f32 %v338_v36, %v346_v50 }
 0x31b   :  { %v359_v52 = vmul.f32 1.442695, %v354_v51 }
 0x31c   :  { %v343_v53 = vpop.xlane.xlu1 %342 }
 0x31d   :  { %5596 = vpow2.f32 %v359_v52  ;;  %v353_v54 = vsub.f32 %v337_v41, %v343_v53  ;;  %v349_v55 = vpop.xlane.xlu0 %348 }
 0x31e   :  { %v355_v11 = vsub.f32 %v339_v45, %v349_v55 }
 0x31f   :  { %v357_v56 = vmul.f32 1.442695, %v353_v54 }
 0x320   :  { %v352_v57 = vpop.xlane.xlu1 %351  ;;  %v361_v16 = vmul.f32 1.442695, %v355_v11 }
 0x321   :  { %5598 = vpow2.f32 %v357_v56  ;;  %v5453_v58 = vpop.permute.xlu0 %5452  ;;  %v356_v10 = vsub.f32 %v340_v47, %v352_v57 }
 0x322   :  { %v5455_v60 = vunpack.i.h.bf16 %v5453_v58  ;;  %v5454_v61 = vunpack.i.l.bf16 %v5453_v58 }
 0x323   :  { %v363_v13 = vmul.f32 1.442695, %v356_v10 }
 0x324   :  { %v5448_v59 = vpop.permute.xlu1 %5447  ;;  %v5178_v6 = vpack.c.bf16 %v5455_v60, %v5454_v61 }
 0x325   :  { %v5450_v62 = vunpack.i.h.bf16 %v5448_v59  ;;  %v5449_v63 = vunpack.i.l.bf16 %v5448_v59  ;;  %5600 = vpow2.f32 %v363_v13  ;;  %v499_v30 = vpop.permute.xlu0 %498 }
 0x326   :  { %5602 = vpow2.f32 %v361_v16 }
 0x327   :  { %v5597_v0 = vpop.eup %5596  ;;  %v5174_v1 = vpack.c.bf16 %v5450_v62, %v5449_v63 }
 0x328   :  { %v5458_v2 = vpop.permute.xlu1 %5457  ;;  %v368_v3 = vsel %vm117_vm0, %v5597_v0, 0.0 }
 0x329   :  { %v5460_v4 = vunpack.i.h.bf16 %v5458_v2  ;;  %v5459_v5 = vunpack.i.l.bf16 %v5458_v2  ;;  %369 = vadd.xlane.f32.xlu1 %v368_v3  ;;  %5175 = vmatprep.subr.bf16.mxu0 %v5174_v1  ;;  %v5468_v39 = vpop.permute.xlu0 %5467 }
 0x32a   :  { %5177 = vmatpush3.bf16.msra.mxu0 %v5174_v1  ;;  %v5470_v40 = vunpack.i.h.bf16 %v5468_v39  ;;  %v5469_v41 = vunpack.i.l.bf16 %v5468_v39 }
 0x32b   :  { %v5599_v7 = vpop.eup %5598  ;;  %5179 = vmatprep.subr.bf16.mxu0 %v5178_v6  ;;  %v5182_v9 = vpack.c.bf16 %v5460_v4, %v5459_v5 }
 0x32c   :  { %v365_v8 = vsel %vm117_vm0, %v5599_v7, 0.0  ;;  %v5463_v25 = vpop.permute.xlu1 %5462  ;;  %v5202_v43 = vpack.c.bf16 %v5470_v40, %v5469_v41 }
 0x32d   :  { %366 = vadd.xlane.f32.xlu1 %v365_v8  ;;  %v5465_v33 = vunpack.i.h.bf16 %v5463_v25  ;;  %v5464_v34 = vunpack.i.l.bf16 %v5463_v25  ;;  %v967_v57 = vpop.permute.xlu0 %966 }
 0x32e   :  { %5181 = vmatpush3.bf16.msra.mxu0 %v5178_v6 }
 0x32f   :  { %5184 = vmatprep.subr.msk.bf16.mxu0 %vm6056_vm2, %v5182_v9  ;;  %v5601_v18 = vpop.eup %5600  ;;  %v5188_v38 = vpack.c.bf16 %v5465_v33, %v5464_v34 }
 0x330   :  { %v374_v21 = vsel %vm117_vm0, %v5601_v18, 0.0  ;;  %v5603_v22 = vpop.eup %5602  ;;  %v495_v26 = vpop.permute.xlu1 %494 }
 0x331   :  { %v371_v23 = vsel %vm117_vm0, %v5603_v22, 0.0  ;;  %v971_v59 = vpop.permute.xlu0 %970 }
 0x33e   :  { %496 = vrot.lane.b32.xlu1 %v6032_v12, %s5868_s27 }
 0x362   :  { %375 = vadd.xlane.f32.xlu1 %v374_v21 }
 0x366   :  { %372 = vadd.xlane.f32.xlu1 %v371_v23 }
 0x377   :  { %500 = vrot.lane.b32.xlu1 %v6042_v17, %s5868_s27 }
 0x37b   :  { %5472 = vrot.lane.b32.xlu1 %v6050_v20, %s5869_s22 }
 0x37f   :  { %968 = vrot.lane.b32.xlu1 %v6032_v12, %s5870_s23 }
 0x383   :  { %972 = vrot.lane.b32.xlu1 %v6042_v17, %s5870_s23 }
 0x3b6   :  { %v370_v27 = vpop.xlane.xlu1 %369 }
 0x3b7   :  { %5604 = vrcp.f32 %v370_v27 }
 0x3ba   :  { %v367_v28 = vpop.xlane.xlu1 %366 }
 0x3bb   :  { %5606 = vrcp.f32 %v367_v28 }
 0x3be   :  { %v497_v45 = vpop.permute.xlu1 %496 }
 0x3c1   :  { %v5605_v29 = vpop.eup %5604 }
 0x3c2   :  { %v382_v37 = vmul.f32 %v5605_v29, %v5597_v0 }
 0x3c5   :  { %v5607_v32 = vpop.eup %5606 }
 0x3c6   :  { %v381_v36 = vmul.f32 %v5607_v32, %v5599_v7 }
 0x3c8   :  { %4780 = vmatprep.mubr.msk.f32.mxu0 %vm117_vm0, %v381_v36 }
 0x3c9   :  { %4781 = vmatmul.mubr.msk.f32.vlgmr.msra.gmra.mrb[4].mxu0 %vm117_vm0, %v382_v37 }
 0x3ca   :  { %5187 = vmatpush3.bf16.xpose.msk.msra.mxu0 %vm6056_vm2, %v5182_v9 }
 0x3cb   :  { %5190 = vmatprep.subr.msk.bf16.mxu0 %vm6056_vm2, %v5188_v38 }
 0x3d2   :  { %5193 = vmatpush3.bf16.xpose.msk.msra.mxu0 %vm6056_vm2, %v5188_v38 }
 0x3d3   :  { %5204 = vmatprep.subr.msk.bf16.mxu0 %vm6056_vm2, %v5202_v43 }
 0x3ef   :  { %v376_v46 = vpop.xlane.xlu1 %375 }
 0x3f0   :  { %5608 = vrcp.f32 %v376_v46 }
 0x3f3   :  { %v373_v47 = vpop.xlane.xlu1 %372 }
 0x3f4   :  { %5610 = vrcp.f32 %v373_v47 }
 0x3f7   :  { %v501_v48 = vpop.permute.xlu1 %500 }
 0x3fa   :  { %v5609_v49 = vpop.eup %5608 }
 0x3fb   :  { %v5473_v51 = vpop.permute.xlu1 %5472  ;;  %v384_v53 = vmul.f32 %v5609_v49, %v5601_v18 }
 0x3fc   :  { %v5475_v54 = vunpack.i.h.bf16 %v5473_v51  ;;  %v5474_v55 = vunpack.i.l.bf16 %v5473_v51 }
 0x3fe   :  { %v5611_v50 = vpop.eup %5610  ;;  %v5208_v56 = vpack.c.bf16 %v5475_v54, %v5474_v55 }
 0x3ff   :  { %v383_v52 = vmul.f32 %v5611_v50, %v5603_v22  ;;  %v969_v58 = vpop.permute.xlu1 %968 }
 0x401   :  { %4783 = vmatprep.mubr.msk.f32.mxu0 %vm117_vm0, %v383_v52 }
 0x402   :  { %4784 = vmatmul.mubr.msk.f32.gmra.mrb[6].mxu0 %vm117_vm0, %v384_v53 }
 0x403   :  { %4794 = vmatprep.mubr.msk.f32.mxu0 %vm231_vm1, %v495_v26  ;;  %v973_v60 = vpop.permute.xlu1 %972 }
 0x406   :  { %4795 = vmatmul.mubr.msk.f32.vlgmr.msra.gmra.mrb[8].mxu0 %vm231_vm1, %v497_v45 }
 0x407   :  { %5207 = vmatpush3.bf16.xpose.msk.msra.mxu0 %vm6056_vm2, %v5202_v43  ;;  %4797 = vmatprep.mubr.msk.f32.mxu0 %vm231_vm1, %v499_v30 }
 0x408   :  { %5210 = vmatprep.subr.msk.bf16.mxu0 %vm6056_vm2, %v5208_v56 }
 0x40a   :  { %4798 = vmatmul.mubr.msk.f32.gmra.mrb[10].mxu0 %vm231_vm1, %v501_v48 }
 0x40b   :  { %4838 = vmatprep.mubr.msk.f32.mxu0 %vm231_vm1, %v967_v57 }
 0x40f   :  { %5213 = vmatpush3.bf16.xpose.msk.msra.mxu0 %vm6056_vm2, %v5208_v56 }
 0x416   :  { %4839 = vmatmul.mubr.msk.f32.vlgmr.msra.gmra.mrb[12].mxu0 %vm231_vm1, %v969_v58 }
 0x417   :  { %4841 = vmatprep.mubr.msk.f32.mxu0 %vm231_vm1, %v971_v59 }
 0x41a   :  { %4842 = vmatmul.mubr.msk.f32.gmra.mrb[14].mxu0 %vm231_vm1, %v973_v60 }
 0x49c   :  { %v6150_v61 = vpop.f32.mrb[4].mxu0 }
 0x49d   :  { %v6152_v62 = vpop.f32.mrb[5].mxu0 }
 0x4d5   :  { %v6154_v63 = vpop.f32.mrb[6].mxu0 }
 0x4d6   :  { %v6156_v0 = vpop.f32.mrb[7].mxu0 }
 0x4d9   :  { %v4796_v1 = vpop.f32.mrb[8].mxu0 }
 0x4da   :  { %v612_v2 = vmul.f32 0.35355338, %v4796_v1  ;;  %v592_v3 = vpop.f32.mrb[9].mxu0 }
 0x4db   :  { %v611_v4 = vmul.f32 0.35355338, %v592_v3 }
 0x4dc   :  { %v616_v5 = vadd.f32 %v612_v2, %v6074_v31 }
 0x4dd   :  { %v4799_v6 = vpop.f32.mrb[10].mxu0  ;;  %v615_v7 = vadd.f32 %v611_v4, %v6076_v35 }
 0x4de   :  { %v602_v8 = vpop.f32.mrb[11].mxu0  ;;  %v622_v9 = vsel %vm117_vm0, %v616_v5, -inf  ;;  %v614_v10 = vmul.f32 0.35355338, %v4799_v6 }
 0x4df   :  { %v613_v11 = vmul.f32 0.35355338, %v602_v8  ;;  %623 = vmax.xlane.f32.xlu1 %v622_v9  ;;  %v619_v13 = vsel %vm117_vm0, %v615_v7, -inf }
 0x4e0   :  { %620 = vmax.xlane.f32.xlu0 %v619_v13  ;;  %v618_v21 = vadd.f32 %v614_v10, %v6083_v44 }
 0x4e1   :  { %v617_v16 = vadd.f32 %v613_v11, %v6081_v42 }
 0x4e2   :  { %v628_v22 = vsel %vm117_vm0, %v618_v21, -inf }
 0x4e3   :  { %v625_v18 = vsel %vm117_vm0, %v617_v16, -inf }
 0x4e4   :  { %626 = vmax.xlane.f32.xlu0 %v625_v18 }
 0x4e8   :  { %629 = vmax.xlane.f32.xlu0 %v628_v22 }
 0x4e9   :  { %v4840_v23 = vpop.f32.mrb[12].mxu0 }
 0x4ea   :  { %v1064_v25 = vpop.f32.mrb[13].mxu0  ;;  %v1084_v53 = vmul.f32 0.35355338, %v4840_v23 }
 0x4eb   :  { %v1083_v52 = vmul.f32 0.35355338, %v1064_v25 }
 0x4ed   :  { %v4843_v26 = vpop.f32.mrb[14].mxu0  ;;  %v6196_v55 = vadd.f32 %v1083_v52, %v6076_v35 }
 0x4ee   :  { %v1074_v27 = vpop.f32.mrb[15].mxu0  ;;  %v1086_v56 = vmul.f32 0.35355338, %v4843_v26 }
 0x4ef   :  { %v1085_v54 = vmul.f32 0.35355338, %v1074_v27  ;;  %v1091_v57 = vsel %vm117_vm0, %v6196_v55, -inf }
 0x4f0   :  { %v6211_v58 = vadd.f32 %v1086_v56, %v6083_v44 }
 0x4f2   :  { %v1100_v59 = vsel %vm117_vm0, %v6211_v58, -inf }
 0x56c   :  { %v624_v28 = vpop.xlane.xlu1 %623 }
 0x56d   :  { %v632_v29 = vsub.f32 %v616_v5, %v624_v28  ;;  %v621_v30 = vpop.xlane.xlu0 %620 }
 0x56e   :  { %v631_v32 = vsub.f32 %v615_v7, %v621_v30 }
 0x56f   :  { %v637_v33 = vmul.f32 1.442695, %v632_v29 }
 0x570   :  { %v635_v34 = vmul.f32 1.442695, %v631_v32 }
 0x571   :  { %5612 = vpow2.f32 %v637_v33  ;;  %v627_v36 = vpop.xlane.xlu0 %626 }
 0x572   :  { %5614 = vpow2.f32 %v635_v34  ;;  %v633_v37 = vsub.f32 %v617_v16, %v627_v36 }
 0x574   :  { %v639_v38 = vmul.f32 1.442695, %v633_v37 }
 0x575   :  { %v630_v39 = vpop.xlane.xlu0 %629 }
 0x576   :  { %5616 = vpow2.f32 %v639_v38  ;;  %v634_v40 = vsub.f32 %v618_v21, %v630_v39 }
 0x578   :  { %v641_v41 = vmul.f32 1.442695, %v634_v40 }
 0x57a   :  { %5618 = vpow2.f32 %v641_v41 }
 0x57b   :  { %v6166_v43 = vpop.eup %5612 }
 0x57c   :  { %v5615_v45 = vpop.eup %5614  ;;  %v646_v46 = vsel %vm117_vm0, %v6166_v43, 0.0 }
 0x57d   :  { %647 = vadd.xlane.f32.xlu0 %v646_v46  ;;  %v643_v47 = vsel %vm117_vm0, %v5615_v45, 0.0 }
 0x57e   :  { %644 = vadd.xlane.f32.xlu1 %v643_v47 }
 0x580   :  { %v6171_v48 = vpop.eup %5616 }
 0x581   :  { %v649_v49 = vsel %vm117_vm0, %v6171_v48, 0.0 }
 0x582   :  { %650 = vadd.xlane.f32.xlu1 %v649_v49 }
 0x584   :  { %v6175_v50 = vpop.eup %5618 }
 0x585   :  { %v652_v51 = vsel %vm117_vm0, %v6175_v50, 0.0 }
 0x586   :  { %653 = vadd.xlane.f32.xlu0 %v652_v51 }
 0x593   :  { %5477 = vrot.lane.b32.xlu1 %v6040_v15, %s5871_s18 }
 0x597   :  { %5487 = vrot.lane.b32.xlu1 %v6040_v15, %s5872_s25 }
 0x59b   :  { %5492 = vrot.lane.b32.xlu1 %v6050_v20, %s5872_s25 }
 0x59c   :  { %5482 = vrot.lane.b32.xlu0 %v6050_v20, %s5871_s18 }
 0x59f   :  { %1347 = vrot.lane.b32.xlu1 %v6032_v12, %s5873_s0  ;;  %v6201_v12 = vadd.f32 %v1084_v53, %v6074_v31 }
 0x5a0   :  { %1345 = vrot.lane.b32.xlu0 %v6034_v14, %s5873_s0  ;;  %v6204_v14 = vadd.f32 %v1085_v54, %v6081_v42 }
 0x5a3   :  { %1351 = vrot.lane.b32.xlu1 %v6042_v17, %s5873_s0  ;;  %v1094_v17 = vsel %vm117_vm0, %v6201_v12, -inf }
 0x5a4   :  { %1349 = vrot.lane.b32.xlu0 %v6046_v19, %s5873_s0  ;;  %v1097_v19 = vsel %vm117_vm0, %v6204_v14, -inf }
 0x5c3   :  { %1092 = vmax.xlane.f32.xlu0 %v1091_v57 }
 0x5c7   :  { %1095 = vmax.xlane.f32.xlu1 %v1094_v17  ;;  %1098 = vmax.xlane.f32.xlu0 %v1097_v19 }
 0x5cb   :  { %1101 = vmax.xlane.f32.xlu0 %v1100_v59  ;;  %v216_v59 = vld [vmem:[%s6812_s5 + $0x8] sm:$0xff] }
 0x60a   :  { %v648_v1 = vpop.xlane.xlu0 %647 }
 0x60b   :  { %v645_v60 = vpop.xlane.xlu1 %644 }
 0x60c   :  { %5620 = vrcp.f32 %v645_v60  ;;  %v215_v60 = vld [vmem:[%s6812_s5] sm:$0xff] }
 0x60d   :  { %5622 = vrcp.f32 %v648_v1 }
 0x60f   :  { %v651_v2 = vpop.xlane.xlu1 %650 }
 0x610   :  { %5624 = vrcp.f32 %v651_v2 }
 0x613   :  { %v5478_v3 = vpop.permute.xlu1 %5477  ;;  %v654_v4 = vpop.xlane.xlu0 %653 }
 0x614   :  { %v5480_v5 = vunpack.i.h.bf16 %v5478_v3  ;;  %v5479_v6 = vunpack.i.l.bf16 %v5478_v3  ;;  %5626 = vrcp.f32 %v654_v4 }
 0x616   :  { %v5621_v7 = vpop.eup %5620  ;;  %v5194_v8 = vpack.c.bf16 %v5480_v5, %v5479_v6 }
 0x617   :  { %v5488_v9 = vpop.permute.xlu1 %5487  ;;  %v5483_v10 = vpop.permute.xlu0 %5482  ;;  %v659_v11 = vmul.f32 %v5621_v7, %v5615_v45 }
 0x618   :  { %v5490_v13 = vunpack.i.h.bf16 %v5488_v9  ;;  %v5489_v16 = vunpack.i.l.bf16 %v5488_v9  ;;  %v5485_v18 = vunpack.i.h.bf16 %v5483_v10  ;;  %v5484_v21 = vunpack.i.l.bf16 %v5483_v10  ;;  %5195 = vmatprep.subr.bf16.mxu1 %v5194_v8  ;;  %v5623_v25 = vpop.eup %5622 }
 0x619   :  { %5197 = vmatpush3.bf16.msra.mxu1 %v5194_v8  ;;  %4808 = vmatprep.mubr.msk.f32.mxu1 %vm117_vm0, %v659_v11  ;;  %v660_v32 = vmul.f32 %v5623_v25, %v6166_v43 }
 0x61a   :  { %v5222_v22 = vpack.c.bf16 %v5490_v13, %v5489_v16  ;;  %v5198_v23 = vpack.c.bf16 %v5485_v18, %v5484_v21  ;;  %v5625_v28 = vpop.eup %5624 }
 0x61b   :  { %v5493_v26 = vpop.permute.xlu1 %5492  ;;  %v1346_v27 = vpop.permute.xlu0 %1345  ;;  %v661_v36 = vmul.f32 %v5625_v28, %v6171_v48 }
 0x61c   :  { %v5495_v29 = vunpack.i.h.bf16 %v5493_v26  ;;  %v5494_v30 = vunpack.i.l.bf16 %v5493_v26  ;;  %5199 = vmatprep.subr.bf16.mxu1 %v5198_v23  ;;  %5224 = vmatprep.subr.msk.bf16.mxu0 %vm6056_vm2, %v5222_v22 }
 0x61d   :  { %4874 = vmatprep.mubr.msk.f32.mxu0 %vm231_vm1, %v1346_v27  ;;  %5201 = vmatpush3.bf16.msra.mxu1 %v5198_v23 }
 0x61e   :  { %v5228_v33 = vpack.c.bf16 %v5495_v29, %v5494_v30  ;;  %5227 = vmatpush3.bf16.xpose.msk.msra.mxu0 %vm6056_vm2, %v5222_v22  ;;  %v5627_v34 = vpop.eup %5626  ;;  %4814 = vmatprep.subr.mxu1 %v216_v59 }
 0x61f   :  { %v662_v37 = vmul.f32 %v5627_v34, %v6175_v50  ;;  %v1348_v38 = vpop.permute.xlu1 %1347  ;;  %v1350_v39 = vpop.permute.xlu0 %1349 }
 0x620   :  { %4809 = vmatmul.mubr.msk.f32.vlgmr.msra.gmra.mrb[4].mxu1 %vm117_vm0, %v660_v32  ;;  %5230 = vmatprep.subr.msk.bf16.mxu0 %vm6056_vm2, %v5228_v33 }
 0x621   :  { %4811 = vmatprep.mubr.msk.f32.mxu1 %vm117_vm0, %v661_v36  ;;  %4815 = vmatpush3.msra.mxu1 %v216_v59 }
 0x622   :  { %4822 = vmatprep.subr.mxu1 %v215_v60 }
 0x623   :  { %v1352_v40 = vpop.permute.xlu1 %1351 }
 0x624   :  { %4812 = vmatmul.mubr.msk.f32.gmra.mrb[6].mxu1 %vm117_vm0, %v662_v37 }
 0x626   :  { %5233 = vmatpush3.bf16.xpose.msk.msra.mxu0 %vm6056_vm2, %v5228_v33 }
 0x62d   :  { %4875 = vmatmul.mubr.msk.f32.vlgmr.msra.gmra.mrb[16].mxu0 %vm231_vm1, %v1348_v38 }
 0x62e   :  { %4877 = vmatprep.mubr.msk.f32.mxu0 %vm231_vm1, %v1350_v39 }
 0x631   :  { %4878 = vmatmul.mubr.msk.f32.gmra.mrb[18].mxu0 %vm231_vm1, %v1352_v40 }
 0x650   :  { %v1093_v41 = vpop.xlane.xlu0 %1092 }
 0x651   :  { %v1103_v43 = vsub.f32 %v6196_v55, %v1093_v41 }
 0x653   :  { %v1107_v45 = vmul.f32 1.442695, %v1103_v43 }
 0x654   :  { %v1096_v46 = vpop.xlane.xlu1 %1095  ;;  %v1099_v47 = vpop.xlane.xlu0 %1098 }
 0x655   :  { %5628 = vpow2.f32 %v1107_v45  ;;  %v1104_v48 = vsub.f32 %v6201_v12, %v1096_v46  ;;  %v1105_v49 = vsub.f32 %v6204_v14, %v1099_v47  ;;  %v217_v46 = vld [vmem:[%s6812_s5 + $0x10] sm:$0xff] }
 0x657   :  { %v1109_v50 = vmul.f32 1.442695, %v1104_v48  ;;  %v1111_v51 = vmul.f32 1.442695, %v1105_v49 }
 0x658   :  { %v1102_v52 = vpop.xlane.xlu0 %1101 }
 0x659   :  { %5630 = vpow2.f32 %v1109_v50  ;;  %v1106_v53 = vsub.f32 %v6211_v58, %v1102_v52 }
 0x65a   :  { %5632 = vpow2.f32 %v1111_v51 }
 0x65b   :  { %v1113_v54 = vmul.f32 1.442695, %v1106_v53 }
 0x65d   :  { %5634 = vpow2.f32 %v1113_v54 }
 0x65f   :  { %v5629_v56 = vpop.eup %5628 }
 0x660   :  { %v1115_v55 = vsel %vm117_vm0, %v5629_v56, 0.0 }
 0x661   :  { %1116 = vadd.xlane.f32.xlu1 %v1115_v55 }
 0x663   :  { %v5631_v57 = vpop.eup %5630 }
 0x664   :  { %v6239_v17 = vpop.eup %5632  ;;  %v1118_v12 = vsel %vm117_vm0, %v5631_v57, 0.0 }
 0x665   :  { %1119 = vadd.xlane.f32.xlu0 %v1118_v12  ;;  %v1121_v14 = vsel %vm117_vm0, %v6239_v17, 0.0 }
 0x666   :  { %1122 = vadd.xlane.f32.xlu1 %v1121_v14 }
 0x667   :  { %v6244_v19 = vpop.eup %5634 }
 0x668   :  { %v1124_v58 = vsel %vm117_vm0, %v6244_v19, 0.0 }
 0x669   :  { %1125 = vadd.xlane.f32.xlu0 %v1124_v58 }
 0x677   :  { %5497 = vrot.lane.b32.xlu1 %v6040_v15, %s6830_s28 }
 0x67f   :  { %5502 = vrot.lane.b32.xlu0 %v6050_v20, %s6830_s28 }
 0x6ee   :  { %v1117_v1 = vpop.xlane.xlu1 %1116 }
 0x6ef   :  { %5636 = vrcp.f32 %v1117_v1 }
 0x6f2   :  { %v1120_v2 = vpop.xlane.xlu0 %1119 }
 0x6f3   :  { %v1123_v3 = vpop.xlane.xlu1 %1122  ;;  %v4810_v4 = vpop.f32.mrb[4].mxu1  ;;  %5638 = vrcp.f32 %v1120_v2 }
 0x6f4   :  { %v753_v5 = vpop.f32.mrb[5].mxu1  ;;  %5640 = vrcp.f32 %v1123_v3 }
 0x6f5   :  { %4816 = vmatprep.mubr.msk.f32.mxu1 %vm231_vm1, %v753_v5 }
 0x6f6   :  { %v1126_v6 = vpop.xlane.xlu0 %1125  ;;  %4817 = vmatmul.mubr.msk.f32.vlgmr.msra.gmra.mrb[8].mxu1 %vm231_vm1, %v4810_v4 }
 0x6f7   :  { %v5498_v7 = vpop.permute.xlu1 %5497  ;;  %v4813_v8 = vpop.f32.mrb[6].mxu1  ;;  %4823 = vmatpush3.msra.mxu1 %v215_v60  ;;  %5642 = vrcp.f32 %v1126_v6 }
 0x6f8   :  { %v5500_v9 = vunpack.i.h.bf16 %v5498_v7  ;;  %v5499_v10 = vunpack.i.l.bf16 %v5498_v7  ;;  %v763_v11 = vpop.f32.mrb[7].mxu1 }
 0x6f9   :  { %4819 = vmatprep.mubr.msk.f32.mxu1 %vm231_vm1, %v763_v11  ;;  %v5637_v23 = vpop.eup %5636 }
 0x6fa   :  { %v5503_v13 = vpop.permute.xlu0 %5502  ;;  %4820 = vmatmul.mubr.msk.f32.gmra.mrb[10].mxu1 %vm231_vm1, %v4813_v8  ;;  %v5214_v16 = vpack.c.bf16 %v5500_v9, %v5499_v10  ;;  %v1131_v29 = vmul.f32 %v5637_v23, %v5629_v56 }
 0x6fb   :  { %v5505_v18 = vunpack.i.h.bf16 %v5503_v13  ;;  %v5504_v21 = vunpack.i.l.bf16 %v5503_v13  ;;  %4824 = vmatprep.mubr.msk.f32.mxu1 %vm231_vm1, %v6152_v62 }
 0x6fc   :  { %5215 = vmatprep.subr.bf16.mxu1 %v5214_v16 }
 0x6fd   :  { %v5218_v22 = vpack.c.bf16 %v5505_v18, %v5504_v21  ;;  %v5639_v26 = vpop.eup %5638 }
 0x6fe   :  { %4825 = vmatmul.mubr.msk.f32.vlgmr.msra.gmra.mrb[8].mxu1 %vm231_vm1, %v6150_v61  ;;  %v5641_v30 = vpop.eup %5640  ;;  %v1132_v62 = vmul.f32 %v5639_v26, %v5631_v57 }
 0x6ff   :  { %5217 = vmatpush3.bf16.msra.mxu1 %v5214_v16  ;;  %4827 = vmatprep.mubr.msk.f32.mxu1 %vm231_vm1, %v6156_v0  ;;  %v1133_v39 = vmul.f32 %v5641_v30, %v6239_v17 }
 0x700   :  { %5219 = vmatprep.subr.bf16.mxu1 %v5218_v22  ;;  %v4876_v25 = vpop.f32.mrb[16].mxu0 }
 0x701   :  { %v1463_v27 = vmul.f32 0.35355338, %v4876_v25  ;;  %v1443_v28 = vpop.f32.mrb[17].mxu0  ;;  %v5643_v34 = vpop.eup %5642  ;;  %v218_v25 = vld [vmem:[%s6812_s5 + $0x18] sm:$0xff] }
 0x702   :  { %v1462_v32 = vmul.f32 0.35355338, %v1443_v28  ;;  %4828 = vmatmul.mubr.msk.f32.gmra.mrb[10].mxu1 %vm231_vm1, %v6154_v63  ;;  %v1134_v41 = vmul.f32 %v5643_v34, %v6244_v19 }
 0x703   :  { %5221 = vmatpush3.bf16.msra.mxu1 %v5218_v22  ;;  %4852 = vmatprep.mubr.msk.f32.mxu1 %vm117_vm0, %v1131_v29  ;;  %v1467_v61 = vadd.f32 %v1463_v27, %v6074_v31 }
 0x704   :  { %v4879_v33 = vpop.f32.mrb[18].mxu0  ;;  %v1466_v0 = vadd.f32 %v1462_v32, %v6076_v35  ;;  %4858 = vmatprep.subr.mxu1 %v217_v46 }
 0x705   :  { %v1465_v36 = vmul.f32 0.35355338, %v4879_v33  ;;  %v1453_v37 = vpop.f32.mrb[19].mxu0  ;;  %v1473_v38 = vsel %vm117_vm0, %v1467_v61, -inf }
 0x706   :  { %v1464_v40 = vmul.f32 0.35355338, %v1453_v37  ;;  %1474 = vmax.xlane.f32.xlu0 %v1473_v38  ;;  %v1470_v63 = vsel %vm117_vm0, %v1466_v0, -inf  ;;  %4853 = vmatmul.mubr.msk.f32.vlgmr.msra.gmra.mrb[12].mxu1 %vm117_vm0, %v1132_v62 }
 0x707   :  { %1471 = vmax.xlane.f32.xlu1 %v1470_v63  ;;  %4855 = vmatprep.mubr.msk.f32.mxu1 %vm117_vm0, %v1133_v39  ;;  %v1469_v31 = vadd.f32 %v1465_v36, %v6083_v44  ;;  %v5756_v39 = vld [vmem:[#allocation2 + $0x8] sm:$0xff] }
 0x708   :  { %v1468_v35 = vadd.f32 %v1464_v40, %v6081_v42  ;;  %4859 = vmatpush3.msra.mxu1 %v217_v46 }
 0x709   :  { %v1479_v43 = vsel %vm117_vm0, %v1469_v31, -inf }
 0x70a   :  { %1480 = vmax.xlane.f32.xlu0 %v1479_v43  ;;  %v1476_v45 = vsel %vm117_vm0, %v1468_v35, -inf  ;;  %4856 = vmatmul.mubr.msk.f32.gmra.mrb[14].mxu1 %vm117_vm0, %v1134_v41 }
 0x70b   :  { %1477 = vmax.xlane.f32.xlu1 %v1476_v45 }
 0x793   :  { %v1475_v47 = vpop.xlane.xlu0 %1474 }
 0x794   :  { %v1483_v44 = vsub.f32 %v1467_v61, %v1475_v47  ;;  %v1472_v48 = vpop.xlane.xlu1 %1471 }
 0x795   :  { %v1482_v42 = vsub.f32 %v1466_v0, %v1472_v48  ;;  %v4381_v0 = vld [vmem:[%s6813_s6] ss:$0 sm:$0xff] }
 0x796   :  { %v1488_v49 = vmul.f32 1.442695, %v1483_v44  ;;  %v5758_v44 = vld [vmem:[#allocation2 + $0x18] sm:$0xff] }
 0x797   :  { %v1486_v50 = vmul.f32 1.442695, %v1482_v42  ;;  %v1481_v51 = vpop.xlane.xlu0 %1480  ;;  %v5759_v42 = vld [vmem:[#allocation2 + $0x10] sm:$0xff] }
 0x798   :  { %5644 = vpow2.f32 %v1488_v49  ;;  %v1485_v52 = vsub.f32 %v1469_v31, %v1481_v51  ;;  %v1478_v53 = vpop.xlane.xlu1 %1477  ;;  %v5757_v31 = vld [vmem:[#allocation2] sm:$0xff] }
 0x799   :  { %5646 = vpow2.f32 %v1486_v50  ;;  %v1484_v54 = vsub.f32 %v1468_v35, %v1478_v53 }
 0x79a   :  { %v1492_v56 = vmul.f32 1.442695, %v1485_v52 }
 0x79b   :  { %v1490_v55 = vmul.f32 1.442695, %v1484_v54 }
 0x79c   :  { %5648 = vpow2.f32 %v1492_v56 }
 0x79d   :  { %5650 = vpow2.f32 %v1490_v55 }
 0x7a2   :  { %v5645_v57 = vpop.eup %5644 }
 0x7a3   :  { %v5647_v17 = vpop.eup %5646  ;;  %v1497_v12 = vsel %vm117_vm0, %v5645_v57, 0.0 }
 0x7a4   :  { %1498 = vadd.xlane.f32.xlu0 %v1497_v12  ;;  %v1494_v14 = vsel %vm117_vm0, %v5647_v17, 0.0 }
 0x7a5   :  { %1495 = vadd.xlane.f32.xlu1 %v1494_v14 }
 0x7a6   :  { %v5649_v19 = vpop.eup %5648 }
 0x7a7   :  { %v5651_v58 = vpop.eup %5650  ;;  %v1503_v59 = vsel %vm117_vm0, %v5649_v19, 0.0 }
 0x7a8   :  { %1504 = vadd.xlane.f32.xlu0 %v1503_v59  ;;  %v1500_v60 = vsel %vm117_vm0, %v5651_v58, 0.0 }
 0x7a9   :  { %1501 = vadd.xlane.f32.xlu1 %v1500_v60 }
 0x7ba   :  { %5507 = vrot.lane.b32.xlu1 %v6040_v15, %s6828_s30 }
 0x7be   :  { %5512 = vrot.lane.b32.xlu0 %v6050_v20, %s6828_s30 }
 0x7d9   :  { %v4854_v1 = vpop.f32.mrb[12].mxu1 }
 0x7da   :  { %v1225_v2 = vpop.f32.mrb[13].mxu1 }
 0x7db   :  { %4860 = vmatprep.mubr.msk.f32.mxu1 %vm231_vm1, %v1225_v2 }
 0x7dc   :  { %4861 = vmatmul.mubr.msk.f32.vlgmr.msra.gmra.mrb[8].mxu1 %vm231_vm1, %v4854_v1 }
 0x7dd   :  { %v4857_v3 = vpop.f32.mrb[14].mxu1 }
 0x7de   :  { %v1235_v4 = vpop.f32.mrb[15].mxu1 }
 0x7df   :  { %4863 = vmatprep.mubr.msk.f32.mxu1 %vm231_vm1, %v1235_v4 }
 0x7e0   :  { %4864 = vmatmul.mubr.msk.f32.gmra.mrb[10].mxu1 %vm231_vm1, %v4857_v3 }
 0x831   :  { %v1499_v5 = vpop.xlane.xlu0 %1498 }
 0x832   :  { %v1496_v6 = vpop.xlane.xlu1 %1495 }
 0x833   :  { %5652 = vrcp.f32 %v1496_v6 }
 0x834   :  { %5654 = vrcp.f32 %v1499_v5 }
 0x835   :  { %v1505_v7 = vpop.xlane.xlu0 %1504 }
 0x836   :  { %v1502_v15 = vpop.xlane.xlu1 %1501 }
 0x837   :  { %5656 = vrcp.f32 %v1502_v15  ;;  %v1814_v15 = vld [vmem:[%s6816_s9] sm:$0xff] }
 0x838   :  { %5658 = vrcp.f32 %v1505_v7 }
 0x839   :  { %v5513_v20 = vpop.permute.xlu0 %5512 }
 0x83a   :  { %v5508_v8 = vpop.permute.xlu1 %5507  ;;  %v5515_v9 = vunpack.i.h.bf16 %v5513_v20  ;;  %v5514_v10 = vunpack.i.l.bf16 %v5513_v20  ;;  %v1815_v20 = vld [vmem:[%s6816_s9 + $0x8] sm:$0xff] }
 0x83b   :  { %v5510_v11 = vunpack.i.h.bf16 %v5508_v8  ;;  %v5509_v13 = vunpack.i.l.bf16 %v5508_v8  ;;  %v5242_v8 = vpack.c.bf16 %v1815_v20, %v1814_v15 }
 0x83c   :  { %v5238_v22 = vpack.c.bf16 %v5515_v9, %v5514_v10  ;;  %v1816_v9 = vld [vmem:[%s6816_s9 + $0x10] sm:$0xff]  ;;  %v1817_v10 = vld [vmem:[%s6816_s9 + $0x18] sm:$0xff] }
 0x83d   :  { %v5653_v16 = vpop.eup %5652  ;;  %v5234_v18 = vpack.c.bf16 %v5510_v11, %v5509_v13  ;;  %5243 = vmatprep.subr.bf16.mxu0 %v5242_v8  ;;  %v5246_v11 = vpack.c.bf16 %v1817_v10, %v1816_v9  ;;  %v1926_v13 = vld [vmem:[%s6818_s11] sm:$0xff] }
 0x83e   :  { %v1510_v21 = vmul.f32 %v5653_v16, %v5647_v17  ;;  %v5655_v23 = vpop.eup %5654  ;;  %5245 = vmatpush3.bf16.msra.mxu0 %v5242_v8  ;;  %v1927_v16 = vld [vmem:[%s6818_s11 + $0x8] sm:$0xff] }
 0x83f   :  { %5235 = vmatprep.subr.bf16.mxu1 %v5234_v18  ;;  %v1511_v27 = vmul.f32 %v5655_v23, %v5645_v57  ;;  %5247 = vmatprep.subr.bf16.mxu0 %v5246_v11 }
 0x840   :  { %5237 = vmatpush3.bf16.msra.mxu1 %v5234_v18  ;;  %4888 = vmatprep.mubr.msk.f32.mxu1 %vm117_vm0, %v1510_v21  ;;  %v5250_v18 = vpack.c.bf16 %v1927_v16, %v1926_v13 }
 0x841   :  { %5239 = vmatprep.subr.bf16.mxu1 %v5238_v22  ;;  %v5657_v26 = vpop.eup %5656 }
 0x842   :  { %v5659_v28 = vpop.eup %5658  ;;  %v1512_v29 = vmul.f32 %v5657_v26, %v5651_v58  ;;  %5249 = vmatpush3.bf16.msra.mxu0 %v5246_v11 }
 0x843   :  { %v1513_v30 = vmul.f32 %v5659_v28, %v5649_v19  ;;  %5251 = vmatprep.subr.bf16.mxu0 %v5250_v18 }
 0x844   :  { %5241 = vmatpush3.bf16.msra.mxu1 %v5238_v22 }
 0x845   :  { %4894 = vmatprep.subr.mxu1 %v218_v25 }
 0x847   :  { %4889 = vmatmul.mubr.msk.f32.vlgmr.msra.gmra.mrb[16].mxu1 %vm117_vm0, %v1511_v27 }
 0x848   :  { %4891 = vmatprep.mubr.msk.f32.mxu1 %vm117_vm0, %v1512_v29  ;;  %4895 = vmatpush3.msra.mxu1 %v218_v25 }
 0x84b   :  { %4892 = vmatmul.mubr.msk.f32.gmra.mrb[18].mxu1 %vm117_vm0, %v1513_v30 }
 0x91a   :  { %v4890_v32 = vpop.f32.mrb[16].mxu1 }
 0x91b   :  { %v1604_v61 = vpop.f32.mrb[17].mxu1 }
 0x91c   :  { %4896 = vmatprep.mubr.msk.f32.mxu1 %vm231_vm1, %v1604_v61 }
 0x91d   :  { %4897 = vmatmul.mubr.msk.f32.vlgmr.msra.gmra.mrb[8].mxu1 %vm231_vm1, %v4890_v32 }
 0x91e   :  { %v4893_v62 = vpop.f32.mrb[18].mxu1 }
 0x91f   :  { %v1614_v33 = vpop.f32.mrb[19].mxu1 }
 0x920   :  { %4899 = vmatprep.mubr.msk.f32.mxu1 %vm231_vm1, %v1614_v33 }
 0x921   :  { %4900 = vmatmul.mubr.msk.f32.gmra.mrb[10].mxu1 %vm231_vm1, %v4893_v62 }
 0x9f0   :  { %v4898_v34 = vpop.f32.mrb[8].mxu1 }
 0x9f1   :  { %v1732_v36 = vadd.f32 %v4898_v34, %v4381_v0  ;;  %v1701_v37 = vpop.f32.mrb[9].mxu1 }
 0x9f2   :  { %v1731_v38 = vadd.f32 %v4381_v0, %v1701_v37 }
 0x9f3   :  { %v1736_v40 = vadd.f32 %v5756_v39, %v1732_v36 }
 0x9f4   :  { %v4901_v63 = vpop.f32.mrb[10].mxu1  ;;  %v1735_v35 = vadd.f32 %v5757_v31, %v1731_v38  ;;  %v4383_v38 = vld [vmem:[%s6815_s8] ss:$0 sm:$0xff]  ;;  %v1928_v31 = vld [vmem:[%s6818_s11 + $0x10] sm:$0xff] }
 0x9f5   :  { %v1734_v41 = vadd.f32 %v4901_v63, %v4381_v0  ;;  %v1711_v43 = vpop.f32.mrb[11].mxu1  ;;  %v1744_v45 = vsel %vm117_vm0, %v1736_v40, 0.0 }
 0x9f6   :  { %v1733_v46 = vadd.f32 %v4381_v0, %v1711_v43  ;;  %1745 = vadd.xlane.f32.xlu0 %v1744_v45  ;;  %v1741_v47 = vsel %vm117_vm0, %v1735_v35, 0.0  ;;  %v4382_v0 = vld [vmem:[%s6814_s7] ss:$0 sm:$0xff] }
 0x9f7   :  { %1742 = vadd.xlane.f32.xlu1 %v1741_v47  ;;  %v1738_v48 = vadd.f32 %v5758_v44, %v1734_v41 }
 0x9f8   :  { %v1737_v49 = vadd.f32 %v5759_v42, %v1733_v46 }
 0x9f9   :  { %v1750_v50 = vsel %vm117_vm0, %v1738_v48, 0.0 }
 0x9fa   :  { %1751 = vadd.xlane.f32.xlu0 %v1750_v50  ;;  %v1747_v51 = vsel %vm117_vm0, %v1737_v49, 0.0  ;;  %v1931_v50 = vld [vmem:[%s6818_s11 + $0x28] sm:$0xff] }
 0x9fb   :  { %1748 = vadd.xlane.f32.xlu1 %v1747_v51 }
 0xa83   :  { %v1746_v52 = vpop.xlane.xlu0 %1745 }
 0xa84   :  { %v1755_v53 = vmul.f32 0.03125, %v1746_v52  ;;  %v1743_v54 = vpop.xlane.xlu1 %1742 }
 0xa85   :  { %v1754_v56 = vmul.f32 0.03125, %v1743_v54  ;;  %v1932_v54 = vld [vmem:[%s6818_s11 + $0x30] sm:$0xff] }
 0xa86   :  { %v1759_v55 = vsub.f32 %v1736_v40, %v1755_v53 }
 0xa87   :  { %v1758_v57 = vsub.f32 %v1735_v35, %v1754_v56  ;;  %v1752_v17 = vpop.xlane.xlu0 %1751  ;;  %v1929_v35 = vld [vmem:[%s6818_s11 + $0x18] sm:$0xff] }
 0xa88   :  { %v1757_v12 = vmul.f32 0.03125, %v1752_v17  ;;  %v1749_v14 = vpop.xlane.xlu1 %1748  ;;  %v1763_v19 = vmul.f32 %v1759_v55, %v1759_v55  ;;  %v1933_v56 = vld [vmem:[%s6818_s11 + $0x38] sm:$0xff] }
 0xa89   :  { %v1756_v58 = vmul.f32 0.03125, %v1749_v14  ;;  %v1762_v59 = vmul.f32 %v1758_v57, %v1758_v57 }
 0xa8a   :  { %v1761_v60 = vsub.f32 %v1738_v48, %v1757_v12  ;;  %v1769_v1 = vsel %vm117_vm0, %v1763_v19, 0.0  ;;  %v5254_v48 = vpack.c.bf16 %v1929_v35, %v1928_v31 }
 0xa8b   :  { %v1760_v2 = vsub.f32 %v1737_v49, %v1756_v58  ;;  %1770 = vadd.xlane.f32.xlu0 %v1769_v1  ;;  %v1766_v3 = vsel %vm117_vm0, %v1762_v59, 0.0  ;;  %v1930_v49 = vld [vmem:[%s6818_s11 + $0x20] sm:$0xff] }
 0xa8c   :  { %1767 = vadd.xlane.f32.xlu1 %v1766_v3  ;;  %v1765_v4 = vmul.f32 %v1761_v60, %v1761_v60  ;;  %v5258_v53 = vpack.c.bf16 %v1931_v50, %v1930_v49 }
 0xa8d   :  { %v1764_v5 = vmul.f32 %v1760_v2, %v1760_v2 }
 0xa8e   :  { %v1775_v6 = vsel %vm117_vm0, %v1765_v4, 0.0 }
 0xa8f   :  { %1776 = vadd.xlane.f32.xlu0 %v1775_v6  ;;  %v1772_v7 = vsel %vm117_vm0, %v1764_v5, 0.0  ;;  %v4389_v6 = vld [vmem:[%s6819_s12] ss:$0 sm:$0xff] }
 0xa90   :  { %1773 = vadd.xlane.f32.xlu1 %v1772_v7 }
 0xb18   :  { %v1771_v21 = vpop.xlane.xlu0 %1770 }
 0xb19   :  { %v1779_v22 = vmul.f32 0.03125, %v1771_v21  ;;  %v1768_v23 = vpop.xlane.xlu1 %1767 }
 0xb1a   :  { %v1778_v25 = vmul.f32 0.03125, %v1768_v23 }
 0xb1b   :  { %v1783_v26 = vadd.f32 1e-05, %v1779_v22 }
 0xb1c   :  { %v1782_v27 = vadd.f32 1e-05, %v1778_v25  ;;  %v1777_v28 = vpop.xlane.xlu0 %1776 }
 0xb1d   :  { %5660 = vrsqrt.f32 %v1783_v26  ;;  %v1781_v29 = vmul.f32 0.03125, %v1777_v28  ;;  %v1774_v30 = vpop.xlane.xlu1 %1773 }
 0xb1e   :  { %5662 = vrsqrt.f32 %v1782_v27  ;;  %v1780_v32 = vmul.f32 0.03125, %v1774_v30 }
 0xb1f   :  { %v1785_v61 = vadd.f32 1e-05, %v1781_v29 }
 0xb20   :  { %v1784_v62 = vadd.f32 1e-05, %v1780_v32 }
 0xb21   :  { %5664 = vrsqrt.f32 %v1785_v61 }
 0xb22   :  { %5666 = vrsqrt.f32 %v1784_v62 }
 0xb27   :  { %v5661_v33 = vpop.eup %5660 }
 0xb28   :  { %v5663_v34 = vpop.eup %5662  ;;  %v1791_v36 = vmul.f32 %v5661_v33, %v1759_v55  ;;  %v5262_v55 = vpack.c.bf16 %v1933_v56, %v1932_v54 }
 0xb29   :  { %v1790_v37 = vmul.f32 %v5663_v34, %v1758_v57  ;;  %v4384_v57 = vld [vmem:[#allocation7] ss:$0 sm:$0xff] }
 0xb2a   :  { %v1801_v39 = vmul.f32 %v4382_v0, %v1791_v36 }
 0xb2b   :  { %v5665_v40 = vpop.eup %5664  ;;  %v1800_v63 = vmul.f32 %v4382_v0, %v1790_v37 }
 0xb2c   :  { %v5667_v41 = vpop.eup %5666  ;;  %v1793_v43 = vmul.f32 %v5665_v40, %v1761_v60  ;;  %v1811_v47 = vadd.f32 %v4383_v38, %v1801_v39 }
 0xb2d   :  { %v1810_v45 = vadd.f32 %v4383_v38, %v1800_v63  ;;  %v1792_v46 = vmul.f32 %v5667_v41, %v1760_v2 }
 0xb2e   :  { %v1803_v44 = vmul.f32 %v4382_v0, %v1793_v43 }
 0xb2f   :  { %4910 = vmatprep.mubr.msk.f32.mxu0 %vm117_vm0, %v1810_v45  ;;  %v1802_v42 = vmul.f32 %v4382_v0, %v1792_v46  ;;  %v4396_v46 = vld [vmem:[%s6810_s3 + $0x20] sm:$0xff] }
 0xb30   :  { %4911 = vmatmul.mubr.msk.f32.vlgmr.msra.gmra.mrb[20].mxu0 %vm117_vm0, %v1811_v47  ;;  %v1813_v52 = vadd.f32 %v4383_v38, %v1803_v44 }
 0xb31   :  { %v1812_v51 = vadd.f32 %v4383_v38, %v1802_v42  ;;  %5253 = vmatpush3.bf16.msra.mxu0 %v5250_v18  ;;  %v4399_v42 = vld [vmem:[%s6810_s3 + $0x38] sm:$0xff] }
 0xb32   :  { %5255 = vmatprep.subr.bf16.mxu0 %v5254_v48 }
 0xb33   :  { %4913 = vmatprep.mubr.msk.f32.mxu0 %vm117_vm0, %v1812_v51 }
 0xb34   :  { %4914 = vmatmul.mubr.msk.f32.gmra.mrb[22].mxu0 %vm117_vm0, %v1813_v52 }
 0xb35   :  { %5257 = vmatpush3.bf16.msra.mxu0 %v5254_v48  ;;  %v4398_v48 = vld [vmem:[%s6810_s3 + $0x30] sm:$0xff] }
 0xb36   :  { %5259 = vmatprep.subr.bf16.mxu0 %v5258_v53  ;;  %v5270_v49 = vpack.c.bf16 %v4399_v42, %v4398_v48 }
 0xb39   :  { %5261 = vmatpush3.bf16.msra.mxu0 %v5258_v53 }
 0xb3a   :  { %5263 = vmatprep.subr.bf16.mxu0 %v5262_v55 }
 0xb3d   :  { %5265 = vmatpush3.bf16.msra.mxu0 %v5262_v55 }
 0xc03   :  { %v4912_v17 = vpop.f32.mrb[20].mxu0 }
 0xc04   :  { %v1909_v12 = vadd.f32 %v4912_v17, %v4384_v57  ;;  %v1903_v14 = vpop.f32.mrb[21].mxu0 }
 0xc05   :  { %v1904_v19 = vadd.f32 %v4384_v57, %v1903_v14 }
 0xc06   :  { %v1923_v60 = vmax.f32 %v1909_v12, 0.0 }
 0xc07   :  { %v1922_v58 = vmax.f32 %v1904_v19, 0.0  ;;  %v4915_v59 = vpop.f32.mrb[22].mxu0 }
 0xc08   :  { %v1919_v1 = vadd.f32 %v4915_v59, %v4384_v57  ;;  %v1913_v2 = vpop.f32.mrb[23].mxu0  ;;  %v4394_v59 = vld [vmem:[%s6820_s13] ss:$0 sm:$0xff] }
 0xc09   :  { %v1914_v3 = vadd.f32 %v4384_v57, %v1913_v2  ;;  %4932 = vmatprep.mubr.msk.f32.mxu0 %vm1941_vm3, %v1922_v58 }
 0xc0a   :  { %4933 = vmatmul.mubr.msk.f32.vlgmr.msra.gmra.mrb[24].mxu0 %vm1941_vm3, %v1923_v60  ;;  %v1925_v5 = vmax.f32 %v1919_v1, 0.0 }
 0xc0b   :  { %v1924_v4 = vmax.f32 %v1914_v3, 0.0  ;;  %v4395_v3 = vld [vmem:[%s6821_s14] ss:$0 sm:$0xff] }
 0xc0d   :  { %4935 = vmatprep.mubr.msk.f32.mxu0 %vm1941_vm3, %v1924_v4 }
 0xc0e   :  { %4936 = vmatmul.mubr.msk.f32.gmra.mrb[26].mxu0 %vm1941_vm3, %v1925_v5 }
 0xcdd   :  { %v4934_v7 = vpop.f32.mrb[24].mxu0 }
 0xcde   :  { %v2026_v15 = vadd.f32 %v4934_v7, %v4389_v6  ;;  %v2020_v20 = vpop.f32.mrb[25].mxu0 }
 0xcdf   :  { %v2021_v8 = vadd.f32 %v4389_v6, %v2020_v20 }
 0xce0   :  { %v2040_v9 = vadd.f32 %v2026_v15, %v1811_v47  ;;  %v4397_v47 = vld [vmem:[%s6810_s3 + $0x28] sm:$0xff] }
 0xce1   :  { %v4937_v10 = vpop.f32.mrb[26].mxu0  ;;  %v2039_v11 = vadd.f32 %v2021_v8, %v1810_v45  ;;  %v5266_v44 = vpack.c.bf16 %v4397_v47, %v4396_v46 }
 0xce2   :  { %v2036_v13 = vadd.f32 %v4937_v10, %v4389_v6  ;;  %v2030_v16 = vpop.f32.mrb[27].mxu0  ;;  %v2048_v18 = vsel %vm117_vm0, %v2040_v9, 0.0 }
 0xce3   :  { %v2031_v21 = vadd.f32 %v4389_v6, %v2030_v16  ;;  %2049 = vadd.xlane.f32.xlu0 %v2048_v18  ;;  %v2045_v22 = vsel %vm117_vm0, %v2039_v11, 0.0  ;;  %5267 = vmatprep.subr.bf16.mxu1 %v5266_v44  ;;  %v4401_v18 = vld [vmem:[%s6811_s4 + $0x1] ss:$0 sm:$0xff] }
 0xce4   :  { %2046 = vadd.xlane.f32.xlu1 %v2045_v22  ;;  %v2042_v23 = vadd.f32 %v2036_v13, %v1813_v52  ;;  %5269 = vmatpush3.bf16.msra.mxu1 %v5266_v44 }
 0xce5   :  { %v2041_v25 = vadd.f32 %v2031_v21, %v1812_v51  ;;  %5271 = vmatprep.subr.bf16.mxu1 %v5270_v49 }
 0xce6   :  { %v2054_v26 = vsel %vm117_vm0, %v2042_v23, 0.0 }
 0xce7   :  { %2055 = vadd.xlane.f32.xlu0 %v2054_v26  ;;  %v2051_v27 = vsel %vm117_vm0, %v2041_v25, 0.0 }
 0xce8   :  { %2052 = vadd.xlane.f32.xlu1 %v2051_v27  ;;  %5273 = vmatpush3.bf16.msra.mxu1 %v5270_v49  ;;  %v6463_v49 = vld [vmem:[#allocation5 + $0x18] sm:$0xff] }
 0xd70   :  { %v2050_v28 = vpop.xlane.xlu0 %2049 }
 0xd71   :  { %v2058_v29 = vmul.f32 0.03125, %v2050_v28  ;;  %v2047_v30 = vpop.xlane.xlu1 %2046 }
 0xd72   :  { %v2057_v32 = vmul.f32 0.03125, %v2047_v30 }
 0xd73   :  { %v2062_v61 = vsub.f32 %v2040_v9, %v2058_v29 }
 0xd74   :  { %v2061_v62 = vsub.f32 %v2039_v11, %v2057_v32  ;;  %v2056_v33 = vpop.xlane.xlu0 %2055 }
 0xd75   :  { %v2060_v0 = vmul.f32 0.03125, %v2056_v33  ;;  %v2053_v34 = vpop.xlane.xlu1 %2052  ;;  %v2066_v36 = vmul.f32 %v2062_v61, %v2062_v61 }
 0xd76   :  { %v2059_v37 = vmul.f32 0.03125, %v2053_v34  ;;  %v2065_v38 = vmul.f32 %v2061_v62, %v2061_v62 }
 0xd77   :  { %v2064_v39 = vsub.f32 %v2042_v23, %v2060_v0  ;;  %v2072_v40 = vsel %vm117_vm0, %v2066_v36, 0.0 }
 0xd78   :  { %v2063_v63 = vsub.f32 %v2041_v25, %v2059_v37  ;;  %2073 = vadd.xlane.f32.xlu0 %v2072_v40  ;;  %v2069_v31 = vsel %vm117_vm0, %v2065_v38, 0.0 }
 0xd79   :  { %2070 = vadd.xlane.f32.xlu1 %v2069_v31  ;;  %v2068_v35 = vmul.f32 %v2064_v39, %v2064_v39 }
 0xd7a   :  { %v2067_v41 = vmul.f32 %v2063_v63, %v2063_v63 }
 0xd7b   :  { %v2078_v43 = vsel %vm117_vm0, %v2068_v35, 0.0  ;;  %v6455_v35 = vld [vmem:[#allocation5 + $0x8] sm:$0xff] }
 0xd7c   :  { %2079 = vadd.xlane.f32.xlu0 %v2078_v43  ;;  %v2075_v45 = vsel %vm117_vm0, %v2067_v41, 0.0 }
 0xd7d   :  { %2076 = vadd.xlane.f32.xlu1 %v2075_v45  ;;  %v6458_v45 = vld [vmem:[#allocation5] sm:$0xff] }
 0xe05   :  { %v2074_v50 = vpop.xlane.xlu0 %2073 }
 0xe06   :  { %v2082_v51 = vmul.f32 0.03125, %v2074_v50  ;;  %v2071_v52 = vpop.xlane.xlu1 %2070 }
 0xe07   :  { %v2081_v53 = vmul.f32 0.03125, %v2071_v52 }
 0xe08   :  { %v2086_v54 = vadd.f32 1e-05, %v2082_v51 }
 0xe09   :  { %v2085_v56 = vadd.f32 1e-05, %v2081_v53  ;;  %v2080_v55 = vpop.xlane.xlu0 %2079  ;;  %v6469_v53 = vld [vmem:[#allocation5 + $0x10] sm:$0xff] }
 0xe0a   :  { %5668 = vrsqrt.f32 %v2086_v54  ;;  %v2084_v57 = vmul.f32 0.03125, %v2080_v55  ;;  %v2077_v17 = vpop.xlane.xlu1 %2076 }
 0xe0b   :  { %5670 = vrsqrt.f32 %v2085_v56  ;;  %v2083_v12 = vmul.f32 0.03125, %v2077_v17 }
 0xe0c   :  { %v2088_v14 = vadd.f32 1e-05, %v2084_v57 }
 0xe0d   :  { %v2087_v19 = vadd.f32 1e-05, %v2083_v12 }
 0xe0e   :  { %5672 = vrsqrt.f32 %v2088_v14 }
 0xe0f   :  { %5674 = vrsqrt.f32 %v2087_v19 }
 0xe14   :  { %v5669_v58 = vpop.eup %5668 }
 0xe15   :  { %v5671_v60 = vpop.eup %5670  ;;  %v2094_v1 = vmul.f32 %v5669_v58, %v2062_v61 }
 0xe16   :  { %v2093_v2 = vmul.f32 %v5671_v60, %v2061_v62 }
 0xe17   :  { %v2104_v4 = vmul.f32 %v4394_v59, %v2094_v1 }
 0xe18   :  { %v5673_v5 = vpop.eup %5672  ;;  %v2103_v6 = vmul.f32 %v4394_v59, %v2093_v2 }
 0xe19   :  { %v5675_v7 = vpop.eup %5674  ;;  %v2096_v15 = vmul.f32 %v5673_v5, %v2064_v39  ;;  %v6402_v9 = vadd.f32 %v4395_v3, %v2104_v4 }
 0xe1a   :  { %v6400_v20 = vadd.f32 %v4395_v3, %v2103_v6  ;;  %v2095_v8 = vmul.f32 %v5675_v7, %v2063_v63 }
 0xe1b   :  { %v2106_v10 = vmul.f32 %v4394_v59, %v2096_v15 }
 0xe1c   :  { %4946 = vmatprep.mubr.msk.f32.mxu1 %vm117_vm0, %v6400_v20  ;;  %v2105_v11 = vmul.f32 %v4394_v59, %v2095_v8 }
 0xe1d   :  { %4947 = vmatmul.mubr.msk.f32.vlgmr.msra.gmra.mrb[20].mxu1 %vm117_vm0, %v6402_v9  ;;  %v6410_v16 = vadd.f32 %v4395_v3, %v2106_v10 }
 0xe1e   :  { %v6408_v13 = vadd.f32 %v4395_v3, %v2105_v11 }
 0xe20   :  { %4949 = vmatprep.mubr.msk.f32.mxu1 %vm117_vm0, %v6408_v13 }
 0xe21   :  { %4950 = vmatmul.mubr.msk.f32.gmra.mrb[22].mxu1 %vm117_vm0, %v6410_v16 }
 0xef0   :  { %v4948_v21 = vpop.f32.mrb[20].mxu1 }
 0xef1   :  { %v6419_v22 = vadd.f32 %v4948_v21, %v4401_v18  ;;  %v2208_v23 = vpop.f32.mrb[21].mxu1 }
 0xef2   :  { %v6421_v25 = vadd.f32 %v4401_v18, %v2208_v23 }
 0xef4   :  { %v4951_v26 = vpop.f32.mrb[22].mxu1  ;;  %4960 = vmatprep.mubr.msk.f32.mxu1 %vm231_vm1, %v6421_v25  ;;  %v6427_v27 = vpack.i.bf16 %v6419_v22, %v6421_v25 }
 0xef5   :  { %v6429_v28 = vadd.f32 %v4951_v26, %v4401_v18  ;;  %v2218_v29 = vpop.f32.mrb[23].mxu1 }
 0xef6   :  { %v6431_v30 = vadd.f32 %v4401_v18, %v2218_v29  ;;  %5517 = vrot.lane.b32.xlu1 %v6427_v27, %s5865_s1 }
 0xef8   :  { %v6437_v32 = vpack.i.bf16 %v6429_v28, %v6431_v30 }
 0xefa   :  { %5522 = vrot.lane.b32.xlu0 %v6437_v32, %s5865_s1 }
 0xf68   :  { %v5518_v61 = vpop.permute.xlu1 %5517 }
 0xf69   :  { %v5520_v62 = vunpack.i.h.bf16 %v5518_v61  ;;  %v5519_v33 = vunpack.i.l.bf16 %v5518_v61 }
 0xf6b   :  { %v5274_v0 = vpack.c.bf16 %v5520_v62, %v5519_v33 }
 0xf6c   :  { %v5523_v34 = vpop.permute.xlu0 %5522 }
 0xf6d   :  { %v5525_v36 = vunpack.i.h.bf16 %v5523_v34  ;;  %v5524_v37 = vunpack.i.l.bf16 %v5523_v34  ;;  %5276 = vmatprep.subr.msk.bf16.mxu1 %vm6056_vm2, %v5274_v0 }
 0xf6e   :  { %5279 = vmatpush3.bf16.xpose.msk.msra.mxu1 %vm6056_vm2, %v5274_v0 }
 0xf6f   :  { %v5280_v38 = vpack.c.bf16 %v5525_v36, %v5524_v37 }
 0xf71   :  { %5282 = vmatprep.subr.msk.bf16.mxu1 %vm6056_vm2, %v5280_v38 }
 0xf76   :  { %5285 = vmatpush3.bf16.xpose.msk.msra.mxu1 %vm6056_vm2, %v5280_v38 }
 0xf7d   :  { %4961 = vmatmul.mubr.msk.f32.vlgmr.msra.gmra.mrb[24].mxu1 %vm231_vm1, %v6419_v22 }
 0xf7e   :  { %4963 = vmatprep.mubr.msk.f32.mxu1 %vm231_vm1, %v6431_v30 }
 0xf81   :  { %4964 = vmatmul.mubr.msk.f32.gmra.mrb[26].mxu1 %vm231_vm1, %v6429_v28 }
0x1050   :  { %v4962_v39 = vpop.f32.mrb[24].mxu1 }
0x1051   :  { %v2346_v40 = vmul.f32 0.35355338, %v4962_v39  ;;  %v2326_v63 = vpop.f32.mrb[25].mxu1 }
0x1052   :  { %v2345_v31 = vmul.f32 0.35355338, %v2326_v63 }
0x1053   :  { %v2350_v41 = vadd.f32 %v6455_v35, %v2346_v40 }
0x1054   :  { %v4965_v43 = vpop.f32.mrb[26].mxu1  ;;  %v2349_v46 = vadd.f32 %v6458_v45, %v2345_v31 }
0x1055   :  { %v2348_v47 = vmul.f32 0.35355338, %v4965_v43  ;;  %v2336_v44 = vpop.f32.mrb[27].mxu1  ;;  %v2356_v48 = vsel %vm117_vm0, %v2350_v41, -inf }
0x1056   :  { %2357 = vmax.xlane.f32.xlu0 %v2356_v48  ;;  %v2353_v42 = vsel %vm117_vm0, %v2349_v46, -inf  ;;  %v2347_v52 = vmul.f32 0.35355338, %v2336_v44 }
0x1057   :  { %2354 = vmax.xlane.f32.xlu1 %v2353_v42  ;;  %v2352_v50 = vadd.f32 %v6463_v49, %v2348_v47 }
0x1058   :  { %v2351_v54 = vadd.f32 %v6469_v53, %v2347_v52 }
0x1059   :  { %v2362_v51 = vsel %vm117_vm0, %v2352_v50, -inf }
0x105a   :  { %2363 = vmax.xlane.f32.xlu0 %v2362_v51  ;;  %v2359_v56 = vsel %vm117_vm0, %v2351_v54, -inf }
0x1068   :  { %5527 = vrot.lane.b32.xlu1 %v6427_v27, %s5866_s20 }
0x108c   :  { %2360 = vmax.xlane.f32.xlu1 %v2359_v56 }
0x109d   :  { %5537 = vrot.lane.b32.xlu1 %v6427_v27, %s5867_s21 }
0x10a1   :  { %5542 = vrot.lane.b32.xlu1 %v6437_v32, %s5867_s21 }
0x10e3   :  { %v2358_v55 = vpop.xlane.xlu0 %2357 }
0x10e4   :  { %v2366_v57 = vsub.f32 %v2350_v41, %v2358_v55  ;;  %v2355_v17 = vpop.xlane.xlu1 %2354 }
0x10e5   :  { %v2365_v12 = vsub.f32 %v2349_v46, %v2355_v17 }
0x10e6   :  { %v2371_v14 = vmul.f32 1.442695, %v2366_v57 }
0x10e7   :  { %v2369_v19 = vmul.f32 1.442695, %v2365_v12  ;;  %v2364_v6 = vpop.xlane.xlu0 %2363 }
0x10e8   :  { %5676 = vpow2.f32 %v2371_v14  ;;  %v5528_v58 = vpop.permute.xlu1 %5527  ;;  %v2368_v7 = vsub.f32 %v2352_v50, %v2364_v6 }
0x10e9   :  { %5678 = vpow2.f32 %v2369_v19  ;;  %v5530_v59 = vunpack.i.h.bf16 %v5528_v58  ;;  %v5529_v60 = vunpack.i.l.bf16 %v5528_v58 }
0x10ea   :  { %v2375_v15 = vmul.f32 1.442695, %v2368_v7 }
0x10eb   :  { %v5286_v1 = vpack.c.bf16 %v5530_v59, %v5529_v60 }
0x10ec   :  { %5680 = vpow2.f32 %v2375_v15 }
0x10ed   :  { %5287 = vmatprep.subr.bf16.mxu0 %v5286_v1 }
0x10ee   :  { %5289 = vmatpush3.bf16.msra.mxu0 %v5286_v1 }
0x10f2   :  { %v5677_v2 = vpop.eup %5676 }
0x10f3   :  { %v5679_v3 = vpop.eup %5678  ;;  %v2380_v4 = vsel %vm117_vm0, %v5677_v2, 0.0 }
0x10f4   :  { %2381 = vadd.xlane.f32.xlu0 %v2380_v4  ;;  %v2377_v5 = vsel %vm117_vm0, %v5679_v3, 0.0 }
0x10f5   :  { %2378 = vadd.xlane.f32.xlu1 %v2377_v5 }
0x10f6   :  { %v5681_v18 = vpop.eup %5680 }
0x10f7   :  { %v2386_v23 = vsel %vm117_vm0, %v5681_v18, 0.0 }
0x1106   :  { %2508 = vrot.lane.b32.xlu1 %v6419_v22, %s5868_s27 }
0x110a   :  { %5532 = vrot.lane.b32.xlu0 %v6437_v32, %s5866_s20  ;;  %s6839_s20 = smov 48  }
0x1119   :  { %v2361_v8 = vpop.xlane.xlu1 %2360 }
0x111a   :  { %v2367_v10 = vsub.f32 %v2351_v54, %v2361_v8 }
0x111c   :  { %v2373_v11 = vmul.f32 1.442695, %v2367_v10 }
0x111d   :  { %v5538_v29 = vpop.permute.xlu1 %5537 }
0x111e   :  { %5682 = vpow2.f32 %v2373_v11  ;;  %v5540_v34 = vunpack.i.h.bf16 %v5538_v29  ;;  %v5539_v36 = vunpack.i.l.bf16 %v5538_v29 }
0x1120   :  { %v5294_v40 = vpack.c.bf16 %v5540_v34, %v5539_v36 }
0x1121   :  { %v5543_v61 = vpop.permute.xlu1 %5542 }
0x1122   :  { %v5545_v43 = vunpack.i.h.bf16 %v5543_v61  ;;  %v5544_v46 = vunpack.i.l.bf16 %v5543_v61 }
0x1124   :  { %v5300_v44 = vpack.c.bf16 %v5545_v43, %v5544_v46 }
0x1128   :  { %v5683_v21 = vpop.eup %5682 }
0x1129   :  { %2387 = vadd.xlane.f32.xlu0 %v2386_v23  ;;  %v2383_v26 = vsel %vm117_vm0, %v5683_v21, 0.0 }
0x112a   :  { %2384 = vadd.xlane.f32.xlu1 %v2383_v26 }
0x113b   :  { %2512 = vrot.lane.b32.xlu1 %v6429_v28, %s5868_s27 }
0x113f   :  { %2506 = vrot.lane.b32.xlu0 %v6421_v25, %s5868_s27  ;;  %5552 = vrot.lane.b32.xlu1 %v6437_v32, %s5869_s22 }
0x1143   :  { %2510 = vrot.lane.b32.xlu0 %v6431_v30, %s5868_s27  ;;  %2980 = vrot.lane.b32.xlu1 %v6419_v22, %s5870_s23 }
0x1147   :  { %5547 = vrot.lane.b32.xlu0 %v6427_v27, %s5869_s22  ;;  %2984 = vrot.lane.b32.xlu1 %v6429_v28, %s5870_s23 }
0x114b   :  { %2978 = vrot.lane.b32.xlu0 %v6421_v25, %s5870_s23 }
0x114f   :  { %2982 = vrot.lane.b32.xlu0 %v6431_v30, %s5870_s23 }
0x1181   :  { %v2382_v62 = vpop.xlane.xlu0 %2381 }
0x1182   :  { %5684 = vrcp.f32 %v2382_v62  ;;  %v2379_v33 = vpop.xlane.xlu1 %2378 }
0x1183   :  { %5686 = vrcp.f32 %v2379_v33 }
0x1185   :  { %v5533_v0 = vpop.permute.xlu0 %5532 }
0x1186   :  { %v5535_v37 = vunpack.i.h.bf16 %v5533_v0  ;;  %v5534_v38 = vunpack.i.l.bf16 %v5533_v0  ;;  %v2509_v48 = vpop.permute.xlu1 %2508 }
0x1188   :  { %v5290_v39 = vpack.c.bf16 %v5535_v37, %v5534_v38 }
0x118a   :  { %5291 = vmatprep.subr.bf16.mxu0 %v5290_v39 }
0x118b   :  { %5293 = vmatpush3.bf16.msra.mxu0 %v5290_v39 }
0x118c   :  { %v5685_v63 = vpop.eup %5684  ;;  %5296 = vmatprep.subr.msk.bf16.mxu0 %vm6056_vm2, %v5294_v40 }
0x118d   :  { %v5687_v31 = vpop.eup %5686  ;;  %v2394_v47 = vmul.f32 %v5685_v63, %v5677_v2 }
0x118e   :  { %v2393_v41 = vmul.f32 %v5687_v31, %v5679_v3 }
0x1190   :  { %4974 = vmatprep.mubr.msk.f32.mxu0 %vm117_vm0, %v2393_v41 }
0x1191   :  { %4975 = vmatmul.mubr.msk.f32.vlgmr.msra.gmra.mrb[28].mxu0 %vm117_vm0, %v2394_v47 }
0x1194   :  { %5299 = vmatpush3.bf16.xpose.msk.msra.mxu0 %vm6056_vm2, %v5294_v40 }
0x1195   :  { %5302 = vmatprep.subr.msk.bf16.mxu0 %vm6056_vm2, %v5300_v44 }
0x119c   :  { %5305 = vmatpush3.bf16.xpose.msk.msra.mxu0 %vm6056_vm2, %v5300_v44 }
0x11b6   :  { %v2388_v42 = vpop.xlane.xlu0 %2387 }
0x11b7   :  { %5688 = vrcp.f32 %v2388_v42  ;;  %v2385_v50 = vpop.xlane.xlu1 %2384 }
0x11b8   :  { %5690 = vrcp.f32 %v2385_v50 }
0x11ba   :  { %v2507_v51 = vpop.permute.xlu0 %2506 }
0x11bb   :  { %v2513_v52 = vpop.permute.xlu1 %2512 }
0x11be   :  { %v2511_v54 = vpop.permute.xlu0 %2510 }
0x11bf   :  { %v5553_v17 = vpop.permute.xlu1 %5552 }
0x11c0   :  { %v5555_v60 = vunpack.i.h.bf16 %v5553_v17  ;;  %v5554_v1 = vunpack.i.l.bf16 %v5553_v17 }
0x11c1   :  { %v5689_v56 = vpop.eup %5688 }
0x11c2   :  { %v5691_v55 = vpop.eup %5690  ;;  %v5548_v57 = vpop.permute.xlu0 %5547  ;;  %v2396_v58 = vmul.f32 %v5689_v56, %v5681_v18  ;;  %v5320_v2 = vpack.c.bf16 %v5555_v60, %v5554_v1 }
0x11c3   :  { %v5550_v12 = vunpack.i.h.bf16 %v5548_v57  ;;  %v5549_v14 = vunpack.i.l.bf16 %v5548_v57  ;;  %v2395_v19 = vmul.f32 %v5691_v55, %v5683_v21  ;;  %v2981_v4 = vpop.permute.xlu1 %2980 }
0x11c5   :  { %v5314_v59 = vpack.c.bf16 %v5550_v12, %v5549_v14  ;;  %4977 = vmatprep.mubr.msk.f32.mxu0 %vm117_vm0, %v2395_v19 }
0x11c6   :  { %4978 = vmatmul.mubr.msk.f32.gmra.mrb[30].mxu0 %vm117_vm0, %v2396_v58  ;;  %v2979_v3 = vpop.permute.xlu0 %2978 }
0x11c7   :  { %4988 = vmatprep.mubr.msk.f32.mxu0 %vm231_vm1, %v2507_v51  ;;  %5316 = vmatprep.subr.msk.bf16.mxu0 %vm6056_vm2, %v5314_v59  ;;  %v2985_v6 = vpop.permute.xlu1 %2984 }
0x11ca   :  { %4989 = vmatmul.mubr.msk.f32.vlgmr.msra.gmra.mrb[32].mxu0 %vm231_vm1, %v2509_v48  ;;  %v2983_v5 = vpop.permute.xlu0 %2982 }
0x11cb   :  { %5319 = vmatpush3.bf16.xpose.msk.msra.mxu0 %vm6056_vm2, %v5314_v59  ;;  %4991 = vmatprep.mubr.msk.f32.mxu0 %vm231_vm1, %v2511_v54 }
0x11cc   :  { %5322 = vmatprep.subr.msk.bf16.mxu0 %vm6056_vm2, %v5320_v2 }
0x11ce   :  { %4992 = vmatmul.mubr.msk.f32.gmra.mrb[34].mxu0 %vm231_vm1, %v2513_v52 }
0x11cf   :  { %5032 = vmatprep.mubr.msk.f32.mxu0 %vm231_vm1, %v2979_v3 }
0x11d3   :  { %5325 = vmatpush3.bf16.xpose.msk.msra.mxu0 %vm6056_vm2, %v5320_v2 }
0x11da   :  { %5033 = vmatmul.mubr.msk.f32.vlgmr.msra.gmra.mrb[36].mxu0 %vm231_vm1, %v2981_v4 }
0x11db   :  { %5035 = vmatprep.mubr.msk.f32.mxu0 %vm231_vm1, %v2983_v5 }
0x11de   :  { %5036 = vmatmul.mubr.msk.f32.gmra.mrb[38].mxu0 %vm231_vm1, %v2985_v6 }
0x1264   :  { %v6531_v7 = vpop.f32.mrb[28].mxu0 }
0x1265   :  { %v6533_v15 = vpop.f32.mrb[29].mxu0 }
0x1299   :  { %v6535_v8 = vpop.f32.mrb[30].mxu0 }
0x129a   :  { %v6537_v10 = vpop.f32.mrb[31].mxu0 }
0x129d   :  { %v4990_v11 = vpop.f32.mrb[32].mxu0 }
0x129e   :  { %v2624_v18 = vmul.f32 0.35355338, %v4990_v11  ;;  %v2604_v21 = vpop.f32.mrb[33].mxu0 }
0x129f   :  { %v2623_v23 = vmul.f32 0.35355338, %v2604_v21 }
0x12a0   :  { %v2628_v26 = vadd.f32 %v6455_v35, %v2624_v18 }
0x12a1   :  { %v4993_v29 = vpop.f32.mrb[34].mxu0  ;;  %v2627_v61 = vadd.f32 %v6458_v45, %v2623_v23 }
0x12a2   :  { %v2614_v62 = vpop.f32.mrb[35].mxu0  ;;  %v2634_v33 = vsel %vm117_vm0, %v2628_v26, -inf  ;;  %v2626_v0 = vmul.f32 0.35355338, %v4993_v29 }
0x12a3   :  { %v2625_v34 = vmul.f32 0.35355338, %v2614_v62  ;;  %2635 = vmax.xlane.f32.xlu1 %v2634_v33  ;;  %v2631_v36 = vsel %vm117_vm0, %v2627_v61, -inf }
0x12a4   :  { %2632 = vmax.xlane.f32.xlu0 %v2631_v36  ;;  %v2630_v39 = vadd.f32 %v6463_v49, %v2626_v0 }
0x12a5   :  { %v2629_v37 = vadd.f32 %v6469_v53, %v2625_v34 }
0x12a6   :  { %v2640_v40 = vsel %vm117_vm0, %v2630_v39, -inf }
0x12a7   :  { %v2637_v38 = vsel %vm117_vm0, %v2629_v37, -inf }
0x12a8   :  { %2638 = vmax.xlane.f32.xlu0 %v2637_v38 }
0x12ac   :  { %2641 = vmax.xlane.f32.xlu0 %v2640_v40 }
0x12ad   :  { %v5034_v63 = vpop.f32.mrb[36].mxu0 }
0x12ae   :  { %v3076_v31 = vpop.f32.mrb[37].mxu0  ;;  %v3096_v3 = vmul.f32 0.35355338, %v5034_v63 }
0x12af   :  { %v3095_v2 = vmul.f32 0.35355338, %v3076_v31 }
0x12b0   :  { %v6580_v6 = vadd.f32 %v6455_v35, %v3096_v3 }
0x12b1   :  { %v5037_v41 = vpop.f32.mrb[38].mxu0  ;;  %v6577_v4 = vadd.f32 %v6458_v45, %v3095_v2 }
0x12b2   :  { %v3086_v43 = vpop.f32.mrb[39].mxu0  ;;  %v3098_v11 = vmul.f32 0.35355338, %v5037_v41 }
0x12b3   :  { %v3097_v5 = vmul.f32 0.35355338, %v3086_v43 }
0x1330   :  { %v2636_v46 = vpop.xlane.xlu1 %2635 }
0x1331   :  { %v2644_v47 = vsub.f32 %v2628_v26, %v2636_v46  ;;  %v2633_v44 = vpop.xlane.xlu0 %2632 }
0x1332   :  { %v2643_v48 = vsub.f32 %v2627_v61, %v2633_v44 }
0x1333   :  { %v2649_v42 = vmul.f32 1.442695, %v2644_v47 }
0x1334   :  { %v2647_v50 = vmul.f32 1.442695, %v2643_v48 }
0x1335   :  { %5692 = vpow2.f32 %v2649_v42  ;;  %v2639_v51 = vpop.xlane.xlu0 %2638 }
0x1336   :  { %5694 = vpow2.f32 %v2647_v50  ;;  %v2645_v52 = vsub.f32 %v2629_v37, %v2639_v51 }
0x1338   :  { %v2651_v54 = vmul.f32 1.442695, %v2645_v52 }
0x1339   :  { %v2642_v56 = vpop.xlane.xlu0 %2641 }
0x133a   :  { %5696 = vpow2.f32 %v2651_v54  ;;  %v2646_v55 = vsub.f32 %v2630_v39, %v2642_v56 }
0x133c   :  { %v2653_v57 = vmul.f32 1.442695, %v2646_v55 }
0x133e   :  { %5698 = vpow2.f32 %v2653_v57 }
0x133f   :  { %v6547_v17 = vpop.eup %5692 }
0x1340   :  { %v5695_v12 = vpop.eup %5694  ;;  %v2658_v14 = vsel %vm117_vm0, %v6547_v17, 0.0 }
0x1341   :  { %2659 = vadd.xlane.f32.xlu0 %v2658_v14  ;;  %v2655_v19 = vsel %vm117_vm0, %v5695_v12, 0.0 }
0x1342   :  { %2656 = vadd.xlane.f32.xlu1 %v2655_v19 }
0x1344   :  { %v6552_v58 = vpop.eup %5696 }
0x1345   :  { %v2661_v59 = vsel %vm117_vm0, %v6552_v58, 0.0 }
0x1346   :  { %2662 = vadd.xlane.f32.xlu1 %v2661_v59 }
0x1348   :  { %v6556_v60 = vpop.eup %5698 }
0x1349   :  { %v2664_v1 = vsel %vm117_vm0, %v6556_v60, 0.0 }
0x134a   :  { %2665 = vadd.xlane.f32.xlu0 %v2664_v1 }
0x1357   :  { %5557 = vrot.lane.b32.xlu1 %v6427_v27, %s5871_s18 }
0x135b   :  { %5567 = vrot.lane.b32.xlu1 %v6427_v27, %s5872_s25 }
0x135f   :  { %5572 = vrot.lane.b32.xlu1 %v6437_v32, %s5872_s25 }
0x1360   :  { %5562 = vrot.lane.b32.xlu0 %v6437_v32, %s5871_s18  ;;  %s6840_s18 = smov 40  }
0x1363   :  { %3359 = vrot.lane.b32.xlu1 %v6419_v22, %s5873_s0  ;;  %v6583_v22 = vadd.f32 %v6469_v53, %v3097_v5 }
0x1364   :  { %3357 = vrot.lane.b32.xlu0 %v6421_v25, %s5873_s0  ;;  %v3103_v25 = vsel %vm117_vm0, %v6577_v4, -inf }
0x1365   :  { %v3109_v18 = vsel %vm117_vm0, %v6583_v22, -inf }
0x1367   :  { %3363 = vrot.lane.b32.xlu1 %v6429_v28, %s5873_s0  ;;  %v6588_v28 = vadd.f32 %v6463_v49, %v3098_v11 }
0x1368   :  { %3361 = vrot.lane.b32.xlu0 %v6431_v30, %s5873_s0  ;;  %v3106_v30 = vsel %vm117_vm0, %v6580_v6, -inf }
0x1369   :  { %v3112_v21 = vsel %vm117_vm0, %v6588_v28, -inf }
0x1387   :  { %3104 = vmax.xlane.f32.xlu0 %v3103_v25 }
0x138b   :  { %3107 = vmax.xlane.f32.xlu1 %v3106_v30  ;;  %3110 = vmax.xlane.f32.xlu0 %v3109_v18 }
0x138f   :  { %3113 = vmax.xlane.f32.xlu0 %v3112_v21 }
0x13ce   :  { %v2660_v26 = vpop.xlane.xlu0 %2659 }
0x13cf   :  { %v2657_v23 = vpop.xlane.xlu1 %2656 }
0x13d0   :  { %5700 = vrcp.f32 %v2657_v23 }
0x13d1   :  { %5702 = vrcp.f32 %v2660_v26 }
0x13d3   :  { %v2663_v29 = vpop.xlane.xlu1 %2662 }
0x13d4   :  { %5704 = vrcp.f32 %v2663_v29  ;;  %v4407_v29 = vld [vmem:[%s6812_s5 + $0x28] sm:$0xff] }
0x13d7   :  { %v5558_v61 = vpop.permute.xlu1 %5557  ;;  %v2666_v62 = vpop.xlane.xlu0 %2665 }
0x13d8   :  { %v5560_v33 = vunpack.i.h.bf16 %v5558_v61  ;;  %v5559_v0 = vunpack.i.l.bf16 %v5558_v61  ;;  %5706 = vrcp.f32 %v2666_v62  ;;  %v4406_v61 = vld [vmem:[%s6812_s5 + $0x20] sm:$0xff] }
0x13da   :  { %v5701_v34 = vpop.eup %5700  ;;  %v5306_v36 = vpack.c.bf16 %v5560_v33, %v5559_v0 }
0x13db   :  { %v5568_v37 = vpop.permute.xlu1 %5567  ;;  %v5563_v38 = vpop.permute.xlu0 %5562  ;;  %v2671_v39 = vmul.f32 %v5701_v34, %v5695_v12 }
0x13dc   :  { %v5570_v40 = vunpack.i.h.bf16 %v5568_v37  ;;  %v5569_v63 = vunpack.i.l.bf16 %v5568_v37  ;;  %v5565_v31 = vunpack.i.h.bf16 %v5563_v38  ;;  %v5564_v41 = vunpack.i.l.bf16 %v5563_v38  ;;  %5307 = vmatprep.subr.bf16.mxu1 %v5306_v36  ;;  %v5703_v47 = vpop.eup %5702 }
0x13dd   :  { %5309 = vmatpush3.bf16.msra.mxu1 %v5306_v36  ;;  %5002 = vmatprep.mubr.msk.f32.mxu1 %vm117_vm0, %v2671_v39  ;;  %v2672_v52 = vmul.f32 %v5703_v47, %v6547_v17 }
0x13de   :  { %v5334_v43 = vpack.c.bf16 %v5570_v40, %v5569_v63  ;;  %v5310_v46 = vpack.c.bf16 %v5565_v31, %v5564_v41  ;;  %v5705_v42 = vpop.eup %5704 }
0x13df   :  { %v5573_v44 = vpop.permute.xlu1 %5572  ;;  %v3358_v48 = vpop.permute.xlu0 %3357  ;;  %v2673_v55 = vmul.f32 %v5705_v42, %v6552_v58 }
0x13e0   :  { %v5575_v50 = vunpack.i.h.bf16 %v5573_v44  ;;  %v5574_v51 = vunpack.i.l.bf16 %v5573_v44  ;;  %5311 = vmatprep.subr.bf16.mxu1 %v5310_v46  ;;  %5336 = vmatprep.subr.msk.bf16.mxu0 %vm6056_vm2, %v5334_v43 }
0x13e1   :  { %5068 = vmatprep.mubr.msk.f32.mxu0 %vm231_vm1, %v3358_v48  ;;  %5313 = vmatpush3.bf16.msra.mxu1 %v5310_v46 }
0x13e2   :  { %v5340_v54 = vpack.c.bf16 %v5575_v50, %v5574_v51  ;;  %5339 = vmatpush3.bf16.xpose.msk.msra.mxu0 %vm6056_vm2, %v5334_v43  ;;  %v5707_v56 = vpop.eup %5706  ;;  %5008 = vmatprep.subr.mxu1 %v4407_v29 }
0x13e3   :  { %v2674_v57 = vmul.f32 %v5707_v56, %v6556_v60  ;;  %v3360_v17 = vpop.permute.xlu1 %3359  ;;  %v3362_v12 = vpop.permute.xlu0 %3361 }
0x13e4   :  { %5003 = vmatmul.mubr.msk.f32.vlgmr.msra.gmra.mrb[28].mxu1 %vm117_vm0, %v2672_v52  ;;  %5342 = vmatprep.subr.msk.bf16.mxu0 %vm6056_vm2, %v5340_v54 }
0x13e5   :  { %5005 = vmatprep.mubr.msk.f32.mxu1 %vm117_vm0, %v2673_v55  ;;  %5009 = vmatpush3.msra.mxu1 %v4407_v29 }
0x13e6   :  { %5016 = vmatprep.subr.mxu1 %v4406_v61 }
0x13e7   :  { %v3364_v14 = vpop.permute.xlu1 %3363 }
0x13e8   :  { %5006 = vmatmul.mubr.msk.f32.gmra.mrb[30].mxu1 %vm117_vm0, %v2674_v57 }
0x13ea   :  { %5345 = vmatpush3.bf16.xpose.msk.msra.mxu0 %vm6056_vm2, %v5340_v54 }
0x13f1   :  { %5069 = vmatmul.mubr.msk.f32.vlgmr.msra.gmra.mrb[40].mxu0 %vm231_vm1, %v3360_v17 }
0x13f2   :  { %5071 = vmatprep.mubr.msk.f32.mxu0 %vm231_vm1, %v3362_v12 }
0x13f5   :  { %5072 = vmatmul.mubr.msk.f32.gmra.mrb[42].mxu0 %vm231_vm1, %v3364_v14 }
0x1414   :  { %v3105_v19 = vpop.xlane.xlu0 %3104 }
0x1415   :  { %v3115_v58 = vsub.f32 %v6577_v4, %v3105_v19 }
0x1417   :  { %v3119_v59 = vmul.f32 1.442695, %v3115_v58 }
0x1418   :  { %v3108_v1 = vpop.xlane.xlu1 %3107  ;;  %v3111_v60 = vpop.xlane.xlu0 %3110 }
0x1419   :  { %5708 = vpow2.f32 %v3119_v59  ;;  %v3116_v2 = vsub.f32 %v6580_v6, %v3108_v1  ;;  %v3117_v24 = vsub.f32 %v6583_v22, %v3111_v60 }
0x141b   :  { %v3121_v3 = vmul.f32 1.442695, %v3116_v2  ;;  %v3123_v5 = vmul.f32 1.442695, %v3117_v24  ;;  %v4408_v24 = vld [vmem:[%s6812_s5 + $0x30] sm:$0xff] }
0x141c   :  { %v3114_v11 = vpop.xlane.xlu0 %3113 }
0x141d   :  { %5710 = vpow2.f32 %v3121_v3  ;;  %v3118_v25 = vsub.f32 %v6588_v28, %v3114_v11 }
0x141e   :  { %5712 = vpow2.f32 %v3123_v5 }
0x141f   :  { %v3125_v30 = vmul.f32 1.442695, %v3118_v25 }
0x1421   :  { %5714 = vpow2.f32 %v3125_v30 }
0x1423   :  { %v5709_v18 = vpop.eup %5708 }
0x1424   :  { %v3127_v4 = vsel %vm117_vm0, %v5709_v18, 0.0 }
0x1425   :  { %3128 = vadd.xlane.f32.xlu1 %v3127_v4 }
0x1427   :  { %v5711_v21 = vpop.eup %5710 }
0x1428   :  { %v6620_v23 = vpop.eup %5712  ;;  %v3130_v6 = vsel %vm117_vm0, %v5711_v21, 0.0 }
0x1429   :  { %3131 = vadd.xlane.f32.xlu0 %v3130_v6  ;;  %v3133_v22 = vsel %vm117_vm0, %v6620_v23, 0.0 }
0x142a   :  { %3134 = vadd.xlane.f32.xlu1 %v3133_v22 }
0x142b   :  { %v6625_v26 = vpop.eup %5714 }
0x142c   :  { %v3136_v28 = vsel %vm117_vm0, %v6625_v26, 0.0 }
0x142d   :  { %3137 = vadd.xlane.f32.xlu0 %v3136_v28 }
0x143b   :  { %5577 = vrot.lane.b32.xlu1 %v6427_v27, %s6839_s20 }
0x1443   :  { %5582 = vrot.lane.b32.xlu0 %v6437_v32, %s6839_s20 }
0x14b2   :  { %v3129_v62 = vpop.xlane.xlu1 %3128 }
0x14b3   :  { %5716 = vrcp.f32 %v3129_v62 }
0x14b6   :  { %v3132_v33 = vpop.xlane.xlu0 %3131 }
0x14b7   :  { %v3135_v0 = vpop.xlane.xlu1 %3134  ;;  %v5004_v34 = vpop.f32.mrb[28].mxu1  ;;  %5718 = vrcp.f32 %v3132_v33 }
0x14b8   :  { %v2765_v36 = vpop.f32.mrb[29].mxu1  ;;  %5720 = vrcp.f32 %v3135_v0 }
0x14b9   :  { %5010 = vmatprep.mubr.msk.f32.mxu1 %vm231_vm1, %v2765_v36 }
0x14ba   :  { %v3138_v37 = vpop.xlane.xlu0 %3137  ;;  %5011 = vmatmul.mubr.msk.f32.vlgmr.msra.gmra.mrb[32].mxu1 %vm231_vm1, %v5004_v34 }
0x14bb   :  { %v5578_v38 = vpop.permute.xlu1 %5577  ;;  %v5007_v39 = vpop.f32.mrb[30].mxu1  ;;  %5017 = vmatpush3.msra.mxu1 %v4406_v61  ;;  %5722 = vrcp.f32 %v3138_v37 }
0x14bc   :  { %v5580_v40 = vunpack.i.h.bf16 %v5578_v38  ;;  %v5579_v63 = vunpack.i.l.bf16 %v5578_v38  ;;  %v2775_v31 = vpop.f32.mrb[31].mxu1 }
0x14bd   :  { %5013 = vmatprep.mubr.msk.f32.mxu1 %vm231_vm1, %v2775_v31  ;;  %v5717_v48 = vpop.eup %5716 }
0x14be   :  { %v5326_v41 = vpack.c.bf16 %v5580_v40, %v5579_v63  ;;  %v5583_v43 = vpop.permute.xlu0 %5582  ;;  %5014 = vmatmul.mubr.msk.f32.gmra.mrb[34].mxu1 %vm231_vm1, %v5007_v39  ;;  %v3143_v54 = vmul.f32 %v5717_v48, %v5709_v18 }
0x14bf   :  { %v5585_v46 = vunpack.i.h.bf16 %v5583_v43  ;;  %v5584_v47 = vunpack.i.l.bf16 %v5583_v43  ;;  %5018 = vmatprep.mubr.msk.f32.mxu1 %vm231_vm1, %v6533_v15 }
0x14c0   :  { %5327 = vmatprep.subr.bf16.mxu1 %v5326_v41 }
0x14c1   :  { %v5330_v44 = vpack.c.bf16 %v5585_v46, %v5584_v47  ;;  %v5719_v50 = vpop.eup %5718 }
0x14c2   :  { %5019 = vmatmul.mubr.msk.f32.vlgmr.msra.gmra.mrb[32].mxu1 %vm231_vm1, %v6531_v7  ;;  %v5721_v56 = vpop.eup %5720  ;;  %v3144_v7 = vmul.f32 %v5719_v50, %v5711_v21 }
0x14c3   :  { %5329 = vmatpush3.bf16.msra.mxu1 %v5326_v41  ;;  %5021 = vmatprep.mubr.msk.f32.mxu1 %vm231_vm1, %v6537_v10  ;;  %v3145_v58 = vmul.f32 %v5721_v56, %v6620_v23 }
0x14c4   :  { %5331 = vmatprep.subr.bf16.mxu1 %v5330_v44  ;;  %v5070_v42 = vpop.f32.mrb[40].mxu0 }
0x14c5   :  { %v3475_v51 = vmul.f32 0.35355338, %v5070_v42  ;;  %v3455_v52 = vpop.f32.mrb[41].mxu0  ;;  %v5723_v17 = vpop.eup %5722 }
0x14c6   :  { %v3474_v55 = vmul.f32 0.35355338, %v3455_v52  ;;  %5022 = vmatmul.mubr.msk.f32.gmra.mrb[34].mxu1 %vm231_vm1, %v6535_v8  ;;  %v3146_v1 = vmul.f32 %v5723_v17, %v6625_v26  ;;  %v4409_v52 = vld [vmem:[%s6812_s5 + $0x38] sm:$0xff] }
0x14c7   :  { %v3479_v15 = vadd.f32 %v6455_v35, %v3475_v51  ;;  %5333 = vmatpush3.bf16.msra.mxu1 %v5330_v44  ;;  %5046 = vmatprep.mubr.msk.f32.mxu1 %vm117_vm0, %v3143_v54 }
0x14c8   :  { %v3478_v57 = vadd.f32 %v6458_v45, %v3474_v55  ;;  %v5073_v10 = vpop.f32.mrb[42].mxu0  ;;  %5052 = vmatprep.subr.mxu1 %v4408_v24 }
0x14c9   :  { %v3477_v12 = vmul.f32 0.35355338, %v5073_v10  ;;  %v3465_v14 = vpop.f32.mrb[43].mxu0  ;;  %v3485_v19 = vsel %vm117_vm0, %v3479_v15, -inf }
0x14ca   :  { %v3476_v59 = vmul.f32 0.35355338, %v3465_v14  ;;  %3486 = vmax.xlane.f32.xlu0 %v3485_v19  ;;  %v3482_v8 = vsel %vm117_vm0, %v3478_v57, -inf  ;;  %5047 = vmatmul.mubr.msk.f32.vlgmr.msra.gmra.mrb[36].mxu1 %vm117_vm0, %v3144_v7  ;;  %v4475_v14 = vld [vmem:[%s6813_s6 + $0x1] ss:$0 sm:$0xff] }
0x14cb   :  { %v3481_v35 = vadd.f32 %v6463_v49, %v3477_v12  ;;  %3483 = vmax.xlane.f32.xlu1 %v3482_v8  ;;  %5049 = vmatprep.mubr.msk.f32.mxu1 %vm117_vm0, %v3145_v58 }
0x14cc   :  { %v3480_v45 = vadd.f32 %v6469_v53, %v3476_v59  ;;  %5053 = vmatpush3.msra.mxu1 %v4408_v24 }
0x14cd   :  { %v3491_v60 = vsel %vm117_vm0, %v3481_v35, -inf }
0x14ce   :  { %3492 = vmax.xlane.f32.xlu0 %v3491_v60  ;;  %v3488_v2 = vsel %vm117_vm0, %v3480_v45, -inf  ;;  %5050 = vmatmul.mubr.msk.f32.gmra.mrb[38].mxu1 %vm117_vm0, %v3146_v1 }
0x14cf   :  { %3489 = vmax.xlane.f32.xlu1 %v3488_v2 }
0x1557   :  { %v3487_v49 = vpop.xlane.xlu0 %3486 }
0x1558   :  { %v3495_v3 = vsub.f32 %v3479_v15, %v3487_v49  ;;  %v3484_v5 = vpop.xlane.xlu1 %3483 }
0x1559   :  { %v3494_v53 = vsub.f32 %v3478_v57, %v3484_v5 }
0x155a   :  { %v3500_v11 = vmul.f32 1.442695, %v3495_v3 }
0x155b   :  { %v3498_v25 = vmul.f32 1.442695, %v3494_v53  ;;  %v3493_v30 = vpop.xlane.xlu0 %3492 }
0x155c   :  { %5724 = vpow2.f32 %v3500_v11  ;;  %v3497_v18 = vsub.f32 %v3481_v35, %v3493_v30  ;;  %v3490_v4 = vpop.xlane.xlu1 %3489 }
0x155d   :  { %5726 = vpow2.f32 %v3498_v25  ;;  %v3496_v21 = vsub.f32 %v3480_v45, %v3490_v4 }
0x155e   :  { %v3504_v23 = vmul.f32 1.442695, %v3497_v18 }
0x155f   :  { %v3502_v6 = vmul.f32 1.442695, %v3496_v21 }
0x1560   :  { %5728 = vpow2.f32 %v3504_v23 }
0x1561   :  { %5730 = vpow2.f32 %v3502_v6 }
0x1566   :  { %v5725_v22 = vpop.eup %5724 }
0x1567   :  { %v5727_v26 = vpop.eup %5726  ;;  %v3509_v28 = vsel %vm117_vm0, %v5725_v22, 0.0 }
0x1568   :  { %3510 = vadd.xlane.f32.xlu0 %v3509_v28  ;;  %v3506_v29 = vsel %vm117_vm0, %v5727_v26, 0.0 }
0x1569   :  { %3507 = vadd.xlane.f32.xlu1 %v3506_v29 }
0x156a   :  { %v5729_v61 = vpop.eup %5728 }
0x156b   :  { %v5731_v62 = vpop.eup %5730  ;;  %v3515_v33 = vsel %vm117_vm0, %v5729_v61, 0.0 }
0x156c   :  { %3516 = vadd.xlane.f32.xlu0 %v3515_v33  ;;  %v3512_v0 = vsel %vm117_vm0, %v5731_v62, 0.0 }
0x156d   :  { %3513 = vadd.xlane.f32.xlu1 %v3512_v0 }
0x157e   :  { %5587 = vrot.lane.b32.xlu1 %v6427_v27, %s6840_s18 }
0x1582   :  { %5592 = vrot.lane.b32.xlu0 %v6437_v32, %s6840_s18  ;;  %s5879_s18 = smov [#allocation8]  }
0x1583   :  { %s4302_s25 = sshll.u32 %s5879_s18, 4  ;;  %s4303_s25 = int_to_ptr.vmem [resolvable:$true] %s4302_s25 }
0x1584   :  { %p5835_p11 = scmp.lt.s32.totalorder %s4303_s25, %s4303_s25 }
0x159d   :  { %v5048_v34 = vpop.f32.mrb[36].mxu1 }
0x159e   :  { %v3237_v36 = vpop.f32.mrb[37].mxu1 }
0x159f   :  { %5054 = vmatprep.mubr.msk.f32.mxu1 %vm231_vm1, %v3237_v36 }
0x15a0   :  { %5055 = vmatmul.mubr.msk.f32.vlgmr.msra.gmra.mrb[32].mxu1 %vm231_vm1, %v5048_v34 }
0x15a1   :  { %v5051_v37 = vpop.f32.mrb[38].mxu1 }
0x15a2   :  { %v3247_v38 = vpop.f32.mrb[39].mxu1 }
0x15a3   :  { %5057 = vmatprep.mubr.msk.f32.mxu1 %vm231_vm1, %v3247_v38  ;;  %v4481_v38 = vld [vmem:[%s6816_s9 + $0x28] sm:$0xff] }
0x15a4   :  { %5058 = vmatmul.mubr.msk.f32.gmra.mrb[34].mxu1 %vm231_vm1, %v5051_v37  ;;  %v4480_v37 = vld [vmem:[%s6816_s9 + $0x20] sm:$0xff] }
0x15f5   :  { %v3511_v39 = vpop.xlane.xlu0 %3510 }
0x15f6   :  { %v3508_v40 = vpop.xlane.xlu1 %3507 }
0x15f7   :  { %5732 = vrcp.f32 %v3508_v40  ;;  %v4482_v40 = vld [vmem:[%s6816_s9 + $0x30] sm:$0xff] }
0x15f8   :  { %5734 = vrcp.f32 %v3511_v39  ;;  %v5354_v39 = vpack.c.bf16 %v4481_v38, %v4480_v37 }
0x15f9   :  { %v3517_v63 = vpop.xlane.xlu0 %3516 }
0x15fa   :  { %v3514_v27 = vpop.xlane.xlu1 %3513  ;;  %5355 = vmatprep.subr.bf16.mxu0 %v5354_v39 }
0x15fb   :  { %5736 = vrcp.f32 %v3514_v27  ;;  %5357 = vmatpush3.bf16.msra.mxu0 %v5354_v39 }
0x15fc   :  { %5738 = vrcp.f32 %v3517_v63  ;;  %v4483_v63 = vld [vmem:[%s6816_s9 + $0x38] sm:$0xff] }
0x15fd   :  { %v5593_v32 = vpop.permute.xlu0 %5592  ;;  %v5358_v27 = vpack.c.bf16 %v4483_v63, %v4482_v40 }
0x15fe   :  { %v5588_v31 = vpop.permute.xlu1 %5587  ;;  %v5595_v41 = vunpack.i.h.bf16 %v5593_v32  ;;  %v5594_v43 = vunpack.i.l.bf16 %v5593_v32  ;;  %v4489_v32 = vld [vmem:[%s6818_s11 + $0x40] sm:$0xff] }
0x15ff   :  { %v5590_v46 = vunpack.i.h.bf16 %v5588_v31  ;;  %v5589_v47 = vunpack.i.l.bf16 %v5588_v31  ;;  %5359 = vmatprep.subr.bf16.mxu0 %v5358_v27  ;;  %v4490_v31 = vld [vmem:[%s6818_s11 + $0x48] sm:$0xff] }
0x1600   :  { %v5350_v50 = vpack.c.bf16 %v5595_v41, %v5594_v43  ;;  %5361 = vmatpush3.bf16.msra.mxu0 %v5358_v27  ;;  %v5362_v41 = vpack.c.bf16 %v4490_v31, %v4489_v32 }
0x1601   :  { %v5733_v44 = vpop.eup %5732  ;;  %v5346_v48 = vpack.c.bf16 %v5590_v46, %v5589_v47 }
0x1602   :  { %v3522_v42 = vmul.f32 %v5733_v44, %v5727_v26  ;;  %v5735_v51 = vpop.eup %5734  ;;  %5363 = vmatprep.subr.bf16.mxu0 %v5362_v41 }
0x1603   :  { %5347 = vmatprep.subr.bf16.mxu1 %v5346_v48  ;;  %v3523_v56 = vmul.f32 %v5735_v51, %v5725_v22 }
0x1604   :  { %5349 = vmatpush3.bf16.msra.mxu1 %v5346_v48  ;;  %5082 = vmatprep.mubr.msk.f32.mxu1 %vm117_vm0, %v3522_v42 }
0x1605   :  { %5351 = vmatprep.subr.bf16.mxu1 %v5350_v50  ;;  %v5737_v54 = vpop.eup %5736 }
0x1606   :  { %v5739_v55 = vpop.eup %5738  ;;  %v3524_v15 = vmul.f32 %v5737_v54, %v5731_v62 }
0x1607   :  { %v3525_v7 = vmul.f32 %v5739_v55, %v5729_v61 }
0x1608   :  { %5353 = vmatpush3.bf16.msra.mxu1 %v5350_v50 }
0x1609   :  { %5088 = vmatprep.subr.mxu1 %v4409_v52 }
0x160b   :  { %5083 = vmatmul.mubr.msk.f32.vlgmr.msra.gmra.mrb[40].mxu1 %vm117_vm0, %v3523_v56 }
0x160c   :  { %5085 = vmatprep.mubr.msk.f32.mxu1 %vm117_vm0, %v3524_v15  ;;  %5089 = vmatpush3.msra.mxu1 %v4409_v52 }
0x160f   :  { %5086 = vmatmul.mubr.msk.f32.gmra.mrb[42].mxu1 %vm117_vm0, %v3525_v7  ;;  %v4478_v7 = vld [vmem:[%s6814_s7 + $0x1] ss:$0 sm:$0xff] }
0x16de   :  { %v5084_v57 = vpop.f32.mrb[40].mxu1 }
0x16df   :  { %v3616_v10 = vpop.f32.mrb[41].mxu1 }
0x16e0   :  { %5090 = vmatprep.mubr.msk.f32.mxu1 %vm231_vm1, %v3616_v10 }
0x16e1   :  { %5091 = vmatmul.mubr.msk.f32.vlgmr.msra.gmra.mrb[32].mxu1 %vm231_vm1, %v5084_v57 }
0x16e2   :  { %v5087_v17 = vpop.f32.mrb[42].mxu1 }
0x16e3   :  { %v3626_v12 = vpop.f32.mrb[43].mxu1 }
0x16e4   :  { %5093 = vmatprep.mubr.msk.f32.mxu1 %vm231_vm1, %v3626_v12  ;;  %v4479_v12 = vld [vmem:[%s6815_s8 + $0x1] ss:$0 sm:$0xff] }
0x16e5   :  { %5094 = vmatmul.mubr.msk.f32.gmra.mrb[34].mxu1 %vm231_vm1, %v5087_v17 }
0x17b4   :  { %v5092_v19 = vpop.f32.mrb[32].mxu1 }
0x17b5   :  { %v3745_v58 = vadd.f32 %v5092_v19, %v4475_v14  ;;  %v3713_v59 = vpop.f32.mrb[33].mxu1 }
0x17b6   :  { %v3744_v8 = vadd.f32 %v4475_v14, %v3713_v59  ;;  %v4491_v59 = vld [vmem:[%s6818_s11 + $0x50] sm:$0xff] }
0x17b7   :  { %v3749_v35 = vadd.f32 %v3745_v58, %v6402_v9 }
0x17b8   :  { %v3748_v45 = vadd.f32 %v3744_v8, %v6400_v20  ;;  %v5095_v1 = vpop.f32.mrb[34].mxu1  ;;  %v4492_v8 = vld [vmem:[%s6818_s11 + $0x58] sm:$0xff] }
0x17b9   :  { %v3747_v60 = vadd.f32 %v5095_v1, %v4475_v14  ;;  %v3723_v2 = vpop.f32.mrb[35].mxu1  ;;  %v3759_v24 = vsel %vm117_vm0, %v3749_v35, 0.0 }
0x17ba   :  { %v3746_v49 = vadd.f32 %v4475_v14, %v3723_v2  ;;  %3760 = vadd.xlane.f32.xlu0 %v3759_v24  ;;  %v3756_v3 = vsel %vm117_vm0, %v3748_v45, 0.0 }
0x17bb   :  { %v3751_v5 = vadd.f32 %v3747_v60, %v6410_v16  ;;  %3757 = vadd.xlane.f32.xlu1 %v3756_v3 }
0x17bc   :  { %v3750_v53 = vadd.f32 %v3746_v49, %v6408_v13  ;;  %v5366_v49 = vpack.c.bf16 %v4492_v8, %v4491_v59 }
0x17bd   :  { %v3765_v11 = vsel %vm117_vm0, %v3751_v5, 0.0 }
0x17be   :  { %3766 = vadd.xlane.f32.xlu0 %v3765_v11  ;;  %v3762_v9 = vsel %vm117_vm0, %v3750_v53, 0.0 }
0x17bf   :  { %3763 = vadd.xlane.f32.xlu1 %v3762_v9 }
0x1847   :  { %v3761_v20 = vpop.xlane.xlu0 %3760 }
0x1848   :  { %v3769_v25 = vmul.f32 0.03125, %v3761_v20  ;;  %v3758_v30 = vpop.xlane.xlu1 %3757 }
0x1849   :  { %v3768_v18 = vmul.f32 0.03125, %v3758_v30  ;;  %v4496_v30 = vld [vmem:[%s6818_s11 + $0x78] sm:$0xff] }
0x184a   :  { %v3773_v4 = vsub.f32 %v3749_v35, %v3769_v25  ;;  %v4495_v25 = vld [vmem:[%s6818_s11 + $0x70] sm:$0xff] }
0x184b   :  { %v3772_v21 = vsub.f32 %v3748_v45, %v3768_v18  ;;  %v3767_v23 = vpop.xlane.xlu0 %3766  ;;  %v5374_v18 = vpack.c.bf16 %v4496_v30, %v4495_v25 }
0x184c   :  { %v3771_v6 = vmul.f32 0.03125, %v3767_v23  ;;  %v3764_v22 = vpop.xlane.xlu1 %3763  ;;  %v3777_v26 = vmul.f32 %v3773_v4, %v3773_v4 }
0x184d   :  { %v3770_v16 = vmul.f32 0.03125, %v3764_v22  ;;  %v3776_v28 = vmul.f32 %v3772_v21, %v3772_v21 }
0x184e   :  { %v3775_v29 = vsub.f32 %v3751_v5, %v3771_v6  ;;  %v3783_v13 = vsel %vm117_vm0, %v3777_v26, 0.0  ;;  %v4493_v5 = vld [vmem:[%s6818_s11 + $0x60] sm:$0xff] }
0x184f   :  { %v3774_v61 = vsub.f32 %v3750_v53, %v3770_v16  ;;  %3784 = vadd.xlane.f32.xlu0 %v3783_v13  ;;  %v3780_v62 = vsel %vm117_vm0, %v3776_v28, 0.0  ;;  %v4494_v53 = vld [vmem:[%s6818_s11 + $0x68] sm:$0xff] }
0x1850   :  { %3781 = vadd.xlane.f32.xlu1 %v3780_v62  ;;  %v3779_v33 = vmul.f32 %v3775_v29, %v3775_v29  ;;  %v5370_v20 = vpack.c.bf16 %v4494_v53, %v4493_v5 }
0x1851   :  { %v3778_v0 = vmul.f32 %v3774_v61, %v3774_v61 }
0x1852   :  { %v3789_v34 = vsel %vm117_vm0, %v3779_v33, 0.0 }
0x1853   :  { %3790 = vadd.xlane.f32.xlu0 %v3789_v34  ;;  %v3786_v36 = vsel %vm117_vm0, %v3778_v0, 0.0  ;;  %v4498_v0 = vld [vmem:[%s6819_s12 + $0x1] ss:$0 sm:$0xff] }
0x1854   :  { %3787 = vadd.xlane.f32.xlu1 %v3786_v36 }
0x18dc   :  { %v3785_v43 = vpop.xlane.xlu0 %3784 }
0x18dd   :  { %v3793_v46 = vmul.f32 0.03125, %v3785_v43  ;;  %v3782_v47 = vpop.xlane.xlu1 %3781 }
0x18de   :  { %v3792_v44 = vmul.f32 0.03125, %v3782_v47 }
0x18df   :  { %v3797_v48 = vadd.f32 1e-05, %v3793_v46 }
0x18e0   :  { %v3796_v42 = vadd.f32 1e-05, %v3792_v44  ;;  %v3791_v50 = vpop.xlane.xlu0 %3790 }
0x18e1   :  { %5740 = vrsqrt.f32 %v3797_v48  ;;  %v3795_v51 = vmul.f32 0.03125, %v3791_v50  ;;  %v3788_v52 = vpop.xlane.xlu1 %3787 }
0x18e2   :  { %5742 = vrsqrt.f32 %v3796_v42  ;;  %v3794_v54 = vmul.f32 0.03125, %v3788_v52 }
0x18e3   :  { %v3799_v56 = vadd.f32 1e-05, %v3795_v51 }
0x18e4   :  { %v3798_v55 = vadd.f32 1e-05, %v3794_v54 }
0x18e5   :  { %5744 = vrsqrt.f32 %v3799_v56 }
0x18e6   :  { %5746 = vrsqrt.f32 %v3798_v55 }
0x18eb   :  { %v5741_v15 = vpop.eup %5740 }
0x18ec   :  { %v5743_v57 = vpop.eup %5742  ;;  %v3805_v10 = vmul.f32 %v5741_v15, %v3773_v4  ;;  %v4484_v4 = vld [vmem:[#allocation7 + $0x1] ss:$0 sm:$0xff] }
0x18ed   :  { %v3804_v17 = vmul.f32 %v5743_v57, %v3772_v21 }
0x18ee   :  { %v3815_v14 = vmul.f32 %v4478_v7, %v3805_v10 }
0x18ef   :  { %v5745_v19 = vpop.eup %5744  ;;  %v3814_v58 = vmul.f32 %v4478_v7, %v3804_v17 }
0x18f0   :  { %v5747_v35 = vpop.eup %5746  ;;  %v3807_v45 = vmul.f32 %v5745_v19, %v3775_v29  ;;  %v3825_v2 = vadd.f32 %v4479_v12, %v3815_v14 }
0x18f1   :  { %v3824_v1 = vadd.f32 %v4479_v12, %v3814_v58  ;;  %v3806_v60 = vmul.f32 %v5747_v35, %v3774_v61 }
0x18f2   :  { %v3817_v24 = vmul.f32 %v4478_v7, %v3807_v45 }
0x18f3   :  { %5104 = vmatprep.mubr.msk.f32.mxu0 %vm117_vm0, %v3824_v1  ;;  %v3816_v3 = vmul.f32 %v4478_v7, %v3806_v60  ;;  %v5878_v60 = vmov 0.0  }
0x18f4   :  { %5105 = vmatmul.mubr.msk.f32.vlgmr.msra.gmra.mrb[44].mxu0 %vm117_vm0, %v3825_v2  ;;  %v3827_v9 = vadd.f32 %v4479_v12, %v3817_v24  ;;  %5140 = vmatprep.mubr.msk.f32.mxu1 %vm5877_vm4, %v5878_v60 }
0x18f5   :  { %v3826_v11 = vadd.f32 %v4479_v12, %v3816_v3  ;;  %5365 = vmatpush3.bf16.msra.mxu0 %v5362_v41 }
0x18f6   :  { %5367 = vmatprep.subr.bf16.mxu0 %v5366_v49 }
0x18f7   :  { %5107 = vmatprep.mubr.msk.f32.mxu0 %vm117_vm0, %v3826_v11 }
0x18f8   :  { %5108 = vmatmul.mubr.msk.f32.gmra.mrb[46].mxu0 %vm117_vm0, %v3827_v9 }
0x18f9   :  { %5369 = vmatpush3.bf16.msra.mxu0 %v5366_v49 }
0x18fa   :  { %5371 = vmatprep.subr.bf16.mxu0 %v5370_v20 }
0x18fd   :  { %5373 = vmatpush3.bf16.msra.mxu0 %v5370_v20 }
0x18fe   :  { %5375 = vmatprep.subr.bf16.mxu0 %v5374_v18 }
0x1901   :  { %5377 = vmatpush3.bf16.msra.mxu0 %v5374_v18 }
0x19c7   :  { %v5106_v21 = vpop.f32.mrb[44].mxu0 }
0x19c8   :  { %v3925_v23 = vadd.f32 %v5106_v21, %v4484_v4  ;;  %v3919_v6 = vpop.f32.mrb[45].mxu0  ;;  %v4505_v21 = vld [vmem:[%s6820_s13 + $0x1] ss:$0 sm:$0xff] }
0x19c9   :  { %v3920_v22 = vadd.f32 %v4484_v4, %v3919_v6 }
0x19ca   :  { %v3939_v28 = vmax.f32 %v3925_v23, 0.0 }
0x19cb   :  { %v3938_v26 = vmax.f32 %v3920_v22, 0.0  ;;  %v5109_v16 = vpop.f32.mrb[46].mxu0 }
0x19cc   :  { %v3935_v29 = vadd.f32 %v5109_v16, %v4484_v4  ;;  %v3929_v13 = vpop.f32.mrb[47].mxu0 }
0x19cd   :  { %v3930_v61 = vadd.f32 %v4484_v4, %v3929_v13  ;;  %5126 = vmatprep.mubr.msk.f32.mxu0 %vm1941_vm3, %v3938_v26  ;;  %v4506_v26 = vld [vmem:[%s6821_s14 + $0x1] ss:$0 sm:$0xff] }
0x19ce   :  { %5127 = vmatmul.mubr.msk.f32.vlgmr.msra.gmra.mrb[48].mxu0 %vm1941_vm3, %v3939_v28  ;;  %v3941_v33 = vmax.f32 %v3935_v29, 0.0 }
0x19cf   :  { %v3940_v62 = vmax.f32 %v3930_v61, 0.0 }
0x19d1   :  { %5129 = vmatprep.mubr.msk.f32.mxu0 %vm1941_vm3, %v3940_v62 }
0x19d2   :  { %5130 = vmatmul.mubr.msk.f32.gmra.mrb[50].mxu0 %vm1941_vm3, %v3941_v33 }
0x1aa1   :  { %v5128_v34 = vpop.f32.mrb[48].mxu0 }
0x1aa2   :  { %v4043_v36 = vadd.f32 %v5128_v34, %v4498_v0  ;;  %v4037_v37 = vpop.f32.mrb[49].mxu0 }
0x1aa3   :  { %v4038_v38 = vadd.f32 %v4498_v0, %v4037_v37 }
0x1aa4   :  { %v4057_v39 = vadd.f32 %v4043_v36, %v3825_v2 }
0x1aa5   :  { %v4056_v40 = vadd.f32 %v4038_v38, %v3824_v1  ;;  %v5131_v63 = vpop.f32.mrb[50].mxu0  ;;  %v5876_v1 = vmov 0.0|0.0  }
0x1aa6   :  { %v4053_v27 = vadd.f32 %v5131_v63, %v4498_v0  ;;  %v4047_v32 = vpop.f32.mrb[51].mxu0  ;;  %v4067_v31 = vsel %vm117_vm0, %v4057_v39, 0.0  ;;  %5378 = vmatprep.subr.bf16.mxu1 %v5876_v1  ;;  %v4211_v63 = vld [vmem:[%s6822_s15 + $0x8] sm:$0xff] }
0x1aa7   :  { %v4048_v41 = vadd.f32 %v4498_v0, %v4047_v32  ;;  %4068 = vadd.xlane.f32.xlu0 %v4067_v31  ;;  %v4064_v43 = vsel %vm117_vm0, %v4056_v40, 0.0  ;;  %v4136_v32 = vld [vmem:[%s6809_s2] sm:$0x3] }
0x1aa8   :  { %v4059_v46 = vadd.f32 %v4053_v27, %v3827_v9  ;;  %4065 = vadd.xlane.f32.xlu1 %v4064_v43  ;;  %v4213_v43 = vld [vmem:[%s6822_s15 + $0x18] sm:$0xff] }
0x1aa9   :  { %v4058_v47 = vadd.f32 %v4048_v41, %v3826_v11  ;;  %v4212_v41 = vld [vmem:[%s6822_s15 + $0x10] sm:$0xff] }
0x1aaa   :  { %v4073_v44 = vsel %vm117_vm0, %v4059_v46, 0.0 }
0x1aab   :  { %4074 = vadd.xlane.f32.xlu0 %v4073_v44  ;;  %v4070_v48 = vsel %vm117_vm0, %v4058_v47, 0.0 }
0x1aac   :  { %4071 = vadd.xlane.f32.xlu1 %v4070_v48  ;;  %v4508_v48 = vld [vmem:[%s6823_s16] ss:$0 sm:$0xff] }
0x1b34   :  { %v4069_v42 = vpop.xlane.xlu0 %4068 }
0x1b35   :  { %v4077_v50 = vmul.f32 0.03125, %v4069_v42  ;;  %v4066_v51 = vpop.xlane.xlu1 %4065 }
0x1b36   :  { %v4076_v52 = vmul.f32 0.03125, %v4066_v51 }
0x1b37   :  { %v4081_v54 = vsub.f32 %v4057_v39, %v4077_v50 }
0x1b38   :  { %v4080_v56 = vsub.f32 %v4056_v40, %v4076_v52  ;;  %v4075_v55 = vpop.xlane.xlu0 %4074  ;;  %v4210_v40 = vld [vmem:[%s6822_s15] sm:$0xff]  ;;  %s5830_s15 = scalar_lea.vmem %s4303_s25, 32 }
0x1b39   :  { %v4079_v15 = vmul.f32 0.03125, %v4075_v55  ;;  %v4072_v7 = vpop.xlane.xlu1 %4071  ;;  %v4085_v57 = vmul.f32 %v4081_v54, %v4081_v54  ;;  %v5385_v31 = vpack.c.bf16 %v4211_v63, %v4210_v40  ;;  %p5831_p10 = scmp.ne.s32.totalorder %s4303_s25, %s5830_s15  ;;  %p5836_p12 = scmp.lt.s32.totalorder %s5830_s15, %s5830_s15 }
0x1b3a   :  { %v4078_v10 = vmul.f32 0.03125, %v4072_v7  ;;  %v4084_v17 = vmul.f32 %v4080_v56, %v4080_v56 }
0x1b3b   :  { %v4083_v12 = vsub.f32 %v4059_v46, %v4079_v15  ;;  %v4091_v14 = vsel %vm117_vm0, %v4085_v57, 0.0  ;;  %v5388_v46 = vpack.c.bf16 %v4213_v43, %v4212_v41  ;;  %p5837_p13 = por %p5836_p12, %p5835_p11 }
0x1b3c   :  { %v4082_v19 = vsub.f32 %v4058_v47, %v4078_v10  ;;  %4092 = vadd.xlane.f32.xlu0 %v4091_v14  ;;  %v4088_v58 = vsel %vm117_vm0, %v4084_v17, 0.0 }
0x1b3d   :  { %4089 = vadd.xlane.f32.xlu1 %v4088_v58  ;;  %v4087_v59 = vmul.f32 %v4083_v12, %v4083_v12  ;;  %p5838_p0 = pnand %p5837_p13, %p5831_p10 }
0x1b3e   :  { %v4086_v8 = vmul.f32 %v4082_v19, %v4082_v19 }
0x1b3f   :  { %v4097_v35 = vsel %vm117_vm0, %v4087_v59, 0.0 }
0x1b40   :  { %4098 = vadd.xlane.f32.xlu0 %v4097_v35  ;;  %v4094_v45 = vsel %vm117_vm0, %v4086_v8, 0.0 }
0x1b41   :  { %4095 = vadd.xlane.f32.xlu1 %v4094_v45 }
0x1bc9   :  { %v4093_v2 = vpop.xlane.xlu0 %4092 }
0x1bca   :  { %v4101_v24 = vmul.f32 0.03125, %v4093_v2  ;;  %v4090_v49 = vpop.xlane.xlu1 %4089 }
0x1bcb   :  { %v4100_v3 = vmul.f32 0.03125, %v4090_v49 }
0x1bcc   :  { %v4105_v5 = vadd.f32 1e-05, %v4101_v24 }
0x1bcd   :  { %v4104_v53 = vadd.f32 1e-05, %v4100_v3  ;;  %v4099_v11 = vpop.xlane.xlu0 %4098 }
0x1bce   :  { %5748 = vrsqrt.f32 %v4105_v5  ;;  %v4103_v9 = vmul.f32 0.03125, %v4099_v11  ;;  %v4096_v20 = vpop.xlane.xlu1 %4095 }
0x1bcf   :  { %5750 = vrsqrt.f32 %v4104_v53  ;;  %v4102_v25 = vmul.f32 0.03125, %v4096_v20 }
0x1bd0   :  { %v4107_v30 = vadd.f32 1e-05, %v4103_v9 }
0x1bd1   :  { %v4106_v18 = vadd.f32 1e-05, %v4102_v25 }
0x1bd2   :  { %5752 = vrsqrt.f32 %v4107_v30 }
0x1bd3   :  { %5754 = vrsqrt.f32 %v4106_v18 }
0x1bd8   :  { %v5749_v4 = vpop.eup %5748 }
0x1bd9   :  { %v5751_v23 = vpop.eup %5750  ;;  %v4113_v6 = vmul.f32 %v5749_v4, %v4081_v54 }
0x1bda   :  { %v4112_v22 = vmul.f32 %v5751_v23, %v4080_v56 }
0x1bdb   :  { %v4123_v16 = vmul.f32 %v4505_v21, %v4113_v6 }
0x1bdc   :  { %v5753_v28 = vpop.eup %5752  ;;  %v4122_v29 = vmul.f32 %v4505_v21, %v4112_v22 }
0x1bdd   :  { %v5755_v13 = vpop.eup %5754  ;;  %v4115_v61 = vmul.f32 %v5753_v28, %v4083_v12  ;;  %v4133_v62 = vadd.f32 %v4506_v26, %v4123_v16 }
0x1bde   :  { %v4114_v33 = vmul.f32 %v5755_v13, %v4082_v19  ;;  %v4132_v0 = vadd.f32 %v4506_v26, %v4122_v29 }
0x1bdf   :  { %v4125_v34 = vmul.f32 %v4505_v21, %v4115_v61 }
0x1be0   :  { %v5379_v36 = vpack.c.bf16 %v4133_v62, %v4132_v0  ;;  %v4124_v37 = vmul.f32 %v4505_v21, %v4114_v33 }
0x1be1   :  { %v4135_v38 = vadd.f32 %v4506_v26, %v4125_v34 }
0x1be2   :  { %5380 = vmatpush3.bf16.msra.mxu1 %v5379_v36  ;;  %v4134_v39 = vadd.f32 %v4506_v26, %v4124_v37 }
0x1be3   :  { %5381 = vmatprep.subr.bf16.mxu1 %v5876_v1 }
0x1be4   :  { %v5382_v27 = vpack.c.bf16 %v4135_v38, %v4134_v39 }
0x1be6   :  { %5383 = vmatpush3.bf16.msra.mxu1 %v5382_v27 }
0x1be7   :  { %5384 = vmatprep.subr.bf16.mxu1 %v5876_v1 }
0x1be9   :  { %5141 = vmatmul.mubr.msk.f32.vlgmr.msra.gmra.mrb[44].mxu1 %vm117_vm0, %v4136_v32 }
0x1bea   :  { %5386 = vmatpush3.bf16.msra.mxu1 %v5385_v31  ;;  %5151 = vmatprep.mubr.msk.f32.mxu1 %vm5877_vm4, %v5878_v60 }
0x1beb   :  { %5387 = vmatprep.subr.bf16.mxu1 %v5876_v1 }
0x1bee   :  { %5389 = vmatpush3.bf16.msra.mxu1 %v5388_v46 }
0x1cbc   :  { %v4206_v47 = vpop.f32.mrb[44].mxu1 }
0x1cbd   :  { %v5142_v44 = vpop.f32.mrb[45].mxu1  ;;  %5152 = vmatmul.mubr.msk.f32.vlgmr.msra.gmra.mrb[46].mxu1 %vm117_vm0, %v4206_v47 }
0x1d90   :  { %v4290_v42 = vpop.f32.mrb[46].mxu1 }
0x1d91   :  { %v4291_v50 = vadd.f32 %v4508_v48, %v4290_v42  ;;  %v5153_v51 = vpop.f32.mrb[47].mxu1 }
0x1d93   :  { %4295 = vst.msk [vmem:[#allocation8] sm:$0x3] %vm4294_vm5, %v4291_v50 }
0x1d94   :  { %5841 = shalt.err (!%p5838_p0)
}
0x1d95   :  { %s6841_s8 = sld [smem:[#allocation14_spill]] }
0x1d9b   :  { %s5842_s5 = scalar_lea.hbm %s6841_s8, 32 }
0x1d9c   :  { %p5843_p1 = scmp.ne.s32.totalorder %s6841_s8, %s5842_s5  ;;  %p5846_p2 = scmp.lt.u32.totalorder %s5842_s5, %s6841_s8 }
0x1d9e   :  { %p5848_p3 = pnand %p5846_p2, %p5843_p1 }
0x1da0   :  { %5851 = shalt.err (!%p5848_p3)
}
0x1da1   :  { %4305 = dma.vmem_to_hbm [thread:$0]  %s4303_s25, 32, %s6841_s8, [#allocation4]  }
0x1da2   :  { %5856 = dma.done.wait [#allocation4], 32  }
0x1da3   :  { %5857 = vsyncadd [#allocation4], 4294967264 }
0x1da4   :  { %4309 = vsyncpa [#allocation3], 1 }
0x1da5   :  { %4310 = vsyncpa [#allocation6], 1 }
0x1da6   :  { %4311 = vsyncpa [#allocation4], 1 }

</bundles_post_ra>
